<compile_context>
chip_gen: v6e
topology: v6e:2x2x1
jax: 0.10.0
libtpu: 0.0.40
codegen_flags: <defaults>
</compile_context>

<pallas_src>
import jax
import jax.numpy as jnp
from jax import lax
from jax.experimental import pallas as pl
from jax.experimental.pallas import tpu as pltpu


def _bottleneck_kernel(x_ref, w1_ref, w2_ref, w3_ref,
                       s1_ref, b1_ref, s2_ref, b2_ref, s3_ref, b3_ref,
                       o_ref, pad_ref):
    """Fused Bottleneck forward for one block of images.

    x_ref  : (B, H, W, Cin)      bf16, Cin == 4 * P
    w1_ref : (Cin, P)            bf16   1x1 conv
    w2_ref : (3, 3P, P)          bf16   3x3 conv, rows are (kx*P + cin)
    w3_ref : (P, 4P)             bf16   1x1 conv
    s*_ref / b*_ref : (1, C) f32 folded BN scale / bias
    o_ref  : (B, H, W, 4P)       bf16
    pad_ref: (B, H+2, W, 3P)     bf16 VMEM scratch (H-padded kx-concat taps)
    """
    B, H, W, Cin = x_ref.shape
    P = w1_ref.shape[1]
    BHW = B * H * W

    # ---- conv1 (1x1) + bn1 + relu : channel matmul on the MXU ----
    h1 = jnp.dot(x_ref[...].reshape(BHW, Cin), w1_ref[...],
                 preferred_element_type=jnp.float32)
    h1 = jnp.maximum(h1 * s1_ref[...] + b1_ref[...], 0.0)          # (BHW, P) f32
    h1b = h1.astype(jnp.bfloat16).reshape(B, H, W, P)

    # ---- conv2 (3x3, pad=1, stride=1) + bn2 + relu ----
    # W-shifts (kx taps) via zero column + static slice: the zero column *is*
    # the 1-pixel W border, so no mask/roll is needed.  Done in bf16.
    zcol = jnp.zeros((B, H, 1, P), jnp.bfloat16)
    lft = jnp.concatenate([zcol, h1b[:, :, :W - 1, :]], axis=2)    # in[w-1] (kx=0)
    rgt = jnp.concatenate([h1b[:, :, 1:, :], zcol], axis=2)        # in[w+1] (kx=2)
    cat3 = jnp.concatenate([lft, h1b, rgt], axis=-1)               # (B, H, W, 3P)

    # Pad along H inside the persistent VMEM scratch: only the two border row
    # slabs are zeroed, the interior is one store of cat3.
    zrow = jnp.zeros((B, 1, W, 3 * P), jnp.bfloat16)
    pad_ref[:, 0:1] = zrow
    pad_ref[:, H + 1:H + 2] = zrow
    pad_ref[:, 1:H + 1] = cat3

    # 3 accumulated MXU matmuls with K = 3P (one per ky tap).  ky taps are
    # tile-aligned leading-axis slices of the scratch.
    w2_all = w2_ref[...]                                            # (3, 3P, P)
    acc = jnp.zeros((BHW, P), jnp.float32)
    for ky in range(3):
        slab = pad_ref[:, ky:ky + H].reshape(BHW, 3 * P)
        acc = acc + jnp.dot(slab, w2_all[ky],
                            preferred_element_type=jnp.float32)
    h2 = jnp.maximum(acc * s2_ref[...] + b2_ref[...], 0.0)          # (BHW, P) f32

    # ---- conv3 (1x1) + bn3 ----
    h3 = jnp.dot(h2.astype(jnp.bfloat16), w3_ref[...],
                 preferred_element_type=jnp.float32)
    h3 = h3 * s3_ref[...] + b3_ref[...]                             # (BHW, 4P) f32

    # ---- residual add (f32) + relu, lane-dense bf16 store ----
    res = x_ref[...].reshape(BHW, Cin).astype(jnp.float32)
    out = jnp.maximum(h3 + res, 0.0)
    o_ref[...] = out.reshape(B, H, W, Cin).astype(o_ref.dtype)


def _pick_batch_block(N, H, W, Cin, P, budget_bytes=20 << 20):
    """Largest divisor of N whose per-step VMEM footprint fits the budget.

    The budget is deliberately conservative so the same choice is safe on
    v7x (64 MiB physical VMEM) as well as v5e/v6e (128 MiB).
    """
    per_image = H * W * (
        2 * 2 * Cin * 2        # x + out blocks, bf16, double-buffered
        + 4 * P                # h1 (f32)
        + 2 * 3 * P            # cat3 taps (bf16)
        + 4 * P                # conv2 accumulator (f32)
        + 4 * 4 * P            # h3 (f32)
    ) + (H + 2) * W * 3 * P * 2  # padded conv2 scratch (bf16)
    for cand in range(N, 0, -1):
        if N % cand == 0 and cand * per_image <= budget_bytes:
            return cand
    return 1


def bottleneck_forward(x, w1, w2, w3, s1, b1, s2, b2, s3, b3, *,
                       batch_block=None):
    """x: (N, H, W, Cin) float32/bf16; returns (N, H, W, Cin) bf16."""
    N, H, W, Cin = x.shape
    P = w1.shape[1]
    Cout = w3.shape[1]
    assert Cin == 4 * P and Cout == Cin, \
        "residual add requires inplanes == planes * expansion (= 4 * planes)"
    # NOTE: W % 8 == 0 and lane-dense channel counts keep every in-kernel
    # reshape / slice layout-free (no retiling copies).  Other W values are
    # still correct, just slower.

    B = batch_block if batch_block is not None else _pick_batch_block(N, H, W, Cin, P)
    assert N % B == 0

    # bf16 activations + weights for the MXU; 3x3 weight reshaped once so that
    # row index = kx * P + cin (matches the in-kernel kx-concatenated taps).
    xb = x.astype(jnp.bfloat16)
    w1b = w1.astype(jnp.bfloat16)
    w2b = w2.reshape(3, 3 * P, P).astype(jnp.bfloat16)
    w3b = w3.astype(jnp.bfloat16)

    def full(shape):  # whole-array block, constant index map (stays resident)
        return pl.BlockSpec(shape, lambda n, _s=shape: (0,) * len(_s))

    flops = 2 * N * H * W * (Cin * P + 9 * P * P + P * Cout)
    bytes_accessed = (
        (xb.size + N * H * W * Cout) * 2                       # bf16 activations
        + (w1b.size + w2b.size + w3b.size) * 2                 # bf16 weights
        + sum(int(a.size) for a in (s1, b1, s2, b2, s3, b3)) * 4)

    return pl.pallas_call(
        _bottleneck_kernel,
        out_shape=jax.ShapeDtypeStruct((N, H, W, Cout), jnp.bfloat16),
        grid=(N // B,),
        in_specs=[
            pl.BlockSpec((B, H, W, Cin), lambda n: (n, 0, 0, 0)),  # x
            full((Cin, P)),                                        # w1
            full((3, 3 * P, P)),                                   # w2
            full((P, Cout)),                                       # w3
            full((1, P)), full((1, P)),                            # bn1
            full((1, P)), full((1, P)),                            # bn2
            full((1, Cout)), full((1, Cout)),                      # bn3
        ],
        out_specs=pl.BlockSpec((B, H, W, Cout), lambda n: (n, 0, 0, 0)),
        scratch_shapes=[pltpu.VMEM((B, H + 2, W, 3 * P), jnp.bfloat16)],
        compiler_params=pltpu.CompilerParams(
            dimension_semantics=("parallel",),
            # 48 MiB: above the per-step footprint chosen by _pick_batch_block,
            # below v7x's 64 MiB physical VMEM (v5e/v6e have 128 MiB headroom).
            vmem_limit_bytes=48 * 1024 * 1024),
        cost_estimate=pl.CostEstimate(flops=flops, transcendentals=0,
                                      bytes_accessed=bytes_accessed),
    )(xb, w1b, w2b, w3b, s1, b1, s2, b2, s3, b3)


def _fold_bn(gamma, beta, mean, var, eps=1e-5):
    scale = gamma / jnp.sqrt(var + eps)
    bias = beta - mean * scale
    return scale.reshape(1, -1), bias.reshape(1, -1)


def _reference(x, w1, w2, w3, s1, b1, s2, b2, s3, b3):
    """Pure-JAX reference mirroring the kernel's bf16 activation/operand precision."""
    dn = ('NHWC', 'HWIO', 'NHWC')
    xb = x.astype(jnp.bfloat16)

    def conv(a, w):
        return lax.conv_general_dilated(
            a.astype(jnp.bfloat16), w.astype(jnp.bfloat16), (1, 1), 'SAME',
            dimension_numbers=dn, preferred_element_type=jnp.float32)

    def bn(h, s, b):
        return h * s.reshape(1, 1, 1, -1) + b.reshape(1, 1, 1, -1)

    h = jnp.maximum(bn(conv(xb, w1.reshape(1, 1, *w1.shape)), s1, b1), 0.0)
    h = jnp.maximum(bn(conv(h, w2), s2, b2), 0.0)
    h = bn(conv(h, w3.reshape(1, 1, *w3.shape)), s3, b3)
    out = jnp.maximum(h + xb.astype(jnp.float32), 0.0)
    return out.astype(jnp.bfloat16)


if __name__ == "__main__":
    # Small but lane-dense shapes: planes=32 -> inplanes = 4*planes = 128
    # (residual/output channel dim is a full 128-lane vreg width).
    N, H, W = 2, 16, 16
    planes = 32
    inplanes = planes * 4

    key = jax.random.PRNGKey(0)
    keys = jax.random.split(key, 8)

    x = jax.random.normal(keys[0], (N, H, W, inplanes), jnp.float32)
    w1 = jax.random.normal(keys[1], (inplanes, planes), jnp.float32) * 0.1
    w2 = jax.random.normal(keys[2], (3, 3, planes, planes), jnp.float32) * 0.1
    w3 = jax.random.normal(keys[3], (planes, planes * 4), jnp.float32) * 0.1

    def bn_params(k, c):
        k1, k2, k3, k4 = jax.random.split(k, 4)
        gamma = 1.0 + 0.1 * jax.random.normal(k1, (c,), jnp.float32)
        beta = 0.1 * jax.random.normal(k2, (c,), jnp.float32)
        mean = 0.1 * jax.random.normal(k3, (c,), jnp.float32)
        var = 1.0 + 0.1 * jax.random.uniform(k4, (c,), jnp.float32)
        return _fold_bn(gamma, beta, mean, var)

    s1, b1 = bn_params(keys[4], planes)
    s2, b2 = bn_params(keys[5], planes)
    s3, b3 = bn_params(keys[6], planes * 4)

    out = jax.block_until_ready(
        bottleneck_forward(x, w1, w2, w3, s1, b1, s2, b2, s3, b3))
    assert out.shape == (N, H, W, inplanes)

    ref = _reference(x, w1, w2, w3, s1, b1, s2, b2, s3, b3)
    out_f = out.astype(jnp.float32)
    ref_f = ref.astype(jnp.float32)
    err = jnp.max(jnp.abs(out_f - ref_f))
    assert jnp.allclose(out_f, ref_f, atol=3e-2, rtol=3e-2), f"max abs err {err}"

    print("KERNEL_OK")
</pallas_src>

<mosaic_0001>
module attributes {stable_mosaic.version = 11 : i64} {
  func.func @_bottleneck_kernel(%arg0: i32, %arg1: memref<2x16x16x128xbf16, #tpu.memory_space<vmem>>, %arg2: memref<128x32xbf16, #tpu.memory_space<vmem>>, %arg3: memref<3x96x32xbf16, #tpu.memory_space<vmem>>, %arg4: memref<32x128xbf16, #tpu.memory_space<vmem>>, %arg5: memref<1x32xf32, #tpu.memory_space<vmem>>, %arg6: memref<1x32xf32, #tpu.memory_space<vmem>>, %arg7: memref<1x32xf32, #tpu.memory_space<vmem>>, %arg8: memref<1x32xf32, #tpu.memory_space<vmem>>, %arg9: memref<1x128xf32, #tpu.memory_space<vmem>>, %arg10: memref<1x128xf32, #tpu.memory_space<vmem>>, %arg11: memref<2x16x16x128xbf16, #tpu.memory_space<vmem>>, %arg12: memref<2x18x16x96xbf16, #tpu.memory_space<vmem>>) attributes {dimension_semantics = [#tpu.dimension_semantics<parallel>], iteration_bounds = array<i64: 1>, scalar_prefetch = 0 : i64, scratch_operands = 1 : i64, tpu.core_type = #tpu.core_type<tc>, window_params = [{transform_indices = @transform_0, window_bounds = array<i64: 2, 16, 16, 128>}, {pipeline_mode = #tpu.pipeline_mode<synchronous>, transform_indices = @transform_1, window_bounds = array<i64: 128, 32>}, {pipeline_mode = #tpu.pipeline_mode<synchronous>, transform_indices = @transform_2, window_bounds = array<i64: 3, 96, 32>}, {pipeline_mode = #tpu.pipeline_mode<synchronous>, transform_indices = @transform_3, window_bounds = array<i64: 32, 128>}, {pipeline_mode = #tpu.pipeline_mode<synchronous>, transform_indices = @transform_4, window_bounds = array<i64: 1, 32>}, {pipeline_mode = #tpu.pipeline_mode<synchronous>, transform_indices = @transform_5, window_bounds = array<i64: 1, 32>}, {pipeline_mode = #tpu.pipeline_mode<synchronous>, transform_indices = @transform_6, window_bounds = array<i64: 1, 32>}, {pipeline_mode = #tpu.pipeline_mode<synchronous>, transform_indices = @transform_7, window_bounds = array<i64: 1, 32>}, {pipeline_mode = #tpu.pipeline_mode<synchronous>, transform_indices = @transform_8, window_bounds = array<i64: 1, 128>}, {pipeline_mode = #tpu.pipeline_mode<synchronous>, transform_indices = @transform_9, window_bounds = array<i64: 1, 128>}, {transform_indices = @transform_10, window_bounds = array<i64: 2, 16, 16, 128>}]} {
    %c0 = arith.constant 0 : index
    %c0_0 = arith.constant 0 : index
    %c0_1 = arith.constant 0 : index
    %c0_2 = arith.constant 0 : index
    %0 = vector.load %arg1[%c0, %c0_0, %c0_1, %c0_2] : memref<2x16x16x128xbf16, #tpu.memory_space<vmem>>, vector<2x16x16x128xbf16>
    %1 = vector.shape_cast %0 : vector<2x16x16x128xbf16> to vector<512x128xbf16>
    %c0_3 = arith.constant 0 : index
    %c0_4 = arith.constant 0 : index
    %2 = vector.load %arg2[%c0_3, %c0_4] : memref<128x32xbf16, #tpu.memory_space<vmem>>, vector<128x32xbf16>
    %cst = arith.constant dense<0.000000e+00> : vector<512x32xf32>
    %3 = tpu.matmul %1, %2, %cst {dimension_numbers = #tpu.dot_dimension_numbers<[1], [0], [0], [1], [0, 0, 1, 1], [], []>} : vector<512x128xbf16>, vector<128x32xbf16>, vector<512x32xf32> -> vector<512x32xf32>
    %c0_5 = arith.constant 0 : index
    %c0_6 = arith.constant 0 : index
    %4 = vector.load %arg5[%c0_5, %c0_6] : memref<1x32xf32, #tpu.memory_space<vmem>>, vector<1x32xf32>
    %5 = vector.broadcast %4 : vector<1x32xf32> to vector<512x32xf32>
    %6 = arith.mulf %3, %5 : vector<512x32xf32>
    %c0_7 = arith.constant 0 : index
    %c0_8 = arith.constant 0 : index
    %7 = vector.load %arg6[%c0_7, %c0_8] : memref<1x32xf32, #tpu.memory_space<vmem>>, vector<1x32xf32>
    %8 = vector.broadcast %7 : vector<1x32xf32> to vector<512x32xf32>
    %9 = arith.addf %6, %8 : vector<512x32xf32>
    %cst_9 = arith.constant 0.000000e+00 : f32
    %10 = vector.broadcast %cst_9 : f32 to vector<512x32xf32>
    %11 = arith.maximumf %9, %10 : vector<512x32xf32>
    %12 = arith.truncf %11 : vector<512x32xf32> to vector<512x32xbf16>
    %13 = vector.shape_cast %12 : vector<512x32xbf16> to vector<2x16x16x32xbf16>
    %cst_10 = arith.constant 0.000000e+00 : bf16
    %14 = vector.broadcast %cst_10 : bf16 to vector<2x16x1x32xbf16>
    %15 = vector.extract_strided_slice %13 {offsets = [0, 0, 0, 0], sizes = [2, 16, 15, 32], strides = [1, 1, 1, 1]} : vector<2x16x16x32xbf16> to vector<2x16x15x32xbf16>
    %16 = tpu.concatenate %14, %15 in 2 : vector<2x16x1x32xbf16>, vector<2x16x15x32xbf16> -> vector<2x16x16x32xbf16>
    %17 = vector.extract_strided_slice %13 {offsets = [0, 0, 1, 0], sizes = [2, 16, 15, 32], strides = [1, 1, 1, 1]} : vector<2x16x16x32xbf16> to vector<2x16x15x32xbf16>
    %18 = tpu.concatenate %17, %14 in 2 : vector<2x16x15x32xbf16>, vector<2x16x1x32xbf16> -> vector<2x16x16x32xbf16>
    %19 = tpu.concatenate %16, %13, %18 in 3 : vector<2x16x16x32xbf16>, vector<2x16x16x32xbf16>, vector<2x16x16x32xbf16> -> vector<2x16x16x96xbf16>
    %cst_11 = arith.constant 0.000000e+00 : bf16
    %20 = vector.broadcast %cst_11 : bf16 to vector<2x1x16x96xbf16>
    %c0_12 = arith.constant 0 : index
    %c0_13 = arith.constant 0 : index
    %c0_14 = arith.constant 0 : index
    %c0_15 = arith.constant 0 : index
    %21 = vector.load %arg12[%c0_12, %c0_13, %c0_14, %c0_15] : memref<2x18x16x96xbf16, #tpu.memory_space<vmem>>, vector<2x1x16x96xbf16>
    tpu.vector_store %arg12[%c0_12, %c0_13, %c0_14, %c0_15], %20 {strides = array<i32>} : memref<2x18x16x96xbf16, #tpu.memory_space<vmem>>, vector<2x1x16x96xbf16>,
    %c0_16 = arith.constant 0 : index
    %c17 = arith.constant 17 : index
    %c0_17 = arith.constant 0 : index
    %c0_18 = arith.constant 0 : index
    %22 = vector.load %arg12[%c0_16, %c17, %c0_17, %c0_18] : memref<2x18x16x96xbf16, #tpu.memory_space<vmem>>, vector<2x1x16x96xbf16>
    tpu.vector_store %arg12[%c0_16, %c17, %c0_17, %c0_18], %20 {strides = array<i32>} : memref<2x18x16x96xbf16, #tpu.memory_space<vmem>>, vector<2x1x16x96xbf16>,
    %c0_19 = arith.constant 0 : index
    %c1 = arith.constant 1 : index
    %c0_20 = arith.constant 0 : index
    %c0_21 = arith.constant 0 : index
    %23 = vector.load %arg12[%c0_19, %c1, %c0_20, %c0_21] : memref<2x18x16x96xbf16, #tpu.memory_space<vmem>>, vector<2x16x16x96xbf16>
    tpu.vector_store %arg12[%c0_19, %c1, %c0_20, %c0_21], %19 {strides = array<i32>} : memref<2x18x16x96xbf16, #tpu.memory_space<vmem>>, vector<2x16x16x96xbf16>,
    %c0_22 = arith.constant 0 : index
    %c0_23 = arith.constant 0 : index
    %c0_24 = arith.constant 0 : index
    %24 = vector.load %arg3[%c0_22, %c0_23, %c0_24] : memref<3x96x32xbf16, #tpu.memory_space<vmem>>, vector<3x96x32xbf16>
    %cst_25 = arith.constant 0.000000e+00 : f32
    %25 = vector.broadcast %cst_25 : f32 to vector<512x32xf32>
    %c0_26 = arith.constant 0 : index
    %c0_27 = arith.constant 0 : index
    %c0_28 = arith.constant 0 : index
    %c0_29 = arith.constant 0 : index
    %26 = vector.load %arg12[%c0_26, %c0_27, %c0_28, %c0_29] : memref<2x18x16x96xbf16, #tpu.memory_space<vmem>>, vector<2x16x16x96xbf16>
    %27 = vector.shape_cast %26 : vector<2x16x16x96xbf16> to vector<512x96xbf16>
    %28 = vector.extract_strided_slice %24 {offsets = [0, 0, 0], sizes = [1, 96, 32], strides = [1, 1, 1]} : vector<3x96x32xbf16> to vector<1x96x32xbf16>
    %29 = vector.shape_cast %28 : vector<1x96x32xbf16> to vector<96x32xbf16>
    %cst_30 = arith.constant dense<0.000000e+00> : vector<512x32xf32>
    %30 = tpu.matmul %27, %29, %cst_30 {dimension_numbers = #tpu.dot_dimension_numbers<[1], [0], [0], [1], [0, 0, 1, 1], [], []>} : vector<512x96xbf16>, vector<96x32xbf16>, vector<512x32xf32> -> vector<512x32xf32>
    %31 = arith.addf %25, %30 : vector<512x32xf32>
    %c0_31 = arith.constant 0 : index
    %c1_32 = arith.constant 1 : index
    %c0_33 = arith.constant 0 : index
    %c0_34 = arith.constant 0 : index
    %32 = vector.load %arg12[%c0_31, %c1_32, %c0_33, %c0_34] : memref<2x18x16x96xbf16, #tpu.memory_space<vmem>>, vector<2x16x16x96xbf16>
    %33 = vector.shape_cast %32 : vector<2x16x16x96xbf16> to vector<512x96xbf16>
    %34 = vector.extract_strided_slice %24 {offsets = [1, 0, 0], sizes = [1, 96, 32], strides = [1, 1, 1]} : vector<3x96x32xbf16> to vector<1x96x32xbf16>
    %35 = vector.shape_cast %34 : vector<1x96x32xbf16> to vector<96x32xbf16>
    %cst_35 = arith.constant dense<0.000000e+00> : vector<512x32xf32>
    %36 = tpu.matmul %33, %35, %cst_35 {dimension_numbers = #tpu.dot_dimension_numbers<[1], [0], [0], [1], [0, 0, 1, 1], [], []>} : vector<512x96xbf16>, vector<96x32xbf16>, vector<512x32xf32> -> vector<512x32xf32>
    %37 = arith.addf %31, %36 : vector<512x32xf32>
    %c0_36 = arith.constant 0 : index
    %c2 = arith.constant 2 : index
    %c0_37 = arith.constant 0 : index
    %c0_38 = arith.constant 0 : index
    %38 = vector.load %arg12[%c0_36, %c2, %c0_37, %c0_38] : memref<2x18x16x96xbf16, #tpu.memory_space<vmem>>, vector<2x16x16x96xbf16>
    %39 = vector.shape_cast %38 : vector<2x16x16x96xbf16> to vector<512x96xbf16>
    %40 = vector.extract_strided_slice %24 {offsets = [2, 0, 0], sizes = [1, 96, 32], strides = [1, 1, 1]} : vector<3x96x32xbf16> to vector<1x96x32xbf16>
    %41 = vector.shape_cast %40 : vector<1x96x32xbf16> to vector<96x32xbf16>
    %cst_39 = arith.constant dense<0.000000e+00> : vector<512x32xf32>
    %42 = tpu.matmul %39, %41, %cst_39 {dimension_numbers = #tpu.dot_dimension_numbers<[1], [0], [0], [1], [0, 0, 1, 1], [], []>} : vector<512x96xbf16>, vector<96x32xbf16>, vector<512x32xf32> -> vector<512x32xf32>
    %43 = arith.addf %37, %42 : vector<512x32xf32>
    %c0_40 = arith.constant 0 : index
    %c0_41 = arith.constant 0 : index
    %44 = vector.load %arg7[%c0_40, %c0_41] : memref<1x32xf32, #tpu.memory_space<vmem>>, vector<1x32xf32>
    %45 = vector.broadcast %44 : vector<1x32xf32> to vector<512x32xf32>
    %46 = arith.mulf %43, %45 : vector<512x32xf32>
    %c0_42 = arith.constant 0 : index
    %c0_43 = arith.constant 0 : index
    %47 = vector.load %arg8[%c0_42, %c0_43] : memref<1x32xf32, #tpu.memory_space<vmem>>, vector<1x32xf32>
    %48 = vector.broadcast %47 : vector<1x32xf32> to vector<512x32xf32>
    %49 = arith.addf %46, %48 : vector<512x32xf32>
    %cst_44 = arith.constant 0.000000e+00 : f32
    %50 = vector.broadcast %cst_44 : f32 to vector<512x32xf32>
    %51 = arith.maximumf %49, %50 : vector<512x32xf32>
    %52 = arith.truncf %51 : vector<512x32xf32> to vector<512x32xbf16>
    %c0_45 = arith.constant 0 : index
    %c0_46 = arith.constant 0 : index
    %53 = vector.load %arg4[%c0_45, %c0_46] : memref<32x128xbf16, #tpu.memory_space<vmem>>, vector<32x128xbf16>
    %cst_47 = arith.constant dense<0.000000e+00> : vector<512x128xf32>
    %54 = tpu.matmul %52, %53, %cst_47 {dimension_numbers = #tpu.dot_dimension_numbers<[1], [0], [0], [1], [0, 0, 1, 1], [], []>} : vector<512x32xbf16>, vector<32x128xbf16>, vector<512x128xf32> -> vector<512x128xf32>
    %c0_48 = arith.constant 0 : index
    %c0_49 = arith.constant 0 : index
    %55 = vector.load %arg9[%c0_48, %c0_49] : memref<1x128xf32, #tpu.memory_space<vmem>>, vector<1x128xf32>
    %56 = vector.broadcast %55 : vector<1x128xf32> to vector<512x128xf32>
    %57 = arith.mulf %54, %56 : vector<512x128xf32>
    %c0_50 = arith.constant 0 : index
    %c0_51 = arith.constant 0 : index
    %58 = vector.load %arg10[%c0_50, %c0_51] : memref<1x128xf32, #tpu.memory_space<vmem>>, vector<1x128xf32>
    %59 = vector.broadcast %58 : vector<1x128xf32> to vector<512x128xf32>
    %60 = arith.addf %57, %59 : vector<512x128xf32>
    %c0_52 = arith.constant 0 : index
    %c0_53 = arith.constant 0 : index
    %c0_54 = arith.constant 0 : index
    %c0_55 = arith.constant 0 : index
    %61 = vector.load %arg1[%c0_52, %c0_53, %c0_54, %c0_55] : memref<2x16x16x128xbf16, #tpu.memory_space<vmem>>, vector<2x16x16x128xbf16>
    %62 = vector.shape_cast %61 : vector<2x16x16x128xbf16> to vector<512x128xbf16>
    %63 = arith.extf %62 : vector<512x128xbf16> to vector<512x128xf32>
    %64 = arith.addf %60, %63 : vector<512x128xf32>
    %cst_56 = arith.constant 0.000000e+00 : f32
    %65 = vector.broadcast %cst_56 : f32 to vector<512x128xf32>
    %66 = arith.maximumf %64, %65 : vector<512x128xf32>
    %67 = vector.shape_cast %66 : vector<512x128xf32> to vector<2x16x16x128xf32>
    %68 = arith.truncf %67 : vector<2x16x16x128xf32> to vector<2x16x16x128xbf16>
    %c0_57 = arith.constant 0 : index
    %c0_58 = arith.constant 0 : index
    %c0_59 = arith.constant 0 : index
    %c0_60 = arith.constant 0 : index
    %69 = vector.load %arg11[%c0_57, %c0_58, %c0_59, %c0_60] : memref<2x16x16x128xbf16, #tpu.memory_space<vmem>>, vector<2x16x16x128xbf16>
    tpu.vector_store %arg11[%c0_57, %c0_58, %c0_59, %c0_60], %68 {strides = array<i32>} : memref<2x16x16x128xbf16, #tpu.memory_space<vmem>>, vector<2x16x16x128xbf16>,
    return
  }
  func.func @transform_0(%arg0: i32) -> (i32, i32, i32, i32) {
    %c0_i32 = arith.constant 0 : i32
    %c0_i32_0 = arith.constant 0 : i32
    %c0_i32_1 = arith.constant 0 : i32
    %c0_i32_2 = arith.constant 0 : i32
    return %arg0, %c0_i32, %c0_i32_0, %c0_i32_1 : i32, i32, i32, i32
  }
  func.func @transform_1(%arg0: i32) -> (i32, i32) {
    %c0_i32 = arith.constant 0 : i32
    %c0_i32_0 = arith.constant 0 : i32
    %c0_i32_1 = arith.constant 0 : i32
    return %c0_i32, %c0_i32_0 : i32, i32
  }
  func.func @transform_2(%arg0: i32) -> (i32, i32, i32) {
    %c0_i32 = arith.constant 0 : i32
    %c0_i32_0 = arith.constant 0 : i32
    %c0_i32_1 = arith.constant 0 : i32
    %c0_i32_2 = arith.constant 0 : i32
    return %c0_i32, %c0_i32_0, %c0_i32_1 : i32, i32, i32
  }
  func.func @transform_3(%arg0: i32) -> (i32, i32) {
    %c0_i32 = arith.constant 0 : i32
    %c0_i32_0 = arith.constant 0 : i32
    %c0_i32_1 = arith.constant 0 : i32
    return %c0_i32, %c0_i32_0 : i32, i32
  }
  func.func @transform_4(%arg0: i32) -> (i32, i32) {
    %c0_i32 = arith.constant 0 : i32
    %c0_i32_0 = arith.constant 0 : i32
    %c0_i32_1 = arith.constant 0 : i32
    return %c0_i32, %c0_i32_0 : i32, i32
  }
  func.func @transform_5(%arg0: i32) -> (i32, i32) {
    %c0_i32 = arith.constant 0 : i32
    %c0_i32_0 = arith.constant 0 : i32
    %c0_i32_1 = arith.constant 0 : i32
    return %c0_i32, %c0_i32_0 : i32, i32
  }
  func.func @transform_6(%arg0: i32) -> (i32, i32) {
    %c0_i32 = arith.constant 0 : i32
    %c0_i32_0 = arith.constant 0 : i32
    %c0_i32_1 = arith.constant 0 : i32
    return %c0_i32, %c0_i32_0 : i32, i32
  }
  func.func @transform_7(%arg0: i32) -> (i32, i32) {
    %c0_i32 = arith.constant 0 : i32
    %c0_i32_0 = arith.constant 0 : i32
    %c0_i32_1 = arith.constant 0 : i32
    return %c0_i32, %c0_i32_0 : i32, i32
  }
  func.func @transform_8(%arg0: i32) -> (i32, i32) {
    %c0_i32 = arith.constant 0 : i32
    %c0_i32_0 = arith.constant 0 : i32
    %c0_i32_1 = arith.constant 0 : i32
    return %c0_i32, %c0_i32_0 : i32, i32
  }
  func.func @transform_9(%arg0: i32) -> (i32, i32) {
    %c0_i32 = arith.constant 0 : i32
    %c0_i32_0 = arith.constant 0 : i32
    %c0_i32_1 = arith.constant 0 : i32
    return %c0_i32, %c0_i32_0 : i32, i32
  }
  func.func @transform_10(%arg0: i32) -> (i32, i32, i32, i32) {
    %c0_i32 = arith.constant 0 : i32
    %c0_i32_0 = arith.constant 0 : i32
    %c0_i32_1 = arith.constant 0 : i32
    %c0_i32_2 = arith.constant 0 : i32
    return %arg0, %c0_i32, %c0_i32_0, %c0_i32_1 : i32, i32, i32, i32
  }
}

</mosaic_0001>

<bundles_post_ra>
// kernel: tpu_custom_call.1
= control target key start
LH: loop header
LB: loop body
LE: loop exit
PB: predicated region body
PF: predicated region fallthrough
CT: control target
= control target key end

     0   :  { %s8715_s0 = inlined_call_operand.vmem [shape: bf16[2,16,16,128], index: 0, kind: input, shape index: {}]   ;;  %s8716_s1 = inlined_call_operand.vmem [shape: bf16[128,32], index: 1, kind: input, shape index: {}]   ;;  %s8717_s2 = inlined_call_operand.vmem [shape: bf16[3,96,32], index: 2, kind: input, shape index: {}]   ;;  %s8718_s3 = inlined_call_operand.vmem [shape: bf16[32,128], index: 3, kind: input, shape index: {}]   ;;  %s8719_s4 = inlined_call_operand.vmem [shape: f32[1,32], index: 4, kind: input, shape index: {}]   ;;  %s8720_s5 = inlined_call_operand.vmem [shape: f32[1,32], index: 5, kind: input, shape index: {}]   ;;  %s8721_s6 = inlined_call_operand.vmem [shape: f32[1,32], index: 6, kind: input, shape index: {}]   ;;  %s8722_s7 = inlined_call_operand.vmem [shape: f32[1,32], index: 7, kind: input, shape index: {}]   ;;  %s8723_s8 = inlined_call_operand.vmem [shape: f32[1,128], index: 8, kind: input, shape index: {}]   ;;  %s8724_s9 = inlined_call_operand.vmem [shape: f32[1,128], index: 9, kind: input, shape index: {}]   ;;  %s8725_s10 = inlined_call_operand.hbm [shape: bf16[2,16,16,128], index: 10, kind: output, shape index: {}]  }
   0x1   :  { %v6782_v0 = vld [vmem:[%s8716_s1 + $0x38] sm:$0xff]   ;;  %v6783_v1 = vld [vmem:[%s8716_s1 + $0x30] sm:$0xff]   ;;  %v6784_v2 = vld [vmem:[%s8716_s1 + $0x28] sm:$0xff]  }
   0x2   :  { %6389 = vmatprep.subr.bf16.mxu0 %v6782_v0  ;;  %v6785_v3 = vld [vmem:[%s8716_s1 + $0x20] sm:$0xff]   ;;  %v6786_v5 = vld [vmem:[%s8716_s1 + $0x18] sm:$0xff]   ;;  %v6787_v6 = vld [vmem:[%s8716_s1 + $0x10] sm:$0xff]  }
   0x3   :  { %6390 = vmatpush3.bf16.msra.mxu0 %v6782_v0  ;;  %v6790_v4 = vld [vmem:[%s8715_s0] sm:$0xff]   ;;  %v6788_v7 = vld [vmem:[%s8716_s1 + $0x8] sm:$0xff]   ;;  %v6792_v10 = vld [vmem:[%s8715_s0 + $0x10] sm:$0xff]  }
   0x4   :  { %6391 = vmatprep.subr.bf16.mxu0 %v6783_v1  ;;  %6405 = vmatprep.mubr.bf16.mxu0 %v6790_v4  ;;  %v6789_v8 = vld [vmem:[%s8716_s1] sm:$0xff]   ;;  %v6791_v9 = vld [vmem:[%s8715_s0 + $0x8] sm:$0xff]   ;;  %v6793_v11 = vld [vmem:[%s8715_s0 + $0x18] sm:$0xff]  }
   0x5   :  { %v6794_v12 = vld [vmem:[%s8715_s0 + $0x20] sm:$0xff]   ;;  %v6795_v13 = vld [vmem:[%s8715_s0 + $0x28] sm:$0xff]   ;;  %v6796_v14 = vld [vmem:[%s8715_s0 + $0x30] sm:$0xff]  }
   0x7   :  { %6392 = vmatpush3.bf16.msra.mxu0 %v6783_v1 }
   0x8   :  { %6393 = vmatprep.subr.bf16.mxu0 %v6784_v2 }
   0xb   :  { %6394 = vmatpush3.bf16.msra.mxu0 %v6784_v2 }
   0xc   :  { %6395 = vmatprep.subr.bf16.mxu0 %v6785_v3 }
   0xf   :  { %6396 = vmatpush3.bf16.msra.mxu0 %v6785_v3 }
  0x10   :  { %6397 = vmatprep.subr.bf16.mxu0 %v6786_v5 }
  0x13   :  { %6398 = vmatpush3.bf16.msra.mxu0 %v6786_v5 }
  0x14   :  { %6399 = vmatprep.subr.bf16.mxu0 %v6787_v6 }
  0x17   :  { %6400 = vmatpush3.bf16.msra.mxu0 %v6787_v6 }
  0x18   :  { %6401 = vmatprep.subr.bf16.mxu0 %v6788_v7 }
  0x1b   :  { %6402 = vmatpush3.bf16.msra.mxu0 %v6788_v7 }
  0x1c   :  { %6403 = vmatprep.subr.bf16.mxu0 %v6789_v8 }
  0x1f   :  { %6404 = vmatpush3.bf16.msra.mxu0 %v6789_v8 }
  0x22   :  { %6406 = vmatmul.mubr.bf16.vlgmr.msra.gmra.mxu0 %v6791_v9 }
  0x23   :  { %6409 = vmatprep.mubr.bf16.mxu0 %v6792_v10 }
  0x2a   :  { %6410 = vmatmul.mubr.bf16.gmra.mxu0 %v6793_v11 }
  0x2b   :  { %6413 = vmatprep.mubr.bf16.mxu0 %v6794_v12 }
  0x32   :  { %6414 = vmatmul.mubr.bf16.gmra.mxu0 %v6795_v13 }
  0x33   :  { %6417 = vmatprep.mubr.bf16.mxu0 %v6796_v14 }
  0x34   :  { %15 = vsyncpa [#allocation4], 0  ;;  %v6797_v15 = vld [vmem:[%s8715_s0 + $0x38] sm:$0xff]   ;;  %v6798_v16 = vld [vmem:[%s8715_s0 + $0x40] sm:$0xff]   ;;  %s6962_s21 = smov 32   ;;  %vm1271_vm0 = vcmask 1047552  }
  0x35   :  { %v6799_v17 = vld [vmem:[%s8715_s0 + $0x48] sm:$0xff]   ;;  %v6800_v18 = vld [vmem:[%s8715_s0 + $0x50] sm:$0xff]   ;;  %v6801_v19 = vld [vmem:[%s8715_s0 + $0x58] sm:$0xff]   ;;  %vm1272_vm1 = vsmask.f32 7424  ;;  %s6963_s26 = smov 64  }
  0x36   :  { %v6802_v20 = vld [vmem:[%s8715_s0 + $0x60] sm:$0xff]   ;;  %v6803_v21 = vld [vmem:[%s8715_s0 + $0x68] sm:$0xff]   ;;  %v6804_v22 = vld [vmem:[%s8715_s0 + $0x70] sm:$0xff]   ;;  %vm1140_vm3 = vcmask 1040384   ;;  %vm1141_vm4 = vsmask.f32 256 }
  0x37   :  { %v6805_v23 = vld [vmem:[%s8715_s0 + $0x78] sm:$0xff]   ;;  %v6806_v24 = vld [vmem:[%s8715_s0 + $0x80] sm:$0xff]   ;;  %v6807_v25 = vld [vmem:[%s8715_s0 + $0x88] sm:$0xff]   ;;  %vm1498_vm6 = vcmask 261120   ;;  %vm1595_vm7 = vcmask 523264   ;;  %vm1660_vm8 = vcmask 781312  }
  0x38   :  { %v6808_v26 = vld [vmem:[%s8715_s0 + $0x90] sm:$0xff]   ;;  %v6809_v27 = vld [vmem:[%s8715_s0 + $0x98] sm:$0xff]   ;;  %v6810_v28 = vld [vmem:[%s8715_s0 + $0xa0] sm:$0xff]   ;;  %vm2319_vm9 = vcmask 785408  }
  0x39   :  { %v6811_v29 = vld [vmem:[%s8715_s0 + $0xa8] sm:$0xff]   ;;  %v6812_v30 = vld [vmem:[%s8715_s0 + $0xb0] sm:$0xff]   ;;  %v6813_v31 = vld [vmem:[%s8715_s0 + $0xb8] sm:$0xff]  }
  0x3a   :  { %6418 = vmatmul.mubr.bf16.gmra.mxu0 %v6797_v15  ;;  %v6814_v32 = vld [vmem:[%s8715_s0 + $0xc0] sm:$0xff]   ;;  %v6815_v33 = vld [vmem:[%s8715_s0 + $0xc8] sm:$0xff]   ;;  %v6816_v34 = vld [vmem:[%s8715_s0 + $0xd0] sm:$0xff]  }
  0x3b   :  { %6421 = vmatprep.mubr.bf16.mxu0 %v6798_v16  ;;  %v6817_v35 = vld [vmem:[%s8715_s0 + $0xd8] sm:$0xff]   ;;  %v6818_v36 = vld [vmem:[%s8715_s0 + $0xe0] sm:$0xff]   ;;  %v6819_v37 = vld [vmem:[%s8715_s0 + $0xe8] sm:$0xff]  }
  0x3c   :  { %v6820_v38 = vld [vmem:[%s8715_s0 + $0xf0] sm:$0xff]   ;;  %v6821_v39 = vld [vmem:[%s8715_s0 + $0xf8] sm:$0xff]   ;;  %v7148_v41 = vld [vmem:[%s8719_s4] ss:$0 sm:$0xff] }
  0x3d   :  { %v6822_v40 = vld [vmem:[%s8717_s2 + $0x58] sm:$0xff]   ;;  %v6823_v44 = vld [vmem:[%s8717_s2 + $0x50] sm:$0xff]   ;;  %v7157_v45 = vld [vmem:[%s8720_s5] ss:$0 sm:$0xff] }
  0x3e   :  { %6469 = vmatprep.subr.bf16.mxu0 %v6822_v40  ;;  %6765 = vmatprep.subr.bf16.mxu1 %v6822_v40  ;;  %v6824_v51 = vld [vmem:[%s8717_s2 + $0x48] sm:$0xff]   ;;  %v6825_v61 = vld [vmem:[%s8717_s2 + $0x40] sm:$0xff]   ;;  %v6826_v7 = vld [vmem:[%s8717_s2 + $0x38] sm:$0xff]  }
  0x3f   :  { %6470 = vmatpush3.bf16.msra.mxu0 %v6822_v40  ;;  %6771 = vmatpush3.bf16.msra.mxu1 %v6822_v40  ;;  %vm7188_vm2 = vmand %vm1271_vm0, %vm1272_vm1 }
  0x40   :  { %6471 = vmatprep.subr.bf16.mxu0 %v6823_v44  ;;  %6766 = vmatprep.subr.bf16.mxu1 %v6823_v44  ;;  %vm7625_vm5 = vmand %vm1140_vm3, %vm1141_vm4 }
  0x42   :  { %6422 = vmatmul.mubr.bf16.gmra.mxu0 %v6799_v17 }
  0x43   :  { %6425 = vmatprep.mubr.bf16.mxu0 %v6800_v18  ;;  %6472 = vmatpush3.bf16.msra.mxu0 %v6823_v44 }
  0x44   :  { %6772 = vmatpush3.bf16.msra.mxu1 %v6823_v44  ;;  %6473 = vmatprep.subr.bf16.mxu0 %v6824_v51 }
  0x45   :  { %6767 = vmatprep.subr.bf16.mxu1 %v6824_v51 }
  0x47   :  { %6474 = vmatpush3.bf16.msra.mxu0 %v6824_v51 }
  0x48   :  { %6773 = vmatpush3.bf16.msra.mxu1 %v6824_v51  ;;  %6475 = vmatprep.subr.bf16.mxu0 %v6825_v61 }
  0x49   :  { %6768 = vmatprep.subr.bf16.mxu1 %v6825_v61 }
  0x4a   :  { %6426 = vmatmul.mubr.bf16.gmra.mxu0 %v6801_v19 }
  0x4b   :  { %6429 = vmatprep.mubr.bf16.mxu0 %v6802_v20  ;;  %6476 = vmatpush3.bf16.msra.mxu0 %v6825_v61 }
  0x4c   :  { %6774 = vmatpush3.bf16.msra.mxu1 %v6825_v61  ;;  %6477 = vmatprep.subr.bf16.mxu0 %v6826_v7 }
  0x4d   :  { %6769 = vmatprep.subr.bf16.mxu1 %v6826_v7 }
  0x4f   :  { %6478 = vmatpush3.bf16.msra.mxu0 %v6826_v7 }
  0x50   :  { %6775 = vmatpush3.bf16.msra.mxu1 %v6826_v7 }
  0x52   :  { %6430 = vmatmul.mubr.bf16.gmra.mxu0 %v6803_v21 }
  0x53   :  { %6433 = vmatprep.mubr.bf16.mxu0 %v6804_v22 }
  0x5a   :  { %6434 = vmatmul.mubr.bf16.gmra.mxu0 %v6805_v23 }
  0x5b   :  { %6437 = vmatprep.mubr.bf16.mxu0 %v6806_v24 }
  0x62   :  { %6438 = vmatmul.mubr.bf16.gmra.mxu0 %v6807_v25  ;;  %v6827_v25 = vld [vmem:[%s8717_s2 + $0x30] sm:$0xff]  }
  0x63   :  { %6441 = vmatprep.mubr.bf16.mxu0 %v6808_v26  ;;  %6479 = vmatprep.subr.bf16.mxu0 %v6827_v25 }
  0x64   :  { %6770 = vmatprep.subr.bf16.mxu1 %v6827_v25  ;;  %6480 = vmatpush3.bf16.msra.mxu0 %v6827_v25 }
  0x65   :  { %6776 = vmatpush3.bf16.msra.mxu1 %v6827_v25 }
  0x6a   :  { %6442 = vmatmul.mubr.bf16.gmra.mxu0 %v6809_v27 }
  0x6b   :  { %6445 = vmatprep.mubr.bf16.mxu0 %v6810_v28 }
  0x72   :  { %6446 = vmatmul.mubr.bf16.gmra.mxu0 %v6811_v29 }
  0x73   :  { %6449 = vmatprep.mubr.bf16.mxu0 %v6812_v30 }
  0x7a   :  { %6450 = vmatmul.mubr.bf16.gmra.mxu0 %v6813_v31 }
  0x7b   :  { %6453 = vmatprep.mubr.bf16.mxu0 %v6814_v32 }
  0x82   :  { %6454 = vmatmul.mubr.bf16.gmra.mxu0 %v6815_v33 }
  0x83   :  { %6457 = vmatprep.mubr.bf16.mxu0 %v6816_v34 }
  0x8a   :  { %6458 = vmatmul.mubr.bf16.gmra.mxu0 %v6817_v35 }
  0x8b   :  { %6461 = vmatprep.mubr.bf16.mxu0 %v6818_v36 }
  0x92   :  { %6462 = vmatmul.mubr.bf16.gmra.mxu0 %v6819_v37 }
  0x93   :  { %6465 = vmatprep.mubr.bf16.mxu0 %v6820_v38 }
  0x9a   :  { %6466 = vmatmul.mubr.bf16.gmra.mxu0 %v6821_v39 }
  0xe2   :  { %v6407_v42 = vpop.f32.mrf.mxu0 }
  0xe3   :  { %v655_v43 = vmul.f32 %v6407_v42, %v7148_v41 }
  0xe4   :  { %v391_v46 = vpop.f32.mrf.mxu0 }
  0xe5   :  { %v653_v47 = vmul.f32 %v7148_v41, %v391_v46  ;;  %v726_v49 = vadd.f32 %v7157_v45, %v655_v43 }
  0xe6   :  { %v6408_v48 = vpop.f32.mrf.mxu0 }
  0xe7   :  { %v656_v50 = vmul.f32 %v6408_v48, %v7148_v41  ;;  %v724_v53 = vadd.f32 %v7157_v45, %v653_v47  ;;  %v790_v57 = vmax.f32 %v726_v49, 0.0 }
  0xe8   :  { %v394_v52 = vpop.f32.mrf.mxu0 }
  0xe9   :  { %v727_v54 = vadd.f32 %v7157_v45, %v656_v50  ;;  %v654_v55 = vmul.f32 %v7148_v41, %v394_v52  ;;  %v788_v63 = vmax.f32 %v724_v53, 0.0 }
  0xea   :  { %v6411_v56 = vpop.f32.mrf.mxu0 }
  0xeb   :  { %v791_v58 = vmax.f32 %v727_v54, 0.0  ;;  %v725_v59 = vadd.f32 %v7157_v45, %v654_v55  ;;  %v659_v60 = vmul.f32 %v6411_v56, %v7148_v41 }
  0xec   :  { %v407_v62 = vpop.f32.mrf.mxu0 }
  0xed   :  { %v789_v0 = vmax.f32 %v725_v59, 0.0  ;;  %v657_v1 = vmul.f32 %v7148_v41, %v407_v62  ;;  %v853_v2 = vpack.c.bf16 %v791_v58, %v790_v57  ;;  %v730_v3 = vadd.f32 %v7157_v45, %v659_v60 }
  0xee   :  { %v6412_v4 = vpop.f32.mrf.mxu0 }
  0xef   :  { %v660_v5 = vmul.f32 %v6412_v4, %v7148_v41  ;;  %1340 = vrot.lane.b32.xlu1 %v853_v2, %s6962_s21  ;;  %v852_v6 = vpack.c.bf16 %v789_v0, %v788_v63  ;;  %v892_v9 = vshrl.u32 %v853_v2, 16  ;;  %v895_v10 = vshll.u32 %v853_v2, 16 }
  0xf0   :  { %v410_v8 = vpop.f32.mrf.mxu0  ;;  %v728_v11 = vadd.f32 %v7157_v45, %v657_v1  ;;  %v794_v15 = vmax.f32 %v730_v3, 0.0 }
  0xf1   :  { %v731_v12 = vadd.f32 %v7157_v45, %v660_v5  ;;  %v658_v13 = vmul.f32 %v7148_v41, %v410_v8  ;;  %v885_v14 = vshrl.u32 %v852_v6, 16  ;;  %v894_v17 = vrot.slane %v892_v9, 7 }
  0xf2   :  { %v6415_v16 = vpop.f32.mrf.mxu0  ;;  %v1177_v18 = vrot.slane %v895_v10, 1  ;;  %v888_v19 = vshll.u32 %v852_v6, 16  ;;  %v792_v30 = vmax.f32 %v728_v11, 0.0 }
  0xf3   :  { %v795_v20 = vmax.f32 %v731_v12, 0.0  ;;  %v729_v21 = vadd.f32 %v7157_v45, %v658_v13  ;;  %v663_v22 = vmul.f32 %v6415_v16, %v7148_v41  ;;  %1338 = vrot.lane.b32.xlu1 %v852_v6, %s6962_s21  ;;  %v887_v24 = vrot.slane %v885_v14, 7 }
  0xf4   :  { %v423_v26 = vpop.f32.mrf.mxu0  ;;  %v1178_v27 = vor.u32 %v1177_v18, %v892_v9  ;;  %v1175_v28 = vrot.slane %v888_v19, 1  ;;  %v7195_v29 = vor.u32 %v895_v10, %v894_v17 }
  0xf5   :  { %v793_v31 = vmax.f32 %v729_v21, 0.0  ;;  %v661_v32 = vmul.f32 %v7148_v41, %v423_v26  ;;  %v855_v33 = vpack.c.bf16 %v795_v20, %v794_v15  ;;  %v734_v34 = vadd.f32 %v7157_v45, %v663_v22 }
  0xf6   :  { %v6416_v35 = vpop.f32.mrf.mxu0  ;;  %v1275_v36 = vsel %vm7188_vm2, %v1178_v27, 0  ;;  %v1176_v37 = vor.u32 %v1175_v28, %v885_v14  ;;  %v7201_v38 = vor.u32 %v888_v19, %v887_v24 }
  0xf7   :  { %v664_v39 = vmul.f32 %v6416_v35, %v7148_v41  ;;  %1436 = vrot.lane.b32.xlu1 %v1275_v36, %s6963_s26  ;;  %v854_v40 = vpack.c.bf16 %v793_v31, %v792_v30  ;;  %v906_v44 = vshrl.u32 %v855_v33, 16  ;;  %v909_v46 = vshll.u32 %v855_v33, 16 }
  0xf8   :  { %v1274_v42 = vsel %vm7188_vm2, %v1176_v37, 0  ;;  %v426_v43 = vpop.f32.mrf.mxu0  ;;  %v732_v47 = vadd.f32 %v7157_v45, %v661_v32  ;;  %v798_v51 = vmax.f32 %v734_v34, 0.0 }
  0xf9   :  { %v735_v48 = vadd.f32 %v7157_v45, %v664_v39  ;;  %1434 = vrot.lane.b32.xlu0 %v1274_v42, %s6963_s26  ;;  %v662_v49 = vmul.f32 %v7148_v41, %v426_v43  ;;  %v899_v50 = vshrl.u32 %v854_v40, 16  ;;  %v902_v53 = vshll.u32 %v854_v40, 16 }
  0xfa   :  { %v6419_v52 = vpop.f32.mrf.mxu0  ;;  %v908_v54 = vrot.slane %v906_v44, 7  ;;  %v1181_v55 = vrot.slane %v909_v46, 1  ;;  %v796_v63 = vmax.f32 %v732_v47, 0.0 }
  0xfb   :  { %v799_v56 = vmax.f32 %v735_v48, 0.0  ;;  %v733_v57 = vadd.f32 %v7157_v45, %v662_v49  ;;  %v667_v58 = vmul.f32 %v6419_v52, %v7148_v41  ;;  %1344 = vrot.lane.b32.xlu1 %v855_v33, %s6962_s21  ;;  %v901_v59 = vrot.slane %v899_v50, 7 }
  0xfc   :  { %v439_v60 = vpop.f32.mrf.mxu0  ;;  %v1179_v61 = vrot.slane %v902_v53, 1  ;;  %v7214_v62 = vor.u32 %v909_v46, %v908_v54  ;;  %v1182_v6 = vor.u32 %v1181_v55, %v906_v44 }
  0xfd   :  { %v797_v0 = vmax.f32 %v733_v57, 0.0  ;;  %v665_v1 = vmul.f32 %v7148_v41, %v439_v60  ;;  %v857_v2 = vpack.c.bf16 %v799_v56, %v798_v51  ;;  %v738_v3 = vadd.f32 %v7157_v45, %v667_v58 }
  0xfe   :  { %v6420_v4 = vpop.f32.mrf.mxu0  ;;  %v1180_v5 = vor.u32 %v1179_v61, %v899_v50  ;;  %v7218_v7 = vor.u32 %v902_v53, %v901_v59  ;;  %v1277_v20 = vsel %vm7188_vm2, %v1182_v6, 0 }
  0xff   :  { %v856_v8 = vpack.c.bf16 %v797_v0, %v796_v63  ;;  %v668_v9 = vmul.f32 %v6420_v4, %v7148_v41  ;;  %1342 = vrot.lane.b32.xlu1 %v854_v40, %s6962_s21  ;;  %v920_v12 = vshrl.u32 %v857_v2, 16  ;;  %v923_v13 = vshll.u32 %v857_v2, 16 }
 0x100   :  { %v1276_v10 = vsel %vm7188_vm2, %v1180_v5, 0  ;;  %v442_v11 = vpop.f32.mrf.mxu0  ;;  %v736_v14 = vadd.f32 %v7157_v45, %v665_v1  ;;  %v802_v18 = vmax.f32 %v738_v3, 0.0 }
 0x101   :  { %v739_v15 = vadd.f32 %v7157_v45, %v668_v9  ;;  %1438 = vrot.lane.b32.xlu0 %v1276_v10, %s6963_s26  ;;  %v666_v16 = vmul.f32 %v7148_v41, %v442_v11  ;;  %v913_v17 = vshrl.u32 %v856_v8, 16  ;;  %v916_v21 = vshll.u32 %v856_v8, 16 }
 0x102   :  { %v6423_v19 = vpop.f32.mrf.mxu0  ;;  %v922_v22 = vrot.slane %v920_v12, 7  ;;  %v1185_v31 = vrot.slane %v923_v13, 1  ;;  %v800_v33 = vmax.f32 %v736_v14, 0.0 }
 0x103   :  { %v803_v24 = vmax.f32 %v739_v15, 0.0  ;;  %v737_v25 = vadd.f32 %v7157_v45, %v666_v16  ;;  %v671_v26 = vmul.f32 %v6423_v19, %v7148_v41  ;;  %1440 = vrot.lane.b32.xlu1 %v1277_v20, %s6963_s26  ;;  %v915_v27 = vrot.slane %v913_v17, 7 }
 0x104   :  { %v455_v28 = vpop.f32.mrf.mxu0  ;;  %v1183_v30 = vrot.slane %v916_v21, 1  ;;  %v7233_v32 = vor.u32 %v923_v13, %v922_v22  ;;  %v1186_v48 = vor.u32 %v1185_v31, %v920_v12 }
 0x105   :  { %v801_v34 = vmax.f32 %v737_v25, 0.0  ;;  %v669_v35 = vmul.f32 %v7148_v41, %v455_v28  ;;  %v7236_v36 = vpack.c.bf16 %v803_v24, %v802_v18  ;;  %v742_v37 = vadd.f32 %v7157_v45, %v671_v26 }
 0x106   :  { %v6424_v39 = vpop.f32.mrf.mxu0  ;;  %v1184_v40 = vor.u32 %v1183_v30, %v913_v17  ;;  %v7239_v42 = vor.u32 %v916_v21, %v915_v27  ;;  %v1279_v11 = vsel %vm7188_vm2, %v1186_v48, 0 }
 0x107   :  { %v7241_v43 = vpack.c.bf16 %v801_v34, %v800_v33  ;;  %v672_v44 = vmul.f32 %v6424_v39, %v7148_v41  ;;  %1348 = vrot.lane.b32.xlu1 %v857_v2, %s6962_s21  ;;  %v934_v49 = vshrl.u32 %v7236_v36, 16  ;;  %v740_v50 = vadd.f32 %v7157_v45, %v669_v35 }
 0x108   :  { %v1278_v46 = vsel %vm7188_vm2, %v1184_v40, 0  ;;  %v458_v47 = vpop.f32.mrf.mxu0  ;;  %v806_v54 = vmax.f32 %v742_v37, 0.0  ;;  %v937_v58 = vshll.u32 %v7236_v36, 16 }
 0x109   :  { %v743_v51 = vadd.f32 %v7157_v45, %v672_v44  ;;  %1442 = vrot.lane.b32.xlu0 %v1278_v46, %s6963_s26  ;;  %v670_v52 = vmul.f32 %v7148_v41, %v458_v47  ;;  %v927_v53 = vshrl.u32 %v7241_v43, 16  ;;  %v930_v56 = vshll.u32 %v7241_v43, 16 }
 0x10a   :  { %v6427_v55 = vpop.f32.mrf.mxu0  ;;  %v936_v57 = vrot.slane %v934_v49, 7  ;;  %v804_v3 = vmax.f32 %v740_v50, 0.0  ;;  %v1189_v25 = vrot.slane %v937_v58, 1 }
 0x10b   :  { %v807_v59 = vmax.f32 %v743_v51, 0.0  ;;  %v741_v60 = vadd.f32 %v7157_v45, %v670_v52  ;;  %v675_v61 = vmul.f32 %v6427_v55, %v7148_v41  ;;  %1346 = vrot.lane.b32.xlu1 %v856_v8, %s6962_s21  ;;  %v929_v63 = vrot.slane %v927_v53, 7 }
 0x10c   :  { %v471_v0 = vpop.f32.mrf.mxu0  ;;  %v1187_v1 = vrot.slane %v930_v56, 1  ;;  %v7258_v2 = vor.u32 %v937_v58, %v936_v57 }
 0x10d   :  { %v805_v4 = vmax.f32 %v741_v60, 0.0  ;;  %v673_v5 = vmul.f32 %v7148_v41, %v471_v0  ;;  %v7261_v6 = vpack.c.bf16 %v807_v59, %v806_v54  ;;  %v746_v9 = vadd.f32 %v7157_v45, %v675_v61 }
 0x10e   :  { %v6428_v10 = vpop.f32.mrf.mxu0  ;;  %v1188_v12 = vor.u32 %v1187_v1, %v927_v53  ;;  %v7266_v13 = vor.u32 %v930_v56, %v929_v63 }
 0x10f   :  { %v7268_v8 = vpack.c.bf16 %v805_v4, %v804_v3  ;;  %v676_v14 = vmul.f32 %v6428_v10, %v7148_v41  ;;  %1444 = vrot.lane.b32.xlu1 %v1279_v11, %s6963_s26  ;;  %v948_v17 = vshrl.u32 %v7261_v6, 16  ;;  %v744_v18 = vadd.f32 %v7157_v45, %v673_v5 }
 0x110   :  { %v1280_v15 = vsel %vm7188_vm2, %v1188_v12, 0  ;;  %v474_v16 = vpop.f32.mrf.mxu0  ;;  %v810_v22 = vmax.f32 %v746_v9, 0.0  ;;  %v951_v27 = vshll.u32 %v7261_v6, 16 }
 0x111   :  { %v747_v19 = vadd.f32 %v7157_v45, %v676_v14  ;;  %1446 = vrot.lane.b32.xlu0 %v1280_v15, %s6963_s26  ;;  %v674_v20 = vmul.f32 %v7148_v41, %v474_v16  ;;  %v941_v21 = vshrl.u32 %v7268_v8, 16  ;;  %v950_v26 = vrot.slane %v948_v17, 7 }
 0x112   :  { %v6431_v24 = vpop.f32.mrf.mxu0  ;;  %v944_v35 = vshll.u32 %v7268_v8, 16  ;;  %v808_v39 = vmax.f32 %v744_v18, 0.0 }
 0x113   :  { %v811_v28 = vmax.f32 %v747_v19, 0.0  ;;  %v745_v30 = vadd.f32 %v7157_v45, %v674_v20  ;;  %v679_v31 = vmul.f32 %v6431_v24, %v7148_v41  ;;  %1352 = vrot.lane.b32.xlu1 %v7236_v36, %s6962_s21  ;;  %v943_v33 = vrot.slane %v941_v21, 7 }
 0x114   :  { %v487_v34 = vpop.f32.mrf.mxu0  ;;  %v7292_v37 = vor.u32 %v951_v27, %v950_v26  ;;  %v1190_v36 = vor.u32 %v1189_v25, %v934_v49 }
 0x115   :  { %v809_v40 = vmax.f32 %v745_v30, 0.0  ;;  %v677_v44 = vmul.f32 %v7148_v41, %v487_v34  ;;  %v7295_v46 = vpack.c.bf16 %v811_v28, %v810_v22  ;;  %v750_v47 = vadd.f32 %v7157_v45, %v679_v31 }
 0x116   :  { %v6432_v48 = vpop.f32.mrf.mxu0  ;;  %v7300_v50 = vor.u32 %v944_v35, %v943_v33  ;;  %v1281_v60 = vsel %vm7188_vm2, %v1190_v36, 0 }
 0x117   :  { %v7302_v51 = vpack.c.bf16 %v809_v40, %v808_v39  ;;  %v680_v52 = vmul.f32 %v6432_v48, %v7148_v41  ;;  %1350 = vrot.lane.b32.xlu1 %v7241_v43, %s6962_s21  ;;  %v962_v54 = vshrl.u32 %v7295_v46, 16  ;;  %v748_v55 = vadd.f32 %v7157_v45, %v677_v44 }
 0x118   :  { %v490_v53 = vpop.f32.mrf.mxu0  ;;  %v814_v58 = vmax.f32 %v750_v47, 0.0  ;;  %v965_v43 = vshll.u32 %v7295_v46, 16 }
 0x119   :  { %v751_v56 = vadd.f32 %v7157_v45, %v680_v52  ;;  %v678_v49 = vmul.f32 %v7148_v41, %v490_v53  ;;  %v955_v57 = vshrl.u32 %v7302_v51, 16  ;;  %v964_v61 = vrot.slane %v962_v54, 7 }
 0x11a   :  { %v6435_v59 = vpop.f32.mrf.mxu0  ;;  %v958_v5 = vshll.u32 %v7302_v51, 16  ;;  %v812_v10 = vmax.f32 %v748_v55, 0.0 }
 0x11b   :  { %v815_v63 = vmax.f32 %v751_v56, 0.0  ;;  %v749_v0 = vadd.f32 %v7157_v45, %v678_v49  ;;  %v683_v1 = vmul.f32 %v6435_v59, %v7148_v41  ;;  %1448 = vrot.lane.b32.xlu1 %v1281_v60, %s6963_s26  ;;  %v957_v3 = vrot.slane %v955_v57, 7 }
 0x11c   :  { %v503_v4 = vpop.f32.mrf.mxu0  ;;  %v7325_v9 = vor.u32 %v965_v43, %v964_v61 }
 0x11d   :  { %v813_v11 = vmax.f32 %v749_v0, 0.0  ;;  %v681_v12 = vmul.f32 %v7148_v41, %v503_v4  ;;  %v7328_v14 = vpack.c.bf16 %v815_v63, %v814_v58  ;;  %v754_v15 = vadd.f32 %v7157_v45, %v683_v1 }
 0x11e   :  { %v6436_v16 = vpop.f32.mrf.mxu0  ;;  %v7333_v18 = vor.u32 %v958_v5, %v957_v3 }
 0x11f   :  { %v684_v19 = vmul.f32 %v6436_v16, %v7148_v41  ;;  %v7336_v20 = vpack.c.bf16 %v813_v11, %v812_v10  ;;  %v8728_v24 = vshrl.u32 %v7328_v14, 16  ;;  %v752_v25 = vadd.f32 %v7157_v45, %v681_v12 }
 0x120   :  { %v506_v22 = vpop.f32.mrf.mxu0  ;;  %v818_v31 = vmax.f32 %v754_v15, 0.0  ;;  %v8730_v39 = vshll.u32 %v7328_v14, 16  ;;  %v1191_v15 = vrot.slane %v944_v35, 1 }
 0x121   :  { %v755_v26 = vadd.f32 %v7157_v45, %v684_v19  ;;  %v682_v28 = vmul.f32 %v7148_v41, %v506_v22  ;;  %v8726_v30 = vshrl.u32 %v7336_v20, 16  ;;  %v978_v34 = vrot.slane %v8728_v24, 7 }
 0x122   :  { %v6439_v33 = vpop.f32.mrf.mxu0  ;;  %v8727_v52 = vshll.u32 %v7336_v20, 16  ;;  %v816_v55 = vmax.f32 %v752_v25, 0.0 }
 0x123   :  { %v819_v40 = vmax.f32 %v755_v26, 0.0  ;;  %v753_v44 = vadd.f32 %v7157_v45, %v682_v28  ;;  %v687_v47 = vmul.f32 %v6439_v33, %v7148_v41  ;;  %v971_v48 = vrot.slane %v8726_v30, 7 }
 0x124   :  { %v519_v36 = vpop.f32.mrf.mxu0  ;;  %v7353_v53 = vor.u32 %v8730_v39, %v978_v34 }
 0x125   :  { %v817_v56 = vmax.f32 %v753_v44, 0.0  ;;  %v685_v49 = vmul.f32 %v7148_v41, %v519_v36  ;;  %v867_v58 = vpack.c.bf16 %v819_v40, %v818_v31  ;;  %v758_v59 = vadd.f32 %v7157_v45, %v687_v47 }
 0x126   :  { %v6440_v60 = vpop.f32.mrf.mxu0  ;;  %v7359_v61 = vor.u32 %v8727_v52, %v971_v48 }
 0x127   :  { %v688_v63 = vmul.f32 %v6440_v60, %v7148_v41  ;;  %1368 = vrot.lane.b32.xlu0 %v867_v58, %s6962_s21  ;;  %v866_v0 = vpack.c.bf16 %v817_v56, %v816_v55  ;;  %v756_v1 = vadd.f32 %v7157_v45, %v685_v49  ;;  %v990_v4 = vshrl.u32 %v867_v58, 16 }
 0x128   :  { %v522_v3 = vpop.f32.mrf.mxu0  ;;  %v993_v10 = vshll.u32 %v867_v58, 16  ;;  %v822_v19 = vmax.f32 %v758_v59, 0.0  ;;  %v1192_v60 = vor.u32 %v1191_v15, %v941_v21 }
 0x129   :  { %v759_v11 = vadd.f32 %v7157_v45, %v688_v63  ;;  %v686_v12 = vmul.f32 %v7148_v41, %v522_v3  ;;  %v983_v16 = vshrl.u32 %v866_v0, 16  ;;  %v992_v26 = vrot.slane %v990_v4, 7 }
 0x12a   :  { %v6443_v22 = vpop.f32.mrf.mxu0  ;;  %v1205_v25 = vrot.slane %v993_v10, 1  ;;  %v986_v28 = vshll.u32 %v866_v0, 16  ;;  %v820_v44 = vmax.f32 %v756_v1, 0.0 }
 0x12b   :  { %v823_v31 = vmax.f32 %v759_v11, 0.0  ;;  %v757_v33 = vadd.f32 %v7157_v45, %v686_v12  ;;  %v691_v34 = vmul.f32 %v6443_v22, %v7148_v41  ;;  %1366 = vrot.lane.b32.xlu0 %v866_v0, %s6962_s21  ;;  %v985_v40 = vrot.slane %v983_v16, 7 }
 0x12c   :  { %v535_v47 = vpop.f32.mrf.mxu0  ;;  %v1206_v48 = vor.u32 %v1205_v25, %v990_v4  ;;  %v7371_v36 = vor.u32 %v993_v10, %v992_v26  ;;  %v1203_v63 = vrot.slane %v986_v28, 1  ;;  %v1282_v26 = vsel %vm7188_vm2, %v1192_v60, 0 }
 0x12d   :  { %v821_v35 = vmax.f32 %v757_v33, 0.0  ;;  %v762_v55 = vadd.f32 %v7157_v45, %v691_v34  ;;  %v689_v56 = vmul.f32 %v7148_v41, %v535_v47  ;;  %v869_v49 = vpack.c.bf16 %v823_v31, %v822_v19 }
 0x12e   :  { %v1289_v58 = vsel %vm7188_vm2, %v1206_v48, 0  ;;  %v6444_v59 = vpop.f32.mrf.mxu0  ;;  %v7379_v0 = vor.u32 %v986_v28, %v985_v40  ;;  %v1204_v28 = vor.u32 %v1203_v63, %v983_v16 }
 0x12f   :  { %1464 = vrot.lane.b32.xlu1 %v1289_v58, %s6963_s26  ;;  %v692_v1 = vmul.f32 %v6444_v59, %v7148_v41  ;;  %v868_v3 = vpack.c.bf16 %v821_v35, %v820_v44  ;;  %v760_v4 = vadd.f32 %v7157_v45, %v689_v56  ;;  %v1004_v11 = vshrl.u32 %v869_v49, 16 }
 0x130   :  { %v538_v10 = vpop.f32.mrf.mxu0  ;;  %v1007_v12 = vshll.u32 %v869_v49, 16  ;;  %v826_v19 = vmax.f32 %v762_v55, 0.0 }
 0x131   :  { %v763_v22 = vadd.f32 %v7157_v45, %v692_v1  ;;  %v690_v25 = vmul.f32 %v7148_v41, %v538_v10  ;;  %1370 = vrot.lane.b32.xlu0 %v868_v3, %s6962_s21  ;;  %v997_v21 = vshrl.u32 %v868_v3, 16  ;;  %v1000_v31 = vshll.u32 %v868_v3, 16 }
 0x132   :  { %v6447_v15 = vpop.f32.mrf.mxu0  ;;  %v1006_v33 = vrot.slane %v1004_v11, 7  ;;  %v824_v48 = vmax.f32 %v760_v4, 0.0  ;;  %v1209_v56 = vrot.slane %v1007_v12, 1 }
 0x133   :  { %v827_v34 = vmax.f32 %v763_v22, 0.0  ;;  %v761_v40 = vadd.f32 %v7157_v45, %v690_v25  ;;  %1372 = vrot.lane.b32.xlu1 %v869_v49, %s6962_s21  ;;  %v695_v44 = vmul.f32 %v6447_v15, %v7148_v41  ;;  %v999_v47 = vrot.slane %v997_v21, 7 }
 0x134   :  { %v551_v35 = vpop.f32.mrf.mxu0  ;;  %v1207_v55 = vrot.slane %v1000_v31, 1  ;;  %v7392_v58 = vor.u32 %v1007_v12, %v1006_v33  ;;  %v1288_v49 = vsel %vm7188_vm2, %v1204_v28, 0  ;;  %v1210_v15 = vor.u32 %v1209_v56, %v1004_v11 }
 0x135   :  { %v7394_v59 = vpack.c.bf16 %v827_v34, %v826_v19  ;;  %v825_v60 = vmax.f32 %v761_v40, 0.0  ;;  %v766_v16 = vadd.f32 %v7157_v45, %v695_v44  ;;  %v693_v63 = vmul.f32 %v7148_v41, %v551_v35  ;;  %1450 = vrot.lane.b32.xlu0 %v1282_v26, %s6963_s26 }
 0x136   :  { %v6448_v1 = vpop.f32.mrf.mxu0  ;;  %v1208_v3 = vor.u32 %v1207_v55, %v997_v21  ;;  %v7401_v4 = vor.u32 %v1000_v31, %v999_v47 }
 0x137   :  { %v764_v10 = vadd.f32 %v7157_v45, %v693_v63  ;;  %1462 = vrot.lane.b32.xlu1 %v1288_v49, %s6963_s26  ;;  %v696_v12 = vmul.f32 %v6448_v1, %v7148_v41  ;;  %v870_v19 = vpack.c.bf16 %v825_v60, %v824_v48  ;;  %v1018_v26 = vshrl.u32 %v7394_v59, 16 }
 0x138   :  { %v554_v22 = vpop.f32.mrf.mxu0  ;;  %v1290_v25 = vsel %vm7188_vm2, %v1208_v3, 0  ;;  %v1021_v28 = vshll.u32 %v7394_v59, 16  ;;  %v830_v33 = vmax.f32 %v766_v16, 0.0 }
 0x139   :  { %v767_v21 = vadd.f32 %v7157_v45, %v696_v12  ;;  %v694_v31 = vmul.f32 %v7148_v41, %v554_v22  ;;  %1466 = vrot.lane.b32.xlu0 %v1290_v25, %s6963_s26  ;;  %v1011_v34 = vshrl.u32 %v870_v19, 16  ;;  %v828_v40 = vmax.f32 %v764_v10, 0.0 }
 0x13a   :  { %v1020_v44 = vrot.slane %v1018_v26, 7  ;;  %v1213_v47 = vrot.slane %v1021_v28, 1  ;;  %v6451_v48 = vpop.f32.mrf.mxu0  ;;  %v1014_v35 = vshll.u32 %v870_v19, 16 }
 0x13b   :  { %v831_v55 = vmax.f32 %v767_v21, 0.0  ;;  %v765_v11 = vadd.f32 %v7157_v45, %v694_v31  ;;  %1354 = vrot.lane.b32.xlu1 %v7268_v8, %s6962_s21  ;;  %v699_v56 = vmul.f32 %v6451_v48, %v7148_v41  ;;  %v1013_v60 = vrot.slane %v1011_v34, 7 }
 0x13c   :  { %v1214_v16 = vor.u32 %v1213_v47, %v1018_v26  ;;  %v567_v63 = vpop.f32.mrf.mxu0  ;;  %v1211_v49 = vrot.slane %v1014_v35, 1  ;;  %v7417_v1 = vor.u32 %v1021_v28, %v1020_v44  ;;  %v1291_v8 = vsel %vm7188_vm2, %v1210_v15, 0 }
 0x13d   :  { %v7419_v3 = vpack.c.bf16 %v831_v55, %v830_v33  ;;  %v829_v10 = vmax.f32 %v765_v11, 0.0  ;;  %1374 = vrot.lane.b32.xlu0 %v870_v19, %s6962_s21  ;;  %v770_v12 = vadd.f32 %v7157_v45, %v699_v56  ;;  %v697_v22 = vmul.f32 %v7148_v41, %v567_v63 }
 0x13e   :  { %v6452_v25 = vpop.f32.mrf.mxu0  ;;  %v1193_v26 = vrot.slane %v951_v27, 1  ;;  %v7428_v21 = vor.u32 %v1014_v35, %v1013_v60  ;;  %v1293_v31 = vsel %vm7188_vm2, %v1214_v16, 0  ;;  %v1212_v44 = vor.u32 %v1211_v49, %v1011_v34 }
 0x13f   :  { %1468 = vrot.lane.b32.xlu1 %v1291_v8, %s6963_s26  ;;  %v768_v28 = vadd.f32 %v7157_v45, %v697_v22  ;;  %v700_v33 = vmul.f32 %v6452_v25, %v7148_v41  ;;  %v7433_v19 = vpack.c.bf16 %v829_v10, %v828_v40  ;;  %v1032_v15 = vshrl.u32 %v7419_v3, 16 }
 0x140   :  { %v570_v47 = vpop.f32.mrf.mxu0  ;;  %v1035_v48 = vshll.u32 %v7419_v3, 16  ;;  %v834_v27 = vmax.f32 %v770_v12, 0.0  ;;  %v1194_v56 = vor.u32 %v1193_v26, %v948_v17  ;;  %v1292_v12 = vsel %vm7188_vm2, %v1212_v44, 0 }
 0x141   :  { %1472 = vrot.lane.b32.xlu0 %v1293_v31, %s6963_s26  ;;  %v771_v35 = vadd.f32 %v7157_v45, %v700_v33  ;;  %v698_v55 = vmul.f32 %v7148_v41, %v570_v47  ;;  %v1025_v11 = vshrl.u32 %v7433_v19, 16  ;;  %v832_v40 = vmax.f32 %v768_v28, 0.0 }
 0x142   :  { %v1034_v60 = vrot.slane %v1032_v15, 7  ;;  %v6455_v34 = vpop.f32.mrf.mxu0  ;;  %v1217_v22 = vrot.slane %v1035_v48, 1  ;;  %v1028_v17 = vshll.u32 %v7433_v19, 16  ;;  %v1195_v31 = vrot.slane %v958_v5, 1 }
 0x143   :  { %1356 = vrot.lane.b32.xlu1 %v7261_v6, %s6962_s21  ;;  %v835_v16 = vmax.f32 %v771_v35, 0.0  ;;  %v769_v63 = vadd.f32 %v7157_v45, %v698_v55  ;;  %v703_v49 = vmul.f32 %v6455_v34, %v7148_v41  ;;  %v1027_v10 = vrot.slane %v1025_v11, 7 }
 0x144   :  { %v583_v8 = vpop.f32.mrf.mxu0  ;;  %v7454_v25 = vor.u32 %v1035_v48, %v1034_v60  ;;  %v1283_v60 = vsel %vm7188_vm2, %v1194_v56, 0 }
 0x145   :  { %1470 = vrot.lane.b32.xlu0 %v1292_v12, %s6963_s26  ;;  %v833_v6 = vmax.f32 %v769_v63, 0.0  ;;  %v774_v26 = vadd.f32 %v7157_v45, %v703_v49  ;;  %v701_v28 = vmul.f32 %v7148_v41, %v583_v8  ;;  %v7459_v33 = vpack.c.bf16 %v835_v16, %v834_v27 }
 0x146   :  { %v6456_v47 = vpop.f32.mrf.mxu0  ;;  %v7463_v44 = vor.u32 %v1028_v17, %v1027_v10  ;;  %v1218_v27 = vor.u32 %v1217_v22, %v1032_v15 }
 0x147   :  { %1376 = vrot.lane.b32.xlu1 %v7394_v59, %s6962_s21  ;;  %v772_v48 = vadd.f32 %v7157_v45, %v701_v28  ;;  %v704_v35 = vmul.f32 %v6456_v47, %v7148_v41  ;;  %v7469_v55 = vpack.c.bf16 %v833_v6, %v832_v40  ;;  %v1046_v16 = vshrl.u32 %v7459_v33, 16 }
 0x148   :  { %v586_v34 = vpop.f32.mrf.mxu0  ;;  %v838_v5 = vmax.f32 %v774_v26, 0.0  ;;  %v1196_v40 = vor.u32 %v1195_v31, %v955_v57  ;;  %v1049_v56 = vshll.u32 %v7459_v33, 16  ;;  %v1295_v28 = vsel %vm7188_vm2, %v1218_v27, 0 }
 0x149   :  { %1378 = vrot.lane.b32.xlu0 %v7433_v19, %s6962_s21  ;;  %v775_v63 = vadd.f32 %v7157_v45, %v704_v35  ;;  %v702_v59 = vmul.f32 %v7148_v41, %v586_v34  ;;  %v1039_v49 = vshrl.u32 %v7469_v55, 16  ;;  %v836_v10 = vmax.f32 %v772_v48, 0.0 }
 0x14a   :  { %v6459_v12 = vpop.f32.mrf.mxu0  ;;  %v1048_v15 = vrot.slane %v1046_v16, 7  ;;  %v1215_v57 = vrot.slane %v1028_v17, 1  ;;  %v1042_v47 = vshll.u32 %v7469_v55, 16 }
 0x14b   :  { %1452 = vrot.lane.b32.xlu1 %v1283_v60, %s6963_s26  ;;  %v839_v22 = vmax.f32 %v775_v63, 0.0  ;;  %v773_v8 = vadd.f32 %v7157_v45, %v702_v59  ;;  %v707_v6 = vmul.f32 %v6459_v12, %v7148_v41  ;;  %v1041_v26 = vrot.slane %v1039_v49, 7 }
 0x14c   :  { %v599_v31 = vpop.f32.mrf.mxu0  ;;  %v7492_v48 = vor.u32 %v1049_v56, %v1048_v15 }
 0x14d   :  { %1476 = vrot.lane.b32.xlu0 %v1295_v28, %s6963_s26  ;;  %v837_v35 = vmax.f32 %v773_v8, 0.0  ;;  %v705_v60 = vmul.f32 %v7148_v41, %v599_v31  ;;  %v7496_v34 = vpack.c.bf16 %v839_v22, %v838_v5  ;;  %v778_v63 = vadd.f32 %v7157_v45, %v707_v6 }
 0x14e   :  { %v6460_v59 = vpop.f32.mrf.mxu0  ;;  %v7499_v12 = vor.u32 %v1042_v47, %v1041_v26  ;;  %v1284_v8 = vsel %vm7188_vm2, %v1196_v40, 0  ;;  %v1216_v5 = vor.u32 %v1215_v57, %v1025_v11 }
 0x14f   :  { %1380 = vrot.lane.b32.xlu1 %v7419_v3, %s6962_s21  ;;  %v776_v17 = vadd.f32 %v7157_v45, %v705_v60  ;;  %v708_v27 = vmul.f32 %v6460_v59, %v7148_v41  ;;  %v7505_v15 = vpack.c.bf16 %v837_v35, %v836_v10  ;;  %v1060_v6 = vshrl.u32 %v7496_v34, 16 }
 0x150   :  { %v602_v22 = vpop.f32.mrf.mxu0  ;;  %v842_v31 = vmax.f32 %v778_v63, 0.0  ;;  %v1063_v19 = vshll.u32 %v7496_v34, 16  ;;  %v7528_v63 = vld [vmem:[%s8717_s2 + $0x28] sm:$0xff]  }
 0x151   :  { %1454 = vrot.lane.b32.xlu0 %v1284_v8, %s6963_s26  ;;  %v779_v26 = vadd.f32 %v7157_v45, %v708_v27  ;;  %v706_v3 = vmul.f32 %v7148_v41, %v602_v22  ;;  %v1053_v28 = vshrl.u32 %v7505_v15, 16  ;;  %v840_v10 = vmax.f32 %v776_v17, 0.0  ;;  %6545 = vmatprep.subr.bf16.mxu1 %v7528_v63 }
 0x152   :  { %v6463_v35 = vpop.f32.mrf.mxu0  ;;  %v1062_v40 = vrot.slane %v1060_v6, 7  ;;  %v1294_v17 = vsel %vm7188_vm2, %v1216_v5, 0  ;;  %v1221_v27 = vrot.slane %v1049_v56, 1 }
 0x153   :  { %1358 = vrot.lane.b32.xlu1 %v7302_v51, %s6962_s21  ;;  %v843_v11 = vmax.f32 %v779_v26, 0.0  ;;  %v777_v57 = vadd.f32 %v7157_v45, %v706_v3  ;;  %v711_v60 = vmul.f32 %v6463_v35, %v7148_v41  ;;  %v1055_v59 = vrot.slane %v1053_v28, 7 }
 0x154   :  { %v615_v8 = vpop.f32.mrf.mxu0  ;;  %v1056_v51 = vshll.u32 %v7505_v15, 16  ;;  %v7535_v22 = vor.u32 %v1063_v19, %v1062_v40  ;;  %v1197_v3 = vrot.slane %v965_v43, 1 }
 0x155   :  { %1474 = vrot.lane.b32.xlu0 %v1294_v17, %s6963_s26  ;;  %v841_v26 = vmax.f32 %v777_v57, 0.0  ;;  %v709_v35 = vmul.f32 %v7148_v41, %v615_v8  ;;  %v782_v5 = vadd.f32 %v7157_v45, %v711_v60  ;;  %v7543_v30 = vpack.c.bf16 %v843_v11, %v842_v31 }
 0x156   :  { %v6464_v56 = vpop.f32.mrf.mxu0  ;;  %v7547_v52 = vor.u32 %v1056_v51, %v1055_v59  ;;  %v1222_v17 = vor.u32 %v1221_v27, %v1046_v16  ;;  %v1219_v60 = vrot.slane %v1042_v47, 1  ;;  %v1198_v11 = vor.u32 %v1197_v3, %v962_v54 }
 0x157   :  { %1384 = vrot.lane.b32.xlu1 %v7459_v33, %s6962_s21  ;;  %v780_v40 = vadd.f32 %v7157_v45, %v709_v35  ;;  %v712_v43 = vmul.f32 %v6464_v56, %v7148_v41  ;;  %v7553_v57 = vpack.c.bf16 %v841_v26, %v840_v10  ;;  %v1074_v31 = vshrl.u32 %v7543_v30, 16 }
 0x158   :  { %v618_v8 = vpop.f32.mrf.mxu0  ;;  %v846_v26 = vmax.f32 %v782_v5, 0.0  ;;  %v1077_v47 = vshll.u32 %v7543_v30, 16 }
 0x159   :  { %1382 = vrot.lane.b32.xlu0 %v7469_v55, %s6962_s21  ;;  %v783_v59 = vadd.f32 %v7157_v45, %v712_v43  ;;  %v710_v35 = vmul.f32 %v7148_v41, %v618_v8  ;;  %v8729_v10 = vshrl.u32 %v7553_v57, 16  ;;  %v844_v56 = vmax.f32 %v780_v40, 0.0  ;;  %v6938_v41 = vld [vmem:[%s8719_s4] ss:$0 sm:$0xff] }
 0x15a   :  { %v6467_v33 = vpop.f32.mrf.mxu0  ;;  %v1076_v16 = vrot.slane %v1074_v31, 7  ;;  %v1297_v40 = vsel %vm7188_vm2, %v1222_v17, 0  ;;  %v1220_v43 = vor.u32 %v1219_v60, %v1039_v49 }
 0x15b   :  { %1360 = vrot.lane.b32.xlu1 %v7295_v46, %s6962_s21  ;;  %v847_v27 = vmax.f32 %v783_v59, 0.0  ;;  %v781_v54 = vadd.f32 %v7157_v45, %v710_v35  ;;  %v715_v3 = vmul.f32 %v6938_v41, %v6467_v33  ;;  %v1069_v5 = vrot.slane %v8729_v10, 7  ;;  %v6939_v35 = vld [vmem:[%s8720_s5] ss:$0 sm:$0xff] }
 0x15c   :  { %v631_v8 = vpop.f32.mrf.mxu0  ;;  %v8731_v46 = vshll.u32 %v7553_v57, 16  ;;  %v7583_v45 = vor.u32 %v1077_v47, %v1076_v16 }
 0x15d   :  { %1480 = vrot.lane.b32.xlu0 %v1297_v40, %s6963_s26  ;;  %v845_v59 = vmax.f32 %v781_v54, 0.0  ;;  %v786_v33 = vadd.f32 %v6939_v35, %v715_v3  ;;  %v713_v24 = vmul.f32 %v6938_v41, %v631_v8  ;;  %v7589_v55 = vpack.c.bf16 %v847_v27, %v846_v26 }
 0x15e   :  { %v6468_v17 = vpop.f32.mrf.mxu0  ;;  %v7593_v49 = vor.u32 %v8731_v46, %v1069_v5  ;;  %v1296_v3 = vsel %vm7188_vm2, %v1220_v43, 0  ;;  %v1285_v40 = vsel %vm7188_vm2, %v1198_v11, 0  ;;  %v1225_v26 = vrot.slane %v1063_v19, 1 }
 0x15f   :  { %1388 = vrot.lane.b32.xlu1 %v7496_v34, %s6962_s21  ;;  %v784_v60 = vadd.f32 %v6939_v35, %v713_v24  ;;  %v716_v16 = vmul.f32 %v6938_v41, %v6468_v17  ;;  %v7597_v54 = vpack.c.bf16 %v845_v59, %v844_v56  ;;  %v1088_v5 = vshrl.u32 %v7589_v55, 16 }
 0x160   :  { %v634_v27 = vpop.f32.mrf.mxu0  ;;  %v850_v10 = vmax.f32 %v786_v33, 0.0  ;;  %v1223_v43 = vrot.slane %v1056_v51, 1  ;;  %v1091_v19 = vshll.u32 %v7589_v55, 16  ;;  %v1226_v33 = vor.u32 %v1225_v26, %v1060_v6  ;;  %v7642_v26 = vld [vmem:[%s8717_s2 + $0x88] sm:$0xff]  }
 0x161   :  { %v1341_v8 = vpop.permute.xlu1 %1340  ;;  %1478 = vrot.lane.b32.xlu0 %v1296_v3, %s6963_s26  ;;  %v787_v24 = vadd.f32 %v6939_v35, %v716_v16  ;;  %v714_v17 = vmul.f32 %v6938_v41, %v634_v27  ;;  %v1081_v56 = vshrl.u32 %v7597_v54, 16  ;;  %v848_v59 = vmax.f32 %v784_v60, 0.0  ;;  %6621 = vmatprep.subr.bf16.mxu0 %v7642_v26 }
 0x162   :  { %v1090_v11 = vrot.slane %v1088_v5, 7  ;;  %v1084_v3 = vshll.u32 %v7597_v54, 16  ;;  %v1224_v6 = vor.u32 %v1223_v43, %v1053_v28 }
 0x163   :  { %1456 = vrot.lane.b32.xlu1 %v1285_v40, %s6963_s26  ;;  %v851_v39 = vmax.f32 %v787_v24, 0.0  ;;  %v785_v46 = vadd.f32 %v6939_v35, %v714_v17  ;;  %v1083_v41 = vrot.slane %v1081_v56, 7 }
 0x164   :  { %v7621_v51 = vor.u32 %v1091_v19, %v1090_v11  ;;  %v1298_v43 = vsel %vm7188_vm2, %v1224_v6, 0 }
 0x165   :  { %v1339_v16 = vpop.permute.xlu1 %1338  ;;  %1386 = vrot.lane.b32.xlu0 %v7505_v15, %s6962_s21  ;;  %v7631_v35 = vpack.c.bf16 %v851_v39, %v850_v10  ;;  %v849_v40 = vmax.f32 %v785_v46, 0.0  ;;  %v7635_v34 = vor.u32 %v1084_v3, %v1083_v41  ;;  %v1144_v46 = vsel %vm7625_vm5, 0, %v7195_v29 }
 0x166   :  { %v1299_v15 = vsel %vm7188_vm2, %v1226_v33, 0  ;;  %v1504_v28 = vsel %vm1498_vm6, %v1144_v46, %v1341_v8  ;;  %v1143_v29 = vsel %vm7625_vm5, 0, %v7201_v38  ;;  %v1229_v46 = vrot.slane %v1077_v47, 1 }
 0x167   :  { %1392 = vrot.lane.b32.xlu1 %v7543_v30, %s6962_s21  ;;  %v7646_v39 = vpack.c.bf16 %v849_v40, %v848_v59  ;;  %v1102_v10 = vshrl.u32 %v7631_v35, 16  ;;  %v1105_v8 = vshll.u32 %v7631_v35, 16  ;;  %v1501_v11 = vsel %vm1498_vm6, %v1143_v29, %v1339_v16 }
 0x168   :  { %v1146_v30 = vsel %vm7625_vm5, 0, %v7214_v62  ;;  %v6856_v62 = vld [vmem:[%s8717_s2 + $0x80] sm:$0xff]  }
 0x169   :  { %v1437_v27 = vpop.permute.xlu1 %1436  ;;  %1484 = vrot.lane.b32.xlu0 %v1299_v15, %s6963_s26  ;;  %v1104_v24 = vrot.slane %v1102_v10, 7  ;;  %v1095_v17 = vshrl.u32 %v7646_v39, 16  ;;  %v1098_v15 = vshll.u32 %v7646_v39, 16 }
 0x16a   :  { %v1599_v59 = vsel %vm1595_vm7, %v1504_v28, %v1437_v27 }
 0x16b   :  { %v5413_v41 = vcombine.low %v1599_v59, %v1599_v59  ;;  %v5414_v33 = vcombine.high %v1599_v59, %v1599_v59  ;;  %v1435_v40 = vpop.permute.xlu0 %1434  ;;  %1362 = vrot.lane.b32.xlu1 %v7336_v20, %s6962_s21  ;;  %v1097_v6 = vrot.slane %v1095_v17, 7  ;;  %v7678_v28 = vor.u32 %v1105_v8, %v1104_v24 }
 0x16c   :  { %v1597_v38 = vsel %vm1595_vm7, %v1501_v11, %v1435_v40  ;;  %v1230_v24 = vor.u32 %v1229_v46, %v1074_v31  ;;  %v8736_v59 = vshll.u32 %v7553_v57, 16  ;;  %v8737_v40 = vshll.u32 %v7328_v14, 16 }
 0x16d   :  { %1897 = vst.msk [vmem:[#allocation2 + $0x10] sm:$0xf] %vm1660_vm8, %v5413_v41  ;;  %1898 = vst.msk [vmem:[#allocation2 + $0x14] sm:$0xf] %vm1660_vm8, %v5414_v33  ;;  %v5411_v16 = vcombine.low %v1597_v38, %v1597_v38  ;;  %v5412_v27 = vcombine.high %v1597_v38, %v1597_v38  ;;  %v1345_v29 = vpop.permute.xlu1 %1344  ;;  %1482 = vrot.lane.b32.xlu0 %v1298_v43, %s6963_s26  ;;  %v7685_v47 = vor.u32 %v1098_v15, %v1097_v6 }
 0x16e   :  { %v1227_v11 = vrot.slane %v8736_v59, 1  ;;  %v1145_v43 = vsel %vm7625_vm5, 0, %v7218_v7  ;;  %v1201_v38 = vrot.slane %v8737_v40, 1  ;;  %v1301_v7 = vsel %vm7188_vm2, %v1230_v24, 0 }
 0x16f   :  { %1895 = vst.msk [vmem:[#allocation2 + $0x8] sm:$0xf] %vm1660_vm8, %v5411_v16  ;;  %1896 = vst.msk [vmem:[#allocation2 + $0xc] sm:$0xf] %vm1660_vm8, %v5412_v27  ;;  %1396 = vrot.lane.b32.xlu1 %v7589_v55, %s6962_s21  ;;  %v8738_v46 = vshrl.u32 %v7553_v57, 16  ;;  %v1510_v27 = vsel %vm1498_vm6, %v1146_v30, %v1345_v29  ;;  %v8739_v24 = vshrl.u32 %v7328_v14, 16 }
 0x170   :  { %v1148_v55 = vsel %vm7625_vm5, 0, %v7233_v32 }
 0x171   :  { %v1343_v41 = vpop.permute.xlu1 %1342  ;;  %1390 = vrot.lane.b32.xlu0 %v7553_v57, %s6962_s21  ;;  %v1228_v16 = vor.u32 %v1227_v11, %v8738_v46  ;;  %v1231_v46 = vrot.slane %v1084_v3, 1 }
 0x172   :  { %v1507_v33 = vsel %vm1498_vm6, %v1145_v43, %v1343_v41 }
 0x173   :  { %v1439_v6 = vpop.permute.xlu0 %1438  ;;  %1364 = vrot.lane.b32.xlu1 %v7328_v14, %s6962_s21  ;;  %v1300_v30 = vsel %vm7188_vm2, %v1228_v16, 0 }
 0x174   :  { %v1601_v31 = vsel %vm1595_vm7, %v1507_v33, %v1439_v6  ;;  %v1202_v6 = vor.u32 %v1201_v38, %v8739_v24  ;;  %v6829_v11 = vld [vmem:[#allocation2 + $0x10] sm:$0xff]  }
 0x175   :  { %v5415_v59 = vcombine.low %v1601_v31, %v1601_v31  ;;  %v5416_v41 = vcombine.high %v1601_v31, %v1601_v31  ;;  %v1441_v43 = vpop.permute.xlu1 %1440  ;;  %1488 = vrot.lane.b32.xlu0 %v1301_v7, %s6963_s26  ;;  %v1233_v31 = vrot.slane %v1091_v19, 1  ;;  %v6858_v19 = vld [vmem:[%s8717_s2 + $0x78] sm:$0xff]  }
 0x176   :  { %v1603_v33 = vsel %vm1595_vm7, %v1510_v27, %v1441_v43  ;;  %v6828_v40 = vld [vmem:[#allocation2 + $0x8] sm:$0xff]   ;;  %v1287_v38 = vsel %vm7188_vm2, %v1202_v6, 0  ;;  %v1147_v27 = vsel %vm7625_vm5, 0, %v7239_v42 }
 0x177   :  { %1899 = vst.msk [vmem:[#allocation2 + $0x18] sm:$0xf] %vm1660_vm8, %v5415_v59  ;;  %1900 = vst.msk [vmem:[#allocation2 + $0x1c] sm:$0xf] %vm1660_vm8, %v5416_v41  ;;  %v5417_v57 = vcombine.low %v1603_v33, %v1603_v33  ;;  %v5418_v29 = vcombine.high %v1603_v33, %v1603_v33  ;;  %1400 = vrot.lane.b32.xlu1 %v7631_v35, %s6962_s21  ;;  %6481 = vmatprep.mubr.msk.bf16.mxu0 %vm2319_vm9, %v6828_v40  ;;  %v1150_v35 = vsel %vm7625_vm5, 0, %v7258_v2 }
 0x178   :  { %6482 = vmatmul.mubr.msk.bf16.vlgmr.msra.gmra.mxu0 %vm2319_vm9, %v6829_v11  ;;  %v1234_v7 = vor.u32 %v1233_v31, %v1088_v5  ;;  %v1232_v40 = vor.u32 %v1231_v46, %v1081_v56  ;;  %v1235_v31 = vrot.slane %v1098_v15, 1  ;;  %v8740_v15 = vshll.u32 %v7336_v20, 16 }
 0x179   :  { %1901 = vst.msk [vmem:[#allocation2 + $0x20] sm:$0xf] %vm1660_vm8, %v5417_v57  ;;  %1902 = vst.msk [vmem:[#allocation2 + $0x24] sm:$0xf] %vm1660_vm8, %v5418_v29  ;;  %v1349_v14 = vpop.permute.xlu1 %1348  ;;  %1486 = vrot.lane.b32.xlu0 %v1300_v30, %s6963_s26  ;;  %6622 = vmatpush3.bf16.msra.mxu0 %v7642_v26  ;;  %v1237_v29 = vrot.slane %v1105_v8, 1  ;;  %v1149_v8 = vsel %vm7625_vm5, 0, %v7266_v13 }
 0x17a   :  { %6623 = vmatprep.subr.bf16.mxu0 %v6856_v62  ;;  %v1303_v42 = vsel %vm7188_vm2, %v1234_v7, 0  ;;  %v1302_v56 = vsel %vm7188_vm2, %v1232_v40, 0  ;;  %v1199_v46 = vrot.slane %v8740_v15, 1  ;;  %v6865_v13 = vld [vmem:[%s8717_s2 + $0x68] sm:$0xff]   ;;  %v1236_v2 = vor.u32 %v1235_v31, %v1095_v17 }
 0x17b   :  { %1460 = vrot.lane.b32.xlu1 %v1287_v38, %s6963_s26  ;;  %v1443_v26 = vpop.permute.xlu0 %1442  ;;  %v1238_v30 = vor.u32 %v1237_v29, %v1102_v10  ;;  %v8741_v17 = vshrl.u32 %v7336_v20, 16  ;;  %v6869_v20 = vld [vmem:[%s8717_s2 + $0x60] sm:$0xff]  }
 0x17d   :  { %v1347_v16 = vpop.permute.xlu1 %1346  ;;  %1394 = vrot.lane.b32.xlu0 %v7597_v54, %s6962_s21  ;;  %6624 = vmatpush3.bf16.msra.mxu0 %v6856_v62  ;;  %v1516_v62 = vsel %vm1498_vm6, %v1148_v55, %v1349_v14  ;;  %v6861_v54 = vld [vmem:[%s8717_s2 + $0x70] sm:$0xff]  }
 0x17e   :  { %v1513_v59 = vsel %vm1498_vm6, %v1147_v27, %v1347_v16  ;;  %v6830_v41 = vld [vmem:[#allocation2 + $0x18] sm:$0xff]   ;;  %6625 = vmatprep.subr.bf16.mxu0 %v6858_v19 }
 0x17f   :  { %v1605_v5 = vsel %vm1595_vm7, %v1513_v59, %v1443_v26  ;;  %6485 = vmatprep.mubr.msk.bf16.mxu0 %vm2319_vm9, %v6830_v41  ;;  %v1305_v26 = vsel %vm7188_vm2, %v1238_v30, 0 }
 0x180   :  { %v5419_v3 = vcombine.low %v1605_v5, %v1605_v5  ;;  %v5420_v43 = vcombine.high %v1605_v5, %v1605_v5  ;;  %v6831_v33 = vld [vmem:[#allocation2 + $0x20] sm:$0xff]  }
 0x181   :  { %v1445_v24 = vpop.permute.xlu1 %1444  ;;  %1492 = vrot.lane.b32.xlu0 %v1303_v42, %s6963_s26  ;;  %6486 = vmatmul.mubr.msk.bf16.gmra.mxu0 %vm2319_vm9, %v6831_v33  ;;  %v1200_v42 = vor.u32 %v1199_v46, %v8741_v17  ;;  %v6964_v33 = vmov 0  }
 0x182   :  { %1903 = vst.msk [vmem:[#allocation2 + $0x28] sm:$0xf] %vm1660_vm8, %v5419_v3  ;;  %1904 = vst.msk [vmem:[#allocation2 + $0x2c] sm:$0xf] %vm1660_vm8, %v5420_v43  ;;  %v1607_v32 = vsel %vm1595_vm7, %v1516_v62, %v1445_v24  ;;  %6626 = vmatpush3.bf16.msra.mxu0 %v6858_v19 }
 0x183   :  { %v5421_v6 = vcombine.low %v1607_v32, %v1607_v32  ;;  %v5422_v57 = vcombine.high %v1607_v32, %v1607_v32  ;;  %6627 = vmatprep.subr.bf16.mxu0 %v6861_v54  ;;  %v1447_v19 = vpop.permute.xlu0 %1446  ;;  %1661 = vst.msk [vmem:[#allocation2] sm:$0xf] %vm1660_vm8, %v6964_v33  ;;  %1662 = vst.msk [vmem:[#allocation2 + $0x4] sm:$0xf] %vm1660_vm8, %v6964_v33  ;;  %v1286_v40 = vsel %vm7188_vm2, %v1200_v42, 0 }
 0x184   :  { %1663 = vst.msk [vmem:[#allocation2 + $0x90] sm:$0xf] %vm1660_vm8, %v6964_v33  ;;  %1664 = vst.msk [vmem:[#allocation2 + $0x94] sm:$0xf] %vm1660_vm8, %v6964_v33 }
 0x185   :  { %1905 = vst.msk [vmem:[#allocation2 + $0x30] sm:$0xf] %vm1660_vm8, %v5421_v6  ;;  %1906 = vst.msk [vmem:[#allocation2 + $0x34] sm:$0xf] %vm1660_vm8, %v5422_v57  ;;  %v1353_v11 = vpop.permute.xlu1 %1352  ;;  %1490 = vrot.lane.b32.xlu0 %v1302_v56, %s6963_s26  ;;  %v1158_v57 = vsel %vm7625_vm5, 0, %v7371_v36 }
 0x186   :  { %6628 = vmatpush3.bf16.msra.mxu0 %v6861_v54  ;;  %v1522_v41 = vsel %vm1498_vm6, %v1150_v35, %v1353_v11  ;;  %1666 = vst.msk [vmem:[#allocation2 + $0x88] sm:$0xf] %vm1660_vm8, %v6964_v33  ;;  %1667 = vst.msk [vmem:[#allocation2 + $0x8c] sm:$0xf] %vm1660_vm8, %v6964_v33 }
 0x187   :  { %6629 = vmatprep.subr.bf16.mxu0 %v6865_v13  ;;  %1668 = vst.msk [vmem:[#allocation2 + $0x118] sm:$0xf] %vm1660_vm8, %v6964_v33  ;;  %1669 = vst.msk [vmem:[#allocation2 + $0x11c] sm:$0xf] %vm1660_vm8, %v6964_v33  ;;  %v6848_v33 = vld [vmem:[%s8717_s2 + $0x20] sm:$0xff]  }
 0x189   :  { %v1351_v14 = vpop.permute.xlu1 %1350  ;;  %1398 = vrot.lane.b32.xlu0 %v7646_v39, %s6962_s21  ;;  %v6832_v38 = vld [vmem:[#allocation2 + $0x28] sm:$0xff]   ;;  %v1304_v39 = vsel %vm7188_vm2, %v1236_v2, 0 }
 0x18a   :  { %v1519_v7 = vsel %vm1498_vm6, %v1149_v8, %v1351_v14  ;;  %6489 = vmatprep.mubr.msk.bf16.mxu0 %vm2319_vm9, %v6832_v38  ;;  %6630 = vmatpush3.bf16.msra.mxu0 %v6865_v13  ;;  %v1157_v8 = vsel %vm7625_vm5, 0, %v7379_v0 }
 0x18b   :  { %v1609_v10 = vsel %vm1595_vm7, %v1519_v7, %v1447_v19  ;;  %6631 = vmatprep.subr.bf16.mxu0 %v6869_v20  ;;  %v1159_v19 = vsel %vm7625_vm5, 0, %v7401_v4 }
 0x18c   :  { %v5423_v16 = vcombine.low %v1609_v10, %v1609_v10  ;;  %v5424_v27 = vcombine.high %v1609_v10, %v1609_v10  ;;  %v6833_v59 = vld [vmem:[#allocation2 + $0x30] sm:$0xff]  }
 0x18d   :  { %v1449_v55 = vpop.permute.xlu1 %1448  ;;  %1496 = vrot.lane.b32.xlu0 %v1305_v26, %s6963_s26  ;;  %6490 = vmatmul.mubr.msk.bf16.gmra.mxu0 %vm2319_vm9, %v6833_v59 }
 0x18e   :  { %1907 = vst.msk [vmem:[#allocation2 + $0x38] sm:$0xf] %vm1660_vm8, %v5423_v16  ;;  %1908 = vst.msk [vmem:[#allocation2 + $0x3c] sm:$0xf] %vm1660_vm8, %v5424_v27  ;;  %v1611_v5 = vsel %vm1595_vm7, %v1522_v41, %v1449_v55  ;;  %6632 = vmatpush3.bf16.msra.mxu0 %v6869_v20  ;;  %v1151_v27 = vsel %vm7625_vm5, 0, %v7300_v50  ;;  %v1160_v41 = vsel %vm7625_vm5, 0, %v7392_v58 }
 0x18f   :  { %v5425_v3 = vcombine.low %v1611_v5, %v1611_v5  ;;  %v5426_v43 = vcombine.high %v1611_v5, %v1611_v5 }
 0x191   :  { %1909 = vst.msk [vmem:[#allocation2 + $0x40] sm:$0xf] %vm1660_vm8, %v5425_v3  ;;  %1910 = vst.msk [vmem:[#allocation2 + $0x44] sm:$0xf] %vm1660_vm8, %v5426_v43  ;;  %1494 = vrot.lane.b32.xlu0 %v1304_v39, %s6963_s26 }
 0x195   :  { %1458 = vrot.lane.b32.xlu0 %v1286_v40, %s6963_s26  ;;  %v6834_v62 = vld [vmem:[#allocation2 + $0x38] sm:$0xff]  }
 0x196   :  { %6493 = vmatprep.mubr.msk.bf16.mxu0 %vm2319_vm9, %v6834_v62  ;;  %v1161_v62 = vsel %vm7625_vm5, 0, %v7428_v21 }
 0x198   :  { %v6835_v24 = vld [vmem:[#allocation2 + $0x40] sm:$0xff]  }
 0x199   :  { %v1369_v32 = vpop.permute.xlu0 %1368  ;;  %6494 = vmatmul.mubr.msk.bf16.gmra.mxu0 %vm2319_vm9, %v6835_v24 }
 0x19a   :  { %v1546_v54 = vsel %vm1498_vm6, %v1158_v57, %v1369_v32 }
 0x19d   :  { %v1367_v6 = vpop.permute.xlu0 %1366 }
 0x19e   :  { %v1543_v36 = vsel %vm1498_vm6, %v1157_v8, %v1367_v6 }
 0x1a1   :  { %v1465_v56 = vpop.permute.xlu1 %1464 }
 0x1a2   :  { %v1627_v23 = vsel %vm1595_vm7, %v1546_v54, %v1465_v56  ;;  %v6853_v54 = vld [vmem:[%s8717_s2 + $0x18] sm:$0xff]  }
 0x1a3   :  { %v5441_v29 = vcombine.low %v1627_v23, %v1627_v23  ;;  %v5442_v11 = vcombine.high %v1627_v23, %v1627_v23  ;;  %v1371_v30 = vpop.permute.xlu0 %1370 }
 0x1a4   :  { %v1549_v35 = vsel %vm1498_vm6, %v1159_v19, %v1371_v30 }
 0x1a5   :  { %1925 = vst.msk [vmem:[#allocation2 + $0x80] sm:$0xf] %vm1660_vm8, %v5441_v29  ;;  %1926 = vst.msk [vmem:[#allocation2 + $0x84] sm:$0xf] %vm1660_vm8, %v5442_v11  ;;  %v1373_v31 = vpop.permute.xlu1 %1372  ;;  %v1162_v29 = vsel %vm7625_vm5, 0, %v7417_v1 }
 0x1a6   :  { %v1552_v3 = vsel %vm1498_vm6, %v1160_v41, %v1373_v31  ;;  %v1153_v41 = vsel %vm7625_vm5, 0, %v7333_v18 }
 0x1a7   :  { %v1451_v14 = vpop.permute.xlu0 %1450 }
 0x1a9   :  { %v1463_v38 = vpop.permute.xlu1 %1462 }
 0x1aa   :  { %v1625_v7 = vsel %vm1595_vm7, %v1543_v36, %v1463_v38 }
 0x1ab   :  { %v5439_v10 = vcombine.low %v1625_v7, %v1625_v7  ;;  %v5440_v15 = vcombine.high %v1625_v7, %v1625_v7  ;;  %v1467_v46 = vpop.permute.xlu0 %1466  ;;  %v6857_v7 = vld [vmem:[%s8717_s2 + $0x10] sm:$0xff]  }
 0x1ac   :  { %v1629_v13 = vsel %vm1595_vm7, %v1549_v35, %v1467_v46  ;;  %v6837_v40 = vld [vmem:[#allocation2 + $0x80] sm:$0xff]  }
 0x1ad   :  { %1923 = vst.msk [vmem:[#allocation2 + $0x78] sm:$0xf] %vm1660_vm8, %v5439_v10  ;;  %1924 = vst.msk [vmem:[#allocation2 + $0x7c] sm:$0xf] %vm1660_vm8, %v5440_v15  ;;  %v5443_v0 = vcombine.low %v1629_v13, %v1629_v13  ;;  %v5444_v16 = vcombine.high %v1629_v13, %v1629_v13  ;;  %v1355_v4 = vpop.permute.xlu1 %1354  ;;  %v1164_v13 = vsel %vm7625_vm5, 0, %v7454_v25  ;;  %v6866_v25 = vld [vmem:[%s8717_s2] sm:$0xff]  }
 0x1ae   :  { %v1525_v26 = vsel %vm1498_vm6, %v1151_v27, %v1355_v4 }
 0x1af   :  { %1927 = vst.msk [vmem:[#allocation2 + $0x98] sm:$0xf] %vm1660_vm8, %v5443_v0  ;;  %1928 = vst.msk [vmem:[#allocation2 + $0x9c] sm:$0xf] %vm1660_vm8, %v5444_v16  ;;  %v1613_v59 = vsel %vm1595_vm7, %v1525_v26, %v1451_v14  ;;  %v1375_v2 = vpop.permute.xlu0 %1374  ;;  %v1152_v14 = vsel %vm7625_vm5, 0, %v7292_v37  ;;  %v6862_v0 = vld [vmem:[%s8717_s2 + $0x8] sm:$0xff]  }
 0x1b0   :  { %v5427_v55 = vcombine.low %v1613_v59, %v1613_v59  ;;  %v5428_v5 = vcombine.high %v1613_v59, %v1613_v59  ;;  %v1555_v32 = vsel %vm1498_vm6, %v1161_v62, %v1375_v2 }
 0x1b1   :  { %v1469_v43 = vpop.permute.xlu1 %1468 }
 0x1b2   :  { %1911 = vst.msk [vmem:[#allocation2 + $0x48] sm:$0xf] %vm1660_vm8, %v5427_v55  ;;  %1912 = vst.msk [vmem:[#allocation2 + $0x4c] sm:$0xf] %vm1660_vm8, %v5428_v5  ;;  %v1631_v50 = vsel %vm1595_vm7, %v1552_v3, %v1469_v43  ;;  %v1163_v3 = vsel %vm7625_vm5, 0, %v7463_v44 }
 0x1b3   :  { %v5445_v39 = vcombine.low %v1631_v50, %v1631_v50  ;;  %v5446_v17 = vcombine.high %v1631_v50, %v1631_v50  ;;  %v1473_v42 = vpop.permute.xlu0 %1472 }
 0x1b4   :  { %v6836_v20 = vld [vmem:[#allocation2 + $0x78] sm:$0xff]  }
 0x1b5   :  { %1929 = vst.msk [vmem:[#allocation2 + $0xa0] sm:$0xf] %vm1660_vm8, %v5445_v39  ;;  %1930 = vst.msk [vmem:[#allocation2 + $0xa4] sm:$0xf] %vm1660_vm8, %v5446_v17  ;;  %v1357_v58 = vpop.permute.xlu1 %1356  ;;  %6509 = vmatprep.mubr.msk.bf16.mxu1 %vm2319_vm9, %v6836_v20 }
 0x1b6   :  { %v6838_v24 = vld [vmem:[#allocation2 + $0x98] sm:$0xff]   ;;  %6510 = vmatmul.mubr.msk.bf16.vlgmr.msra.gmra.mxu1 %vm2319_vm9, %v6837_v40  ;;  %v1528_v38 = vsel %vm1498_vm6, %v1152_v14, %v1357_v58  ;;  %v1154_v14 = vsel %vm7625_vm5, 0, %v7325_v9 }
 0x1b7   :  { %v1471_v6 = vpop.permute.xlu0 %1470  ;;  %6513 = vmatprep.mubr.msk.bf16.mxu1 %vm2319_vm9, %v6838_v24  ;;  %6546 = vmatpush3.bf16.msra.mxu1 %v7528_v63 }
 0x1b8   :  { %v1633_v57 = vsel %vm1595_vm7, %v1555_v32, %v1471_v6  ;;  %6547 = vmatprep.subr.bf16.mxu1 %v6848_v33  ;;  %v1166_v32 = vsel %vm7625_vm5, 0, %v7492_v48 }
 0x1b9   :  { %v5447_v56 = vcombine.low %v1633_v57, %v1633_v57  ;;  %v5448_v21 = vcombine.high %v1633_v57, %v1633_v57  ;;  %v1377_v23 = vpop.permute.xlu1 %1376  ;;  %v6839_v11 = vld [vmem:[#allocation2 + $0x48] sm:$0xff]  }
 0x1ba   :  { %v1558_v30 = vsel %vm1498_vm6, %v1162_v29, %v1377_v23  ;;  %6497 = vmatprep.mubr.msk.bf16.mxu0 %vm2319_vm9, %v6839_v11  ;;  %v1165_v11 = vsel %vm7625_vm5, 0, %v7499_v12 }
 0x1bb   :  { %1931 = vst.msk [vmem:[#allocation2 + $0xa8] sm:$0xf] %vm1660_vm8, %v5447_v56  ;;  %1932 = vst.msk [vmem:[#allocation2 + $0xac] sm:$0xf] %vm1660_vm8, %v5448_v21  ;;  %v1635_v63 = vsel %vm1595_vm7, %v1558_v30, %v1473_v42  ;;  %v1379_v31 = vpop.permute.xlu0 %1378  ;;  %6548 = vmatpush3.bf16.msra.mxu1 %v6848_v33 }
 0x1bc   :  { %v5449_v8 = vcombine.low %v1635_v63, %v1635_v63  ;;  %v5450_v36 = vcombine.high %v1635_v63, %v1635_v63  ;;  %v6840_v1 = vld [vmem:[#allocation2 + $0xa0] sm:$0xff]   ;;  %6549 = vmatprep.subr.bf16.mxu1 %v6853_v54  ;;  %v1561_v50 = vsel %vm1498_vm6, %v1163_v3, %v1379_v31 }
 0x1bd   :  { %v1453_v19 = vpop.permute.xlu1 %1452 }
 0x1be   :  { %1933 = vst.msk [vmem:[#allocation2 + $0xb0] sm:$0xf] %vm1660_vm8, %v5449_v8  ;;  %1934 = vst.msk [vmem:[#allocation2 + $0xb4] sm:$0xf] %vm1660_vm8, %v5450_v36  ;;  %v1615_v35 = vsel %vm1595_vm7, %v1528_v38, %v1453_v19  ;;  %6514 = vmatmul.mubr.msk.bf16.gmra.mxu1 %vm2319_vm9, %v6840_v1 }
 0x1bf   :  { %v5429_v10 = vcombine.low %v1615_v35, %v1615_v35  ;;  %v5430_v37 = vcombine.high %v1615_v35, %v1615_v35  ;;  %v1477_v15 = vpop.permute.xlu0 %1476  ;;  %6550 = vmatpush3.bf16.msra.mxu1 %v6853_v54 }
 0x1c0   :  { %6551 = vmatprep.subr.bf16.mxu1 %v6857_v7 }
 0x1c1   :  { %1913 = vst.msk [vmem:[#allocation2 + $0x50] sm:$0xf] %vm1660_vm8, %v5429_v10  ;;  %1914 = vst.msk [vmem:[#allocation2 + $0x54] sm:$0xf] %vm1660_vm8, %v5430_v37  ;;  %v1381_v46 = vpop.permute.xlu1 %1380  ;;  %v1168_v37 = vsel %vm7625_vm5, 0, %v7535_v22 }
 0x1c2   :  { %v1564_v16 = vsel %vm1498_vm6, %v1164_v13, %v1381_v46  ;;  %v6841_v27 = vld [vmem:[#allocation2 + $0xa8] sm:$0xff]  }
 0x1c3   :  { %v1639_v4 = vsel %vm1595_vm7, %v1564_v16, %v1477_v15  ;;  %v1455_v26 = vpop.permute.xlu0 %1454  ;;  %6517 = vmatprep.mubr.msk.bf16.mxu1 %vm2319_vm9, %v6841_v27  ;;  %6552 = vmatpush3.bf16.msra.mxu1 %v6857_v7 }
 0x1c4   :  { %v5453_v59 = vcombine.low %v1639_v4, %v1639_v4  ;;  %v5454_v2 = vcombine.high %v1639_v4, %v1639_v4  ;;  %6553 = vmatprep.subr.bf16.mxu1 %v6862_v0  ;;  %v1167_v4 = vsel %vm7625_vm5, 0, %v7547_v52 }
 0x1c5   :  { %v1359_v55 = vpop.permute.xlu1 %1358  ;;  %v6842_v5 = vld [vmem:[#allocation2 + $0xb0] sm:$0xff]  }
 0x1c6   :  { %1937 = vst.msk [vmem:[#allocation2 + $0xc0] sm:$0xf] %vm1660_vm8, %v5453_v59  ;;  %1938 = vst.msk [vmem:[#allocation2 + $0xc4] sm:$0xf] %vm1660_vm8, %v5454_v2  ;;  %v1531_v43 = vsel %vm1498_vm6, %v1153_v41, %v1359_v55  ;;  %6518 = vmatmul.mubr.msk.bf16.gmra.mxu1 %vm2319_vm9, %v6842_v5 }
 0x1c7   :  { %v1617_v39 = vsel %vm1595_vm7, %v1531_v43, %v1455_v26  ;;  %v1475_v18 = vpop.permute.xlu0 %1474  ;;  %6554 = vmatpush3.bf16.msra.mxu1 %v6862_v0 }
 0x1c8   :  { %v5431_v17 = vcombine.low %v1617_v39, %v1617_v39  ;;  %v5432_v42 = vcombine.high %v1617_v39, %v1617_v39  ;;  %v1637_v33 = vsel %vm1595_vm7, %v1561_v50, %v1475_v18  ;;  %v6843_v20 = vld [vmem:[#allocation2 + $0x50] sm:$0xff]   ;;  %6555 = vmatprep.subr.bf16.mxu1 %v6866_v25  ;;  %v1170_v50 = vsel %vm7625_vm5, 0, %v7583_v45 }
 0x1c9   :  { %v5451_v44 = vcombine.low %v1637_v33, %v1637_v33  ;;  %v5452_v58 = vcombine.high %v1637_v33, %v1637_v33  ;;  %v1385_v40 = vpop.permute.xlu1 %1384  ;;  %6498 = vmatmul.mubr.msk.bf16.gmra.mxu0 %vm2319_vm9, %v6843_v20 }
 0x1ca   :  { %1915 = vst.msk [vmem:[#allocation2 + $0x58] sm:$0xf] %vm1660_vm8, %v5431_v17  ;;  %1916 = vst.msk [vmem:[#allocation2 + $0x5c] sm:$0xf] %vm1660_vm8, %v5432_v42  ;;  %v1570_v6 = vsel %vm1498_vm6, %v1166_v32, %v1385_v40 }
 0x1cb   :  { %1935 = vst.msk [vmem:[#allocation2 + $0xb8] sm:$0xf] %vm1660_vm8, %v5451_v44  ;;  %1936 = vst.msk [vmem:[#allocation2 + $0xbc] sm:$0xf] %vm1660_vm8, %v5452_v58  ;;  %v1383_v62 = vpop.permute.xlu0 %1382  ;;  %6556 = vmatpush3.bf16.msra.mxu1 %v6866_v25  ;;  %v1169_v44 = vsel %vm7625_vm5, 0, %v7593_v49 }
 0x1cc   :  { %v1567_v63 = vsel %vm1498_vm6, %v1165_v11, %v1383_v62  ;;  %v1172_v11 = vsel %vm7625_vm5, 0, %v7621_v51 }
 0x1cd   :  { %v1361_v24 = vpop.permute.xlu1 %1360  ;;  %v6847_v31 = vld [vmem:[#allocation2 + $0xc0] sm:$0xff]  }
 0x1ce   :  { %v1534_v12 = vsel %vm1498_vm6, %v1154_v14, %v1361_v24  ;;  %v1156_v24 = vsel %vm7625_vm5, 0, %v7353_v53 }
 0x1cf   :  { %v1481_v57 = vpop.permute.xlu0 %1480 }
 0x1d0   :  { %v1643_v54 = vsel %vm1595_vm7, %v1570_v6, %v1481_v57 }
 0x1d1   :  { %v5457_v56 = vcombine.low %v1643_v54, %v1643_v54  ;;  %v5458_v21 = vcombine.high %v1643_v54, %v1643_v54  ;;  %v1389_v23 = vpop.permute.xlu1 %1388  ;;  %v6844_v29 = vld [vmem:[#allocation2 + $0x58] sm:$0xff]  }
 0x1d2   :  { %v6846_v30 = vld [vmem:[#allocation2 + $0xb8] sm:$0xff]   ;;  %6501 = vmatprep.mubr.msk.bf16.mxu0 %vm2319_vm9, %v6844_v29  ;;  %v1576_v15 = vsel %vm1498_vm6, %v1168_v37, %v1389_v23 }
 0x1d3   :  { %1941 = vst.msk [vmem:[#allocation2 + $0xd0] sm:$0xf] %vm1660_vm8, %v5457_v56  ;;  %1942 = vst.msk [vmem:[#allocation2 + $0xd4] sm:$0xf] %vm1660_vm8, %v5458_v21  ;;  %v1479_v48 = vpop.permute.xlu0 %1478  ;;  %6521 = vmatprep.mubr.msk.bf16.mxu1 %vm2319_vm9, %v6846_v30  ;;  %v7995_v21 = vld [vmem:[%s8718_s3 + $0x8] sm:$0xff]  }
 0x1d4   :  { %v1641_v8 = vsel %vm1595_vm7, %v1567_v63, %v1479_v48  ;;  %6522 = vmatmul.mubr.msk.bf16.gmra.mxu1 %vm2319_vm9, %v6847_v31  ;;  %6697 = vmatprep.subr.bf16.mxu1 %v7995_v21 }
 0x1d5   :  { %v5455_v36 = vcombine.low %v1641_v8, %v1641_v8  ;;  %v5456_v1 = vcombine.high %v1641_v8, %v1641_v8  ;;  %v1457_v38 = vpop.permute.xlu1 %1456  ;;  %v1171_v8 = vsel %vm7625_vm5, 0, %v7635_v34 }
 0x1d6   :  { %v1619_v19 = vsel %vm1595_vm7, %v1534_v12, %v1457_v38 }
 0x1d7   :  { %1939 = vst.msk [vmem:[#allocation2 + $0xc8] sm:$0xf] %vm1660_vm8, %v5455_v36  ;;  %1940 = vst.msk [vmem:[#allocation2 + $0xcc] sm:$0xf] %vm1660_vm8, %v5456_v1  ;;  %v5433_v7 = vcombine.low %v1619_v19, %v1619_v19  ;;  %v5434_v35 = vcombine.high %v1619_v19, %v1619_v19  ;;  %v1387_v9 = vpop.permute.xlu0 %1386 }
 0x1d8   :  { %v1573_v59 = vsel %vm1498_vm6, %v1167_v4, %v1387_v9 }
 0x1d9   :  { %1917 = vst.msk [vmem:[#allocation2 + $0x60] sm:$0xf] %vm1660_vm8, %v5433_v7  ;;  %1918 = vst.msk [vmem:[#allocation2 + $0x64] sm:$0xf] %vm1660_vm8, %v5434_v35  ;;  %v1393_v10 = vpop.permute.xlu1 %1392  ;;  %v1174_v35 = vsel %vm7625_vm5, 0, %v7678_v28 }
 0x1da   :  { %v6851_v2 = vld [vmem:[#allocation2 + $0xd0] sm:$0xff]   ;;  %v1582_v39 = vsel %vm1498_vm6, %v1170_v50, %v1393_v10  ;;  %v6874_v50 = vld [vmem:[#allocation2 + $0x8] sm:$0xff]  }
 0x1db   :  { %v1485_v46 = vpop.permute.xlu0 %1484 }
 0x1dc   :  { %v1647_v13 = vsel %vm1595_vm7, %v1576_v15, %v1485_v46 }
 0x1dd   :  { %v5461_v0 = vcombine.low %v1647_v13, %v1647_v13  ;;  %v5462_v16 = vcombine.high %v1647_v13, %v1647_v13  ;;  %v7959_v27 = vpop.permute.xlu1 %1362  ;;  %v1173_v13 = vsel %vm7625_vm5, 0, %v7685_v47  ;;  %v1155_v47 = vsel %vm7625_vm5, 0, %v7359_v61 }
 0x1de   :  { %v6849_v26 = vld [vmem:[#allocation2 + $0xc8] sm:$0xff]  }
 0x1df   :  { %1945 = vst.msk [vmem:[#allocation2 + $0xe0] sm:$0xf] %vm1660_vm8, %v5461_v0  ;;  %1946 = vst.msk [vmem:[#allocation2 + $0xe4] sm:$0xf] %vm1660_vm8, %v5462_v16  ;;  %v1483_v22 = vpop.permute.xlu0 %1482  ;;  %6525 = vmatprep.mubr.msk.bf16.mxu1 %vm2319_vm9, %v6849_v26 }
 0x1e0   :  { %v1645_v25 = vsel %vm1595_vm7, %v1573_v59, %v1483_v22  ;;  %v6850_v41 = vld [vmem:[#allocation2 + $0x60] sm:$0xff]   ;;  %6526 = vmatmul.mubr.msk.bf16.gmra.mxu1 %vm2319_vm9, %v6851_v2  ;;  %v1537_v2 = vsel %vm1498_vm6, %v1155_v47, %v7959_v27 }
 0x1e1   :  { %v5459_v55 = vcombine.low %v1645_v25, %v1645_v25  ;;  %v5460_v5 = vcombine.high %v1645_v25, %v1645_v25  ;;  %v1397_v3 = vpop.permute.xlu1 %1396  ;;  %6502 = vmatmul.mubr.msk.bf16.gmra.mxu0 %vm2319_vm9, %v6850_v41 }
 0x1e2   :  { %v1588_v30 = vsel %vm1498_vm6, %v1172_v11, %v1397_v3  ;;  %v6873_v3 = vld [vmem:[#allocation2] sm:$0xff]  }
 0x1e3   :  { %1943 = vst.msk [vmem:[#allocation2 + $0xd8] sm:$0xf] %vm1660_vm8, %v5459_v55  ;;  %1944 = vst.msk [vmem:[#allocation2 + $0xdc] sm:$0xf] %vm1660_vm8, %v5460_v5  ;;  %v1391_v52 = vpop.permute.xlu0 %1390 }
 0x1e4   :  { %v1579_v40 = vsel %vm1498_vm6, %v1169_v44, %v1391_v52  ;;  %v6881_v44 = vld [vmem:[#allocation2 + $0x30] sm:$0xff]  }
 0x1e5   :  { %v1365_v43 = vpop.permute.xlu1 %1364 }
 0x1e6   :  { %v6855_v62 = vld [vmem:[#allocation2 + $0xe0] sm:$0xff]   ;;  %v1540_v6 = vsel %vm1498_vm6, %v1156_v24, %v1365_v43  ;;  %v6872_v43 = vld [vmem:[#allocation2 + $0x10] sm:$0xff]  }
 0x1e7   :  { %v1489_v18 = vpop.permute.xlu0 %1488  ;;  %v6937_v24 = vld [vmem:[%s8718_s3] sm:$0xff]  }
 0x1e8   :  { %v1651_v17 = vsel %vm1595_vm7, %v1582_v39, %v1489_v18  ;;  %v6875_v39 = vld [vmem:[#allocation2 + $0x10] sm:$0xff]   ;;  %v6876_v18 = vld [vmem:[#allocation2 + $0x18] sm:$0xff]  }
 0x1e9   :  { %v5465_v42 = vcombine.low %v1651_v17, %v1651_v17  ;;  %v5466_v33 = vcombine.high %v1651_v17, %v1651_v17  ;;  %v1401_v20 = vpop.permute.xlu1 %1400  ;;  %v6877_v17 = vld [vmem:[#allocation2 + $0x20] sm:$0xff]  }
 0x1ea   :  { %v6854_v58 = vld [vmem:[#allocation2 + $0xd8] sm:$0xff]   ;;  %v1594_v9 = vsel %vm1498_vm6, %v1174_v35, %v1401_v20  ;;  %v6880_v20 = vld [vmem:[#allocation2 + $0x28] sm:$0xff]   ;;  %v6911_v35 = vld [vmem:[#allocation2 + $0xb0] sm:$0xff]  }
 0x1eb   :  { %1949 = vst.msk [vmem:[#allocation2 + $0xf0] sm:$0xf] %vm1660_vm8, %v5465_v42  ;;  %1950 = vst.msk [vmem:[#allocation2 + $0xf4] sm:$0xf] %vm1660_vm8, %v5466_v33  ;;  %v1487_v45 = vpop.permute.xlu0 %1486  ;;  %6529 = vmatprep.mubr.msk.bf16.mxu1 %vm2319_vm9, %v6854_v58  ;;  %v6878_v42 = vld [vmem:[#allocation2 + $0x18] sm:$0xff]   ;;  %v6879_v33 = vld [vmem:[#allocation2 + $0x20] sm:$0xff]  }
 0x1ec   :  { %v1649_v32 = vsel %vm1595_vm7, %v1579_v40, %v1487_v45  ;;  %6530 = vmatmul.mubr.msk.bf16.gmra.mxu1 %vm2319_vm9, %v6855_v62  ;;  %v6882_v58 = vld [vmem:[#allocation2 + $0x28] sm:$0xff]   ;;  %v6883_v40 = vld [vmem:[#allocation2 + $0x30] sm:$0xff]   ;;  %v6884_v45 = vld [vmem:[#allocation2 + $0x38] sm:$0xff]  }
 0x1ed   :  { %v5463_v49 = vcombine.low %v1649_v32, %v1649_v32  ;;  %v5464_v57 = vcombine.high %v1649_v32, %v1649_v32  ;;  %v1461_v54 = vpop.permute.xlu1 %1460  ;;  %v6885_v62 = vld [vmem:[#allocation2 + $0x40] sm:$0xff]   ;;  %v6886_v32 = vld [vmem:[#allocation2 + $0x38] sm:$0xff]  }
 0x1ee   :  { %v1623_v56 = vsel %vm1595_vm7, %v1540_v6, %v1461_v54  ;;  %v6887_v6 = vld [vmem:[#allocation2 + $0x40] sm:$0xff]   ;;  %v6890_v54 = vld [vmem:[#allocation2 + $0x48] sm:$0xff]  }
 0x1ef   :  { %1947 = vst.msk [vmem:[#allocation2 + $0xe8] sm:$0xf] %vm1660_vm8, %v5463_v49  ;;  %1948 = vst.msk [vmem:[#allocation2 + $0xec] sm:$0xf] %vm1660_vm8, %v5464_v57  ;;  %v5437_v53 = vcombine.low %v1623_v56, %v1623_v56  ;;  %v5438_v23 = vcombine.high %v1623_v56, %v1623_v56  ;;  %v1395_v29 = vpop.permute.xlu0 %1394  ;;  %v6888_v49 = vld [vmem:[#allocation2 + $0x48] sm:$0xff]   ;;  %v6889_v57 = vld [vmem:[#allocation2 + $0x50] sm:$0xff]  }
 0x1f0   :  { %v1585_v36 = vsel %vm1498_vm6, %v1171_v8, %v1395_v29  ;;  %v6891_v56 = vld [vmem:[#allocation2 + $0x50] sm:$0xff]   ;;  %v6895_v29 = vld [vmem:[#allocation2 + $0x60] sm:$0xff]  }
 0x1f1   :  { %1921 = vst.msk [vmem:[#allocation2 + $0x70] sm:$0xf] %vm1660_vm8, %v5437_v53  ;;  %1922 = vst.msk [vmem:[#allocation2 + $0x74] sm:$0xf] %vm1660_vm8, %v5438_v23  ;;  %v6893_v53 = vld [vmem:[#allocation2 + $0x60] sm:$0xff]   ;;  %v6894_v23 = vld [vmem:[#allocation2 + $0x58] sm:$0xff]  }
 0x1f2   :  { %v6860_v51 = vld [vmem:[#allocation2 + $0xf0] sm:$0xff]  }
 0x1f3   :  { %v1493_v63 = vpop.permute.xlu0 %1492  ;;  %v6905_v8 = vld [vmem:[#allocation2 + $0x90] sm:$0xff]  }
 0x1f4   :  { %v1655_v48 = vsel %vm1595_vm7, %v1588_v30, %v1493_v63 }
 0x1f5   :  { %v5469_v31 = vcombine.low %v1655_v48, %v1655_v48  ;;  %v5470_v14 = vcombine.high %v1655_v48, %v1655_v48 }
 0x1f6   :  { %v6859_v12 = vld [vmem:[#allocation2 + $0xe8] sm:$0xff]  }
 0x1f7   :  { %1953 = vst.msk [vmem:[#allocation2 + $0x100] sm:$0xf] %vm1660_vm8, %v5469_v31  ;;  %1954 = vst.msk [vmem:[#allocation2 + $0x104] sm:$0xf] %vm1660_vm8, %v5470_v14  ;;  %v1491_v1 = vpop.permute.xlu0 %1490  ;;  %6533 = vmatprep.mubr.msk.bf16.mxu1 %vm2319_vm9, %v6859_v12  ;;  %v6900_v31 = vld [vmem:[#allocation2 + $0x78] sm:$0xff]   ;;  %v6901_v14 = vld [vmem:[#allocation2 + $0x80] sm:$0xff]  }
 0x1f8   :  { %v1653_v38 = vsel %vm1595_vm7, %v1585_v36, %v1491_v1  ;;  %6534 = vmatmul.mubr.msk.bf16.gmra.mxu1 %vm2319_vm9, %v6860_v51  ;;  %v6871_v27 = vld [vmem:[#allocation2 + $0x70] sm:$0xff]   ;;  %v6902_v12 = vld [vmem:[#allocation2 + $0x78] sm:$0xff]   ;;  %v6903_v36 = vld [vmem:[#allocation2 + $0x88] sm:$0xff]  }
 0x1f9   :  { %v5467_v19 = vcombine.low %v1653_v38, %v1653_v38  ;;  %v5468_v7 = vcombine.high %v1653_v38, %v1653_v38  ;;  %v6897_v30 = vld [vmem:[#allocation2 + $0x70] sm:$0xff]   ;;  %v6904_v1 = vld [vmem:[#allocation2 + $0xa0] sm:$0xff]   ;;  %v6906_v51 = vld [vmem:[#allocation2 + $0x98] sm:$0xff]  }
 0x1fa   :  { %v6899_v48 = vld [vmem:[#allocation2 + $0x70] sm:$0xff]   ;;  %v6907_v38 = vld [vmem:[#allocation2 + $0xa0] sm:$0xff]  }
 0x1fb   :  { %1951 = vst.msk [vmem:[#allocation2 + $0xf8] sm:$0xf] %vm1660_vm8, %v5467_v19  ;;  %1952 = vst.msk [vmem:[#allocation2 + $0xfc] sm:$0xf] %vm1660_vm8, %v5468_v7  ;;  %v1399_v34 = vpop.permute.xlu0 %1398  ;;  %v6908_v19 = vld [vmem:[#allocation2 + $0xa8] sm:$0xff]   ;;  %v6909_v7 = vld [vmem:[#allocation2 + $0xb0] sm:$0xff]  }
 0x1fc   :  { %v1591_v16 = vsel %vm1498_vm6, %v1173_v13, %v1399_v34  ;;  %v6910_v34 = vld [vmem:[#allocation2 + $0xa8] sm:$0xff]   ;;  %v6917_v13 = vld [vmem:[#allocation2 + $0xd0] sm:$0xff]  }
 0x1fe   :  { %v6864_v28 = vld [vmem:[#allocation2 + $0x100] sm:$0xff]  }
 0x1ff   :  { %v1497_v10 = vpop.permute.xlu0 %1496 }
 0x200   :  { %v1659_v37 = vsel %vm1595_vm7, %v1594_v9, %v1497_v10  ;;  %v6912_v9 = vld [vmem:[#allocation2 + $0xb8] sm:$0xff]   ;;  %v6913_v10 = vld [vmem:[#allocation2 + $0xc0] sm:$0xff]  }
 0x201   :  { %v5473_v15 = vcombine.low %v1659_v37, %v1659_v37  ;;  %v5474_v46 = vcombine.high %v1659_v37, %v1659_v37  ;;  %v6914_v37 = vld [vmem:[#allocation2 + $0xb8] sm:$0xff]  }
 0x202   :  { %v6863_v0 = vld [vmem:[#allocation2 + $0xf8] sm:$0xff]  }
 0x203   :  { %1957 = vst.msk [vmem:[#allocation2 + $0x110] sm:$0xf] %vm1660_vm8, %v5473_v15  ;;  %1958 = vst.msk [vmem:[#allocation2 + $0x114] sm:$0xf] %vm1660_vm8, %v5474_v46  ;;  %v1495_v4 = vpop.permute.xlu0 %1494  ;;  %6537 = vmatprep.mubr.msk.bf16.mxu1 %vm2319_vm9, %v6863_v0  ;;  %v6915_v15 = vld [vmem:[#allocation2 + $0xc0] sm:$0xff]   ;;  %v6916_v46 = vld [vmem:[#allocation2 + $0xc8] sm:$0xff]  }
 0x204   :  { %v1657_v26 = vsel %vm1595_vm7, %v1591_v16, %v1495_v4  ;;  %6538 = vmatmul.mubr.msk.bf16.gmra.mxu1 %vm2319_vm9, %v6864_v28  ;;  %v6919_v0 = vld [vmem:[#allocation2 + $0xc8] sm:$0xff]   ;;  %v6920_v16 = vld [vmem:[#allocation2 + $0xd0] sm:$0xff]   ;;  %v6921_v4 = vld [vmem:[#allocation2 + $0xd8] sm:$0xff]  }
 0x205   :  { %v5471_v59 = vcombine.low %v1657_v26, %v1657_v26  ;;  %v5472_v22 = vcombine.high %v1657_v26, %v1657_v26  ;;  %v6922_v28 = vld [vmem:[#allocation2 + $0xe0] sm:$0xff]  }
 0x207   :  { %1955 = vst.msk [vmem:[#allocation2 + $0x108] sm:$0xf] %vm1660_vm8, %v5471_v59  ;;  %1956 = vst.msk [vmem:[#allocation2 + $0x10c] sm:$0xf] %vm1660_vm8, %v5472_v22  ;;  %v1459_v25 = vpop.permute.xlu0 %1458  ;;  %v6923_v59 = vld [vmem:[#allocation2 + $0xd8] sm:$0xff]   ;;  %v6924_v22 = vld [vmem:[#allocation2 + $0xe0] sm:$0xff]  }
 0x208   :  { %v1621_v41 = vsel %vm1595_vm7, %v1537_v2, %v1459_v25  ;;  %v6925_v25 = vld [vmem:[#allocation2 + $0xe8] sm:$0xff]  }
 0x209   :  { %v5435_v55 = vcombine.low %v1621_v41, %v1621_v41  ;;  %v5436_v5 = vcombine.high %v1621_v41, %v1621_v41  ;;  %v6926_v41 = vld [vmem:[#allocation2 + $0xf0] sm:$0xff]  }
 0x20a   :  { %v6868_v60 = vld [vmem:[#allocation2 + $0x110] sm:$0xff]  }
 0x20b   :  { %1919 = vst.msk [vmem:[#allocation2 + $0x68] sm:$0xf] %vm1660_vm8, %v5435_v55  ;;  %1920 = vst.msk [vmem:[#allocation2 + $0x6c] sm:$0xf] %vm1660_vm8, %v5436_v5 }
 0x20e   :  { %v6867_v52 = vld [vmem:[#allocation2 + $0x108] sm:$0xff]  }
 0x20f   :  { %6541 = vmatprep.mubr.msk.bf16.mxu1 %vm2319_vm9, %v6867_v52  ;;  %v6928_v52 = vld [vmem:[#allocation2 + $0xf0] sm:$0xff]  }
 0x210   :  { %6542 = vmatmul.mubr.msk.bf16.gmra.mxu1 %vm2319_vm9, %v6868_v60 }
 0x211   :  { %6557 = vmatprep.mubr.msk.bf16.mxu1 %vm2319_vm9, %v6873_v3  ;;  %v6927_v3 = vld [vmem:[#allocation2 + $0xe8] sm:$0xff]  }
 0x212   :  { %v6870_v61 = vld [vmem:[#allocation2 + $0x68] sm:$0xff]  }
 0x213   :  { %6505 = vmatprep.mubr.msk.bf16.mxu0 %vm2319_vm9, %v6870_v61  ;;  %v6896_v11 = vld [vmem:[#allocation2 + $0x68] sm:$0xff]  }
 0x214   :  { %6506 = vmatmul.mubr.msk.bf16.gmra.mxu0 %vm2319_vm9, %v6871_v27  ;;  %v6898_v63 = vld [vmem:[#allocation2 + $0x68] sm:$0xff]  }
 0x215   :  { %6633 = vmatprep.mubr.msk.bf16.mxu0 %vm2319_vm9, %v6872_v43  ;;  %v6929_v43 = vld [vmem:[#allocation2 + $0xf8] sm:$0xff]  }
 0x218   :  { %6558 = vmatmul.mubr.msk.bf16.vlgmr.msra.gmra.mxu1 %vm2319_vm9, %v6874_v50  ;;  %v6930_v50 = vld [vmem:[#allocation2 + $0x100] sm:$0xff]  }
 0x219   :  { %6561 = vmatprep.mubr.msk.bf16.mxu1 %vm2319_vm9, %v6875_v39  ;;  %6698 = vmatpush3.bf16.msra.mxu1 %v7995_v21  ;;  %v6892_v21 = vld [vmem:[#allocation2 + $0x58] sm:$0xff]  }
 0x21a   :  { %6699 = vmatprep.subr.bf16.mxu1 %v6937_v24 }
 0x21c   :  { %6634 = vmatmul.mubr.msk.bf16.vlgmr.msra.gmra.mxu0 %vm2319_vm9, %v6876_v18 }
 0x21d   :  { %6637 = vmatprep.mubr.msk.bf16.mxu0 %vm2319_vm9, %v6877_v17  ;;  %6700 = vmatpush3.bf16.msra.mxu1 %v6937_v24 }
 0x220   :  { %6562 = vmatmul.mubr.msk.bf16.gmra.mxu1 %vm2319_vm9, %v6878_v42  ;;  %v6931_v42 = vld [vmem:[#allocation2 + $0xf8] sm:$0xff]  }
 0x221   :  { %6565 = vmatprep.mubr.msk.bf16.mxu1 %vm2319_vm9, %v6879_v33  ;;  %v6932_v33 = vld [vmem:[#allocation2 + $0x100] sm:$0xff]  }
 0x224   :  { %6638 = vmatmul.mubr.msk.bf16.gmra.mxu0 %vm2319_vm9, %v6880_v20 }
 0x225   :  { %6641 = vmatprep.mubr.msk.bf16.mxu0 %vm2319_vm9, %v6881_v44 }
 0x228   :  { %6566 = vmatmul.mubr.msk.bf16.gmra.mxu1 %vm2319_vm9, %v6882_v58  ;;  %v6933_v58 = vld [vmem:[#allocation2 + $0x108] sm:$0xff]  }
 0x229   :  { %6569 = vmatprep.mubr.msk.bf16.mxu1 %vm2319_vm9, %v6883_v40  ;;  %v6934_v40 = vld [vmem:[#allocation2 + $0x110] sm:$0xff]  }
 0x22c   :  { %6642 = vmatmul.mubr.msk.bf16.gmra.mxu0 %vm2319_vm9, %v6884_v45 }
 0x22d   :  { %6645 = vmatprep.mubr.msk.bf16.mxu0 %vm2319_vm9, %v6885_v62 }
 0x230   :  { %6570 = vmatmul.mubr.msk.bf16.gmra.mxu1 %vm2319_vm9, %v6886_v32  ;;  %v6935_v32 = vld [vmem:[#allocation2 + $0x108] sm:$0xff]  }
 0x231   :  { %6573 = vmatprep.mubr.msk.bf16.mxu1 %vm2319_vm9, %v6887_v6  ;;  %v6936_v6 = vld [vmem:[#allocation2 + $0x118] sm:$0xff]  }
 0x234   :  { %6646 = vmatmul.mubr.msk.bf16.gmra.mxu0 %vm2319_vm9, %v6888_v49 }
 0x235   :  { %6649 = vmatprep.mubr.msk.bf16.mxu0 %vm2319_vm9, %v6889_v57 }
 0x238   :  { %6574 = vmatmul.mubr.msk.bf16.gmra.mxu1 %vm2319_vm9, %v6890_v54  ;;  %v8114_v60 = vpop.f32.mrf.mxu0 }
 0x239   :  { %6577 = vmatprep.mubr.msk.bf16.mxu1 %vm2319_vm9, %v6891_v56 }
 0x23a   :  { %v8122_v39 = vpop.f32.mrf.mxu0 }
 0x23c   :  { %6650 = vmatmul.mubr.msk.bf16.gmra.mxu0 %vm2319_vm9, %v6892_v21  ;;  %v8130_v20 = vpop.f32.mrf.mxu0 }
 0x23d   :  { %6653 = vmatprep.mubr.msk.bf16.mxu0 %vm2319_vm9, %v6893_v53 }
 0x23e   :  { %v8136_v45 = vpop.f32.mrf.mxu0 }
 0x240   :  { %6578 = vmatmul.mubr.msk.bf16.gmra.mxu1 %vm2319_vm9, %v6894_v23 }
 0x241   :  { %6581 = vmatprep.mubr.msk.bf16.mxu1 %vm2319_vm9, %v6895_v29  ;;  %v8140_v62 = vpop.f32.mrf.mxu0 }
 0x243   :  { %v8145_v49 = vpop.f32.mrf.mxu0 }
 0x244   :  { %6654 = vmatmul.mubr.msk.bf16.gmra.mxu0 %vm2319_vm9, %v6896_v11 }
 0x245   :  { %6657 = vmatprep.mubr.msk.bf16.mxu0 %vm2319_vm9, %v6897_v30  ;;  %v8152_v56 = vpop.f32.mrf.mxu0 }
 0x247   :  { %v8156_v53 = vpop.f32.mrf.mxu0 }
 0x248   :  { %6582 = vmatmul.mubr.msk.bf16.gmra.mxu1 %vm2319_vm9, %v6898_v63 }
 0x249   :  { %6585 = vmatprep.mubr.msk.bf16.mxu1 %vm2319_vm9, %v6899_v48 }
 0x24c   :  { %6658 = vmatmul.mubr.msk.bf16.gmra.mxu0 %vm2319_vm9, %v6900_v31 }
 0x24d   :  { %6661 = vmatprep.mubr.msk.bf16.mxu0 %vm2319_vm9, %v6901_v14  ;;  %v8160_v29 = vpop.f32.mrf.mxu0 }
 0x24f   :  { %v8164_v30 = vpop.f32.mrf.mxu0 }
 0x250   :  { %6586 = vmatmul.mubr.msk.bf16.gmra.mxu1 %vm2319_vm9, %v6902_v12 }
 0x251   :  { %6589 = vmatprep.mubr.msk.bf16.mxu1 %vm2319_vm9, %v6905_v8  ;;  %v8170_v31 = vpop.f32.mrf.mxu0 }
 0x253   :  { %v8174_v8 = vpop.f32.mrf.mxu0 }
 0x254   :  { %6662 = vmatmul.mubr.msk.bf16.gmra.mxu0 %vm2319_vm9, %v6903_v36 }
 0x255   :  { %6665 = vmatprep.mubr.msk.bf16.mxu0 %vm2319_vm9, %v6904_v1 }
 0x258   :  { %6590 = vmatmul.mubr.msk.bf16.gmra.mxu1 %vm2319_vm9, %v6906_v51 }
 0x259   :  { %6593 = vmatprep.mubr.msk.bf16.mxu1 %vm2319_vm9, %v6907_v38  ;;  %v8176_v12 = vpop.f32.mrf.mxu0 }
 0x25b   :  { %v8182_v51 = vpop.f32.mrf.mxu0 }
 0x25c   :  { %6666 = vmatmul.mubr.msk.bf16.gmra.mxu0 %vm2319_vm9, %v6908_v19 }
 0x25d   :  { %6669 = vmatprep.mubr.msk.bf16.mxu0 %vm2319_vm9, %v6909_v7  ;;  %v8186_v19 = vpop.f32.mrf.mxu0 }
 0x260   :  { %6594 = vmatmul.mubr.msk.bf16.gmra.mxu1 %vm2319_vm9, %v6910_v34  ;;  %v8190_v34 = vpop.f32.mrf.mxu0 }
 0x261   :  { %6597 = vmatprep.mubr.msk.bf16.mxu1 %vm2319_vm9, %v6911_v35 }
 0x264   :  { %6670 = vmatmul.mubr.msk.bf16.gmra.mxu0 %vm2319_vm9, %v6912_v9 }
 0x265   :  { %6673 = vmatprep.mubr.msk.bf16.mxu0 %vm2319_vm9, %v6913_v10 }
 0x268   :  { %6598 = vmatmul.mubr.msk.bf16.gmra.mxu1 %vm2319_vm9, %v6914_v37 }
 0x269   :  { %6601 = vmatprep.mubr.msk.bf16.mxu1 %vm2319_vm9, %v6915_v15 }
 0x26c   :  { %6674 = vmatmul.mubr.msk.bf16.gmra.mxu0 %vm2319_vm9, %v6916_v46 }
 0x26d   :  { %6677 = vmatprep.mubr.msk.bf16.mxu0 %vm2319_vm9, %v6917_v13 }
 0x270   :  { %6602 = vmatmul.mubr.msk.bf16.gmra.mxu1 %vm2319_vm9, %v6919_v0 }
 0x271   :  { %6605 = vmatprep.mubr.msk.bf16.mxu1 %vm2319_vm9, %v6920_v16 }
 0x274   :  { %6678 = vmatmul.mubr.msk.bf16.gmra.mxu0 %vm2319_vm9, %v6921_v4 }
 0x275   :  { %6681 = vmatprep.mubr.msk.bf16.mxu0 %vm2319_vm9, %v6922_v28 }
 0x276   :  { %v8100_v26 = vpop.f32.mrf.mxu1 }
 0x278   :  { %v8102_v47 = vpop.f32.mrf.mxu1  ;;  %6606 = vmatmul.mubr.msk.bf16.gmra.mxu1 %vm2319_vm9, %v6923_v59 }
 0x279   :  { %6609 = vmatprep.mubr.msk.bf16.mxu1 %vm2319_vm9, %v6924_v22 }
 0x27a   :  { %v8106_v2 = vpop.f32.mrf.mxu1 }
 0x27c   :  { %v8108_v55 = vpop.f32.mrf.mxu1  ;;  %6682 = vmatmul.mubr.msk.bf16.gmra.mxu0 %vm2319_vm9, %v6925_v25 }
 0x27d   :  { %6685 = vmatprep.mubr.msk.bf16.mxu0 %vm2319_vm9, %v6926_v41 }
 0x27e   :  { %v8112_v5 = vpop.f32.mrf.mxu1 }
 0x280   :  { %v8116_v61 = vpop.f32.mrf.mxu1  ;;  %6610 = vmatmul.mubr.msk.bf16.gmra.mxu1 %vm2319_vm9, %v6927_v3 }
 0x281   :  { %6613 = vmatprep.mubr.msk.bf16.mxu1 %vm2319_vm9, %v6928_v52 }
 0x282   :  { %v8120_v27 = vpop.f32.mrf.mxu1 }
 0x284   :  { %v8124_v18 = vpop.f32.mrf.mxu1  ;;  %6686 = vmatmul.mubr.msk.bf16.gmra.mxu0 %vm2319_vm9, %v6929_v43 }
 0x285   :  { %6689 = vmatprep.mubr.msk.bf16.mxu0 %vm2319_vm9, %v6930_v50 }
 0x286   :  { %v8128_v17 = vpop.f32.mrf.mxu1 }
 0x288   :  { %6614 = vmatmul.mubr.msk.bf16.gmra.mxu1 %vm2319_vm9, %v6931_v42  ;;  %v8134_v44 = vpop.f32.mrf.mxu1 }
 0x289   :  { %6617 = vmatprep.mubr.msk.bf16.mxu1 %vm2319_vm9, %v6932_v33  ;;  %v8194_v9 = vpop.f32.mrf.mxu0 }
 0x28a   :  { %v8142_v24 = vpop.f32.mrf.mxu1 }
 0x28b   :  { %v8200_v15 = vpop.f32.mrf.mxu0 }
 0x28c   :  { %6690 = vmatmul.mubr.msk.bf16.gmra.mxu0 %vm2319_vm9, %v6933_v58  ;;  %v8147_v57 = vpop.f32.mrf.mxu1 }
 0x28d   :  { %6693 = vmatprep.mubr.msk.bf16.mxu0 %vm2319_vm9, %v6934_v40  ;;  %v8204_v13 = vpop.f32.mrf.mxu0 }
 0x28f   :  { %v8208_v16 = vpop.f32.mrf.mxu0 }
 0x290   :  { %6618 = vmatmul.mubr.msk.bf16.gmra.mxu1 %vm2319_vm9, %v6935_v32 }
 0x294   :  { %v8149_v54 = vpop.f32.mrf.mxu1  ;;  %6694 = vmatmul.mubr.msk.bf16.gmra.mxu0 %vm2319_vm9, %v6936_v6 }
 0x296   :  { %v8154_v21 = vpop.f32.mrf.mxu1 }
 0x298   :  { %v8158_v23 = vpop.f32.mrf.mxu1 }
 0x29a   :  { %v8162_v11 = vpop.f32.mrf.mxu1 }
 0x29b   :  { %8742 = vst [vmem:[#allocation6_spill] sm:$0xff] %v8162_v11 }
 0x2a0   :  { %v8166_v63 = vpop.f32.mrf.mxu1 }
 0x2a1   :  { %8743 = vst [vmem:[#allocation7_spill] sm:$0xff] %v8166_v63  ;;  %v8212_v28 = vpop.f32.mrf.mxu0 }
 0x2a2   :  { %v8168_v48 = vpop.f32.mrf.mxu1 }
 0x2a3   :  { %8744 = vst [vmem:[#allocation8_spill] sm:$0xff] %v8168_v48  ;;  %v8216_v22 = vpop.f32.mrf.mxu0 }
 0x2a4   :  { %v8172_v14 = vpop.f32.mrf.mxu1 }
 0x2a5   :  { %8745 = vst [vmem:[#allocation9_spill] sm:$0xff] %v8172_v14  ;;  %v8220_v41 = vpop.f32.mrf.mxu0 }
 0x2a6   :  { %v8178_v36 = vpop.f32.mrf.mxu1 }
 0x2a7   :  { %8746 = vst [vmem:[#allocation10_spill] sm:$0xff] %v8178_v36  ;;  %v8226_v43 = vpop.f32.mrf.mxu0 }
 0x2ac   :  { %v8180_v1 = vpop.f32.mrf.mxu1 }
 0x2ad   :  { %8747 = vst [vmem:[#allocation11_spill] sm:$0xff] %v8180_v1 }
 0x2ae   :  { %v8184_v38 = vpop.f32.mrf.mxu1 }
 0x2af   :  { %8748 = vst [vmem:[#allocation12_spill] sm:$0xff] %v8184_v38 }
 0x2b0   :  { %v8188_v7 = vpop.f32.mrf.mxu1 }
 0x2b1   :  { %8749 = vst [vmem:[#allocation13_spill] sm:$0xff] %v8188_v7 }
 0x2b2   :  { %v8192_v35 = vpop.f32.mrf.mxu1 }
 0x2b3   :  { %8750 = vst [vmem:[#allocation14_spill] sm:$0xff] %v8192_v35 }
 0x2b8   :  { %v8196_v10 = vpop.f32.mrf.mxu1 }
 0x2b9   :  { %8751 = vst [vmem:[#allocation15_spill] sm:$0xff] %v8196_v10 }
 0x2ba   :  { %v8198_v37 = vpop.f32.mrf.mxu1 }
 0x2bb   :  { %8752 = vst [vmem:[#allocation16_spill] sm:$0xff] %v8198_v37 }
 0x2bc   :  { %v8202_v46 = vpop.f32.mrf.mxu1 }
 0x2bd   :  { %8753 = vst [vmem:[#allocation17_spill] sm:$0xff] %v8202_v46 }
 0x2be   :  { %v8206_v0 = vpop.f32.mrf.mxu1 }
 0x2bf   :  { %8754 = vst [vmem:[#allocation18_spill] sm:$0xff] %v8206_v0 }
 0x2c4   :  { %v8210_v4 = vpop.f32.mrf.mxu1 }
 0x2c5   :  { %8755 = vst [vmem:[#allocation19_spill] sm:$0xff] %v8210_v4 }
 0x2c6   :  { %v8214_v59 = vpop.f32.mrf.mxu1 }
 0x2c7   :  { %8756 = vst [vmem:[#allocation20_spill] sm:$0xff] %v8214_v59 }
 0x2c8   :  { %v8218_v25 = vpop.f32.mrf.mxu1 }
 0x2c9   :  { %8757 = vst [vmem:[#allocation21_spill] sm:$0xff] %v8218_v25 }
 0x2ca   :  { %v8222_v3 = vpop.f32.mrf.mxu1 }
 0x2cb   :  { %8758 = vst [vmem:[#allocation22_spill] sm:$0xff] %v8222_v3 }
 0x2d0   :  { %v8224_v52 = vpop.f32.mrf.mxu1 }
 0x2d1   :  { %8759 = vst [vmem:[#allocation23_spill] sm:$0xff] %v8224_v52 }
 0x2d2   :  { %v8228_v50 = vpop.f32.mrf.mxu1 }
 0x2d3   :  { %8760 = vst [vmem:[#allocation24_spill] sm:$0xff] %v8228_v50 }
 0x2d4   :  { %v8230_v42 = vpop.f32.mrf.mxu0  ;;  %v8232_v33 = vpop.f32.mrf.mxu1 }
 0x2d5   :  { %8761 = vst [vmem:[#allocation25_spill] sm:$0xff] %v8232_v33 }
 0x2d6   :  { %v8234_v58 = vpop.f32.mrf.mxu0  ;;  %v8236_v40 = vpop.f32.mrf.mxu1 }
 0x2d7   :  { %8762 = vst [vmem:[#allocation26_spill] sm:$0xff] %v8236_v40  ;;  %v8248_v40 = vld [vmem:[%s8721_s6] ss:$0 sm:$0xff] }
 0x2d8   :  { %v8238_v32 = vpop.f32.mrf.mxu0  ;;  %v6559_v6 = vpop.f32.mrf.mxu1 }
 0x2d9   :  { %v3040_v52 = vadd.f32 %v6559_v6, %v8114_v60 }
 0x2da   :  { %v8240_v25 = vpop.f32.mrf.mxu0  ;;  %v3031_v3 = vpop.f32.mrf.mxu1 }
 0x2db   :  { %v3032_v50 = vadd.f32 %v3031_v3, %v8122_v39 }
 0x2dc   :  { %v6560_v59 = vpop.f32.mrf.mxu1  ;;  %v6635_v4 = vpop.f32.mrf.mxu0 }
 0x2dd   :  { %v3934_v0 = vadd.f32 %v6635_v4, %v3040_v52  ;;  %v3043_v33 = vadd.f32 %v6560_v59, %v8130_v20  ;;  %v8256_v20 = vld [vmem:[%s8722_s7] ss:$0 sm:$0xff] }
 0x2de   :  { %v3034_v46 = vpop.f32.mrf.mxu1  ;;  %v3677_v37 = vpop.f32.mrf.mxu0 }
 0x2df   :  { %v3932_v10 = vadd.f32 %v3677_v37, %v3032_v50  ;;  %v4005_v60 = vmul.f32 %v8248_v40, %v3934_v0  ;;  %v3035_v6 = vadd.f32 %v3034_v46, %v8136_v45 }
 0x2e0   :  { %v6563_v35 = vpop.f32.mrf.mxu1  ;;  %v6636_v7 = vpop.f32.mrf.mxu0 }
 0x2e1   :  { %v3935_v38 = vadd.f32 %v6636_v7, %v3043_v33  ;;  %v4003_v39 = vmul.f32 %v8248_v40, %v3932_v10  ;;  %v3056_v7 = vadd.f32 %v6563_v35, %v8140_v62  ;;  %v4076_v10 = vadd.f32 %v8256_v20, %v4005_v60 }
 0x2e2   :  { %v3047_v4 = vpop.f32.mrf.mxu1  ;;  %v3680_v3 = vpop.f32.mrf.mxu0 }
 0x2e3   :  { %v4006_v59 = vmul.f32 %v8248_v40, %v3935_v38  ;;  %v3933_v52 = vadd.f32 %v3680_v3, %v3035_v6  ;;  %v3048_v45 = vadd.f32 %v3047_v4, %v8145_v49  ;;  %v4074_v46 = vadd.f32 %v8256_v20, %v4003_v39 }
 0x2e4   :  { %v6564_v37 = vpop.f32.mrf.mxu1  ;;  %v6639_v50 = vpop.f32.mrf.mxu0  ;;  %v4140_v60 = vmax.f32 %v4076_v10, 0.0 }
 0x2e5   :  { %v4077_v0 = vadd.f32 %v8256_v20, %v4006_v59  ;;  %v4004_v33 = vmul.f32 %v8248_v40, %v3933_v52  ;;  %v3938_v14 = vadd.f32 %v6639_v50, %v3056_v7  ;;  %v3059_v3 = vadd.f32 %v6564_v37, %v8152_v56 }
 0x2e6   :  { %v3050_v1 = vpop.f32.mrf.mxu1  ;;  %v3693_v36 = vpop.f32.mrf.mxu0  ;;  %v4138_v4 = vmax.f32 %v4074_v46, 0.0 }
 0x2e7   :  { %v3936_v48 = vadd.f32 %v3693_v36, %v3048_v45  ;;  %v4141_v38 = vmax.f32 %v4077_v0, 0.0  ;;  %v4075_v6 = vadd.f32 %v8256_v20, %v4004_v33  ;;  %v3051_v59 = vadd.f32 %v3050_v1, %v8156_v53 }
 0x2e8   :  { %v6567_v62 = vpop.f32.mrf.mxu1  ;;  %v6640_v35 = vpop.f32.mrf.mxu0  ;;  %v4009_v50 = vmul.f32 %v8248_v40, %v3938_v14 }
 0x2e9   :  { %v4007_v49 = vmul.f32 %v8248_v40, %v3936_v48  ;;  %v4139_v39 = vmax.f32 %v4075_v6, 0.0  ;;  %v3939_v63 = vadd.f32 %v6640_v35, %v3059_v3  ;;  %v4203_v7 = vpack.c.bf16 %v4141_v38, %v4140_v60 }
 0x2ea   :  { %v3063_v52 = vpop.f32.mrf.mxu1  ;;  %v3696_v11 = vpop.f32.mrf.mxu0  ;;  %v3072_v53 = vadd.f32 %v6567_v62, %v8160_v29  ;;  %v4080_v46 = vadd.f32 %v8256_v20, %v4009_v50 }
 0x2eb   :  { %v3937_v36 = vadd.f32 %v3696_v11, %v3051_v59  ;;  %v4202_v0 = vpack.c.bf16 %v4139_v39, %v4138_v4  ;;  %v4010_v45 = vmul.f32 %v8248_v40, %v3939_v63  ;;  %v4078_v33 = vadd.f32 %v8256_v20, %v4007_v49 }
 0x2ec   :  { %v6568_v56 = vpop.f32.mrf.mxu1  ;;  %v6643_v37 = vpop.f32.mrf.mxu0  ;;  %v3064_v48 = vadd.f32 %v3063_v52, %v8164_v30  ;;  %v4144_v50 = vmax.f32 %v4080_v46, 0.0 }
 0x2ed   :  { %v4008_v1 = vmul.f32 %v8248_v40, %v3937_v36  ;;  %v4081_v10 = vadd.f32 %v8256_v20, %v4010_v45  ;;  %6701 = vmatprep.mubr.msk.bf16.mxu1 %vm1498_vm6, %v4202_v0  ;;  %v3942_v38 = vadd.f32 %v6643_v37, %v3072_v53  ;;  %v3075_v29 = vadd.f32 %v6568_v56, %v8170_v31 }
 0x2ee   :  { %v3066_v14 = vpop.f32.mrf.mxu1  ;;  %v3709_v11 = vpop.f32.mrf.mxu0  ;;  %6702 = vmatmul.mubr.msk.bf16.vlgmr.msra.gmra.mxu1 %vm1498_vm6, %v4203_v7  ;;  %v4142_v62 = vmax.f32 %v4078_v33, 0.0 }
 0x2ef   :  { %v4079_v63 = vadd.f32 %v8256_v20, %v4008_v1  ;;  %v3940_v6 = vadd.f32 %v3709_v11, %v3064_v48  ;;  %v4145_v35 = vmax.f32 %v4081_v10, 0.0  ;;  %v3067_v60 = vadd.f32 %v3066_v14, %v8174_v8 }
 0x2f0   :  { %v6571_v3 = vpop.f32.mrf.mxu1  ;;  %v6644_v30 = vpop.f32.mrf.mxu0  ;;  %v4013_v0 = vmul.f32 %v8248_v40, %v3942_v38 }
 0x2f1   :  { %v4143_v59 = vmax.f32 %v4079_v63, 0.0  ;;  %v4011_v49 = vmul.f32 %v8248_v40, %v3940_v6  ;;  %v3943_v4 = vadd.f32 %v6644_v30, %v3075_v29  ;;  %v3088_v7 = vadd.f32 %v6571_v3, %v8176_v12 }
 0x2f2   :  { %v3079_v39 = vpop.f32.mrf.mxu1  ;;  %v3712_v52 = vpop.f32.mrf.mxu0  ;;  %v4205_v33 = vpack.c.bf16 %v4145_v35, %v4144_v50  ;;  %v4084_v12 = vadd.f32 %v8256_v20, %v4013_v0 }
 0x2f3   :  { %v4204_v36 = vpack.c.bf16 %v4143_v59, %v4142_v62  ;;  %v4014_v31 = vmul.f32 %v8248_v40, %v3943_v4  ;;  %v3941_v45 = vadd.f32 %v3712_v52, %v3067_v60  ;;  %v4082_v53 = vadd.f32 %v8256_v20, %v4011_v49 }
 0x2f4   :  { %v6572_v56 = vpop.f32.mrf.mxu1  ;;  %v6647_v37 = vpop.f32.mrf.mxu0  ;;  %v3080_v48 = vadd.f32 %v3079_v39, %v8182_v51 }
 0x2f5   :  { %6705 = vmatprep.mubr.msk.bf16.mxu1 %vm1498_vm6, %v4204_v36  ;;  %v4085_v8 = vadd.f32 %v8256_v20, %v4014_v31  ;;  %v4012_v1 = vmul.f32 %v8248_v40, %v3941_v45  ;;  %v3946_v10 = vadd.f32 %v6647_v37, %v3088_v7  ;;  %v3091_v46 = vadd.f32 %v6572_v56, %v8186_v19 }
 0x2f6   :  { %v3082_v14 = vpop.f32.mrf.mxu1  ;;  %v3725_v11 = vpop.f32.mrf.mxu0  ;;  %6706 = vmatmul.mubr.msk.bf16.gmra.mxu1 %vm1498_vm6, %v4205_v33  ;;  %v4146_v29 = vmax.f32 %v4082_v53, 0.0  ;;  %v4148_v19 = vmax.f32 %v4084_v12, 0.0 }
 0x2f7   :  { %v3944_v63 = vadd.f32 %v3725_v11, %v3080_v48  ;;  %v4083_v38 = vadd.f32 %v8256_v20, %v4012_v1  ;;  %v4149_v3 = vmax.f32 %v4085_v8, 0.0  ;;  %v4017_v35 = vmul.f32 %v8248_v40, %v3946_v10 }
 0x2f8   :  { %v6575_v6 = vpop.f32.mrf.mxu1  ;;  %v6648_v51 = vpop.f32.mrf.mxu0  ;;  %v3083_v59 = vadd.f32 %v3082_v14, %v8190_v34 }
 0x2f9   :  { %v3947_v30 = vadd.f32 %v6648_v51, %v3091_v46  ;;  %v4147_v62 = vmax.f32 %v4083_v38, 0.0  ;;  %v4015_v49 = vmul.f32 %v8248_v40, %v3944_v63  ;;  %v4207_v7 = vpack.c.bf16 %v4149_v3, %v4148_v19 }
 0x2fa   :  { %v3095_v60 = vpop.f32.mrf.mxu1  ;;  %v3728_v4 = vpop.f32.mrf.mxu0  ;;  %v3104_v31 = vadd.f32 %v6575_v6, %v8194_v9  ;;  %v4088_v34 = vadd.f32 %v8256_v20, %v4017_v35 }
 0x2fb   :  { %v4018_v39 = vmul.f32 %v8248_v40, %v3947_v30  ;;  %v4206_v52 = vpack.c.bf16 %v4147_v62, %v4146_v29  ;;  %v3945_v50 = vadd.f32 %v3728_v4, %v3083_v59  ;;  %v3096_v56 = vadd.f32 %v3095_v60, %v8200_v15 }
 0x2fc   :  { %v6576_v36 = vpop.f32.mrf.mxu1  ;;  %v6651_v0 = vpop.f32.mrf.mxu0  ;;  %v4086_v37 = vadd.f32 %v8256_v20, %v4015_v49  ;;  %v4152_v63 = vmax.f32 %v4088_v34, 0.0 }
 0x2fd   :  { %v4089_v45 = vadd.f32 %v8256_v20, %v4018_v39  ;;  %v4016_v33 = vmul.f32 %v8248_v40, %v3945_v50  ;;  %6709 = vmatprep.mubr.msk.bf16.mxu1 %vm1498_vm6, %v4206_v52  ;;  %v3950_v8 = vadd.f32 %v6651_v0, %v3104_v31  ;;  %v3107_v14 = vadd.f32 %v6576_v36, %v8204_v13 }
 0x2fe   :  { %v3098_v53 = vpop.f32.mrf.mxu1  ;;  %v3741_v48 = vpop.f32.mrf.mxu0  ;;  %6710 = vmatmul.mubr.msk.bf16.gmra.mxu1 %vm1498_vm6, %v4207_v7  ;;  %v4150_v38 = vmax.f32 %v4086_v37, 0.0 }
 0x2ff   :  { %v3948_v1 = vadd.f32 %v3741_v48, %v3096_v56  ;;  %v4153_v10 = vmax.f32 %v4089_v45, 0.0  ;;  %v4087_v9 = vadd.f32 %v8256_v20, %v4016_v33  ;;  %v3099_v12 = vadd.f32 %v3098_v53, %v8208_v16 }
 0x300   :  { %v6579_v15 = vpop.f32.mrf.mxu1  ;;  %v6652_v11 = vpop.f32.mrf.mxu0  ;;  %v4021_v30 = vmul.f32 %v8248_v40, %v3950_v8 }
 0x301   :  { %v4019_v46 = vmul.f32 %v8248_v40, %v3948_v1  ;;  %v4151_v6 = vmax.f32 %v4087_v9, 0.0  ;;  %v3951_v51 = vadd.f32 %v6652_v11, %v3107_v14  ;;  %v4209_v35 = vpack.c.bf16 %v4153_v10, %v4152_v63 }
 0x302   :  { %v3111_v29 = vpop.f32.mrf.mxu1  ;;  %v3744_v3 = vpop.f32.mrf.mxu0  ;;  %v3120_v16 = vadd.f32 %v6579_v15, %v8212_v28  ;;  %v4092_v0 = vadd.f32 %v8256_v20, %v4021_v30 }
 0x303   :  { %v3949_v62 = vadd.f32 %v3744_v3, %v3099_v12  ;;  %v4208_v59 = vpack.c.bf16 %v4151_v6, %v4150_v38  ;;  %v4022_v49 = vmul.f32 %v8248_v40, %v3951_v51  ;;  %v4090_v4 = vadd.f32 %v8256_v20, %v4019_v46 }
 0x304   :  { %v6580_v13 = vpop.f32.mrf.mxu1  ;;  %v6655_v60 = vpop.f32.mrf.mxu0  ;;  %v3112_v19 = vadd.f32 %v3111_v29, %v8216_v22  ;;  %v4156_v9 = vmax.f32 %v4092_v0, 0.0 }
 0x305   :  { %v4020_v39 = vmul.f32 %v8248_v40, %v3949_v62  ;;  %v4093_v52 = vadd.f32 %v8256_v20, %v4022_v49  ;;  %6713 = vmatprep.mubr.msk.bf16.mxu1 %vm1498_vm6, %v4208_v59  ;;  %v3954_v31 = vadd.f32 %v6655_v60, %v3120_v16  ;;  %v3123_v28 = vadd.f32 %v6580_v13, %v8220_v41 }
 0x306   :  { %v3114_v50 = vpop.f32.mrf.mxu1  ;;  %v3757_v36 = vpop.f32.mrf.mxu0  ;;  %6714 = vmatmul.mubr.msk.bf16.gmra.mxu1 %vm1498_vm6, %v4209_v35  ;;  %v4154_v34 = vmax.f32 %v4090_v4, 0.0 }
 0x307   :  { %v4091_v7 = vadd.f32 %v8256_v20, %v4020_v39  ;;  %v3952_v45 = vadd.f32 %v3757_v36, %v3112_v19  ;;  %v4157_v37 = vmax.f32 %v4093_v52, 0.0  ;;  %v3115_v48 = vadd.f32 %v3114_v50, %v8226_v43 }
 0x308   :  { %v6583_v56 = vpop.f32.mrf.mxu1  ;;  %v6656_v22 = vpop.f32.mrf.mxu0  ;;  %v4025_v15 = vmul.f32 %v8248_v40, %v3954_v31 }
 0x309   :  { %v4155_v33 = vmax.f32 %v4091_v7, 0.0  ;;  %v4023_v53 = vmul.f32 %v8248_v40, %v3952_v45  ;;  %v3955_v8 = vadd.f32 %v6656_v22, %v3123_v28  ;;  %v3136_v11 = vadd.f32 %v6583_v56, %v8230_v42 }
 0x30a   :  { %v3127_v1 = vpop.f32.mrf.mxu1  ;;  %v3760_v10 = vpop.f32.mrf.mxu0  ;;  %v4211_v38 = vpack.c.bf16 %v4157_v37, %v4156_v9  ;;  %v4096_v42 = vadd.f32 %v8256_v20, %v4025_v15 }
 0x30b   :  { %v4210_v14 = vpack.c.bf16 %v4155_v33, %v4154_v34  ;;  %v4026_v41 = vmul.f32 %v8248_v40, %v3955_v8  ;;  %v3953_v12 = vadd.f32 %v3760_v10, %v3115_v48  ;;  %v4094_v6 = vadd.f32 %v8256_v20, %v4023_v53 }
 0x30c   :  { %v6584_v46 = vpop.f32.mrf.mxu1  ;;  %v6659_v63 = vpop.f32.mrf.mxu0  ;;  %v3128_v51 = vadd.f32 %v3127_v1, %v8234_v58 }
 0x30d   :  { %6717 = vmatprep.mubr.msk.bf16.mxu1 %vm1498_vm6, %v4210_v14  ;;  %v4097_v43 = vadd.f32 %v8256_v20, %v4026_v41  ;;  %v4024_v29 = vmul.f32 %v8248_v40, %v3953_v12  ;;  %v3958_v3 = vadd.f32 %v6659_v63, %v3136_v11  ;;  %v3139_v35 = vadd.f32 %v6584_v46, %v8238_v32 }
 0x30e   :  { %v3130_v30 = vpop.f32.mrf.mxu1  ;;  %v3773_v62 = vpop.f32.mrf.mxu0  ;;  %6718 = vmatmul.mubr.msk.bf16.gmra.mxu1 %vm1498_vm6, %v4211_v38  ;;  %v4158_v60 = vmax.f32 %v4094_v6, 0.0  ;;  %v4160_v32 = vmax.f32 %v4096_v42, 0.0 }
 0x30f   :  { %v3956_v59 = vadd.f32 %v3773_v62, %v3128_v51  ;;  %v4095_v49 = vadd.f32 %v8256_v20, %v4024_v29  ;;  %v4161_v4 = vmax.f32 %v4097_v43, 0.0  ;;  %v4029_v39 = vmul.f32 %v8248_v40, %v3958_v3 }
 0x310   :  { %v6587_v13 = vpop.f32.mrf.mxu1  ;;  %v6660_v58 = vpop.f32.mrf.mxu0  ;;  %v3131_v52 = vadd.f32 %v3130_v30, %v8240_v25 }
 0x311   :  { %v3959_v16 = vadd.f32 %v6660_v58, %v3139_v35  ;;  %v4159_v19 = vmax.f32 %v4095_v49, 0.0  ;;  %v4027_v50 = vmul.f32 %v8248_v40, %v3956_v59  ;;  %v4213_v22 = vpack.c.bf16 %v4161_v4, %v4160_v32 }
 0x312   :  { %v3143_v36 = vpop.f32.mrf.mxu1  ;;  %v3776_v0 = vpop.f32.mrf.mxu0  ;;  %v3152_v34 = vadd.f32 %v6587_v13, %v8100_v26  ;;  %v4100_v25 = vadd.f32 %v8256_v20, %v4029_v39 }
 0x313   :  { %v4030_v7 = vmul.f32 %v8248_v40, %v3959_v16  ;;  %v4212_v31 = vpack.c.bf16 %v4159_v19, %v4158_v60  ;;  %v3957_v45 = vadd.f32 %v3776_v0, %v3131_v52  ;;  %v3144_v33 = vadd.f32 %v3143_v36, %v8102_v47 }
 0x314   :  { %v6588_v28 = vpop.f32.mrf.mxu1  ;;  %v6663_v56 = vpop.f32.mrf.mxu0  ;;  %v4098_v53 = vadd.f32 %v8256_v20, %v4027_v50  ;;  %v4164_v46 = vmax.f32 %v4100_v25, 0.0 }
 0x315   :  { %v4101_v37 = vadd.f32 %v8256_v20, %v4030_v7  ;;  %v4028_v48 = vmul.f32 %v8248_v40, %v3957_v45  ;;  %6721 = vmatprep.mubr.msk.bf16.mxu1 %vm1498_vm6, %v4212_v31  ;;  %v3962_v10 = vadd.f32 %v6663_v56, %v3152_v34  ;;  %v3155_v15 = vadd.f32 %v6588_v28, %v8106_v2 }
 0x316   :  { %v3146_v8 = vpop.f32.mrf.mxu1  ;;  %v3789_v1 = vpop.f32.mrf.mxu0  ;;  %6722 = vmatmul.mubr.msk.bf16.gmra.mxu1 %vm1498_vm6, %v4213_v22  ;;  %v4162_v63 = vmax.f32 %v4098_v53, 0.0 }
 0x317   :  { %v3960_v9 = vadd.f32 %v3789_v1, %v3144_v33  ;;  %v4165_v14 = vmax.f32 %v4101_v37, 0.0  ;;  %v4099_v26 = vadd.f32 %v8256_v20, %v4028_v48  ;;  %v3147_v41 = vadd.f32 %v3146_v8, %v8108_v55 }
 0x318   :  { %v6591_v47 = vpop.f32.mrf.mxu1  ;;  %v6664_v11 = vpop.f32.mrf.mxu0  ;;  %v4033_v29 = vmul.f32 %v8248_v40, %v3962_v10 }
 0x319   :  { %v4031_v12 = vmul.f32 %v8248_v40, %v3960_v9  ;;  %v4163_v38 = vmax.f32 %v4099_v26, 0.0  ;;  %v3963_v6 = vadd.f32 %v6664_v11, %v3155_v15  ;;  %v4215_v30 = vpack.c.bf16 %v4165_v14, %v4164_v46 }
 0x31a   :  { %v3159_v51 = vpop.f32.mrf.mxu1  ;;  %v3792_v43 = vpop.f32.mrf.mxu0  ;;  %v3168_v55 = vadd.f32 %v6591_v47, %v8112_v5  ;;  %v4104_v16 = vadd.f32 %v8256_v20, %v4033_v29 }
 0x31b   :  { %v3961_v3 = vadd.f32 %v3792_v43, %v3147_v41  ;;  %v4214_v62 = vpack.c.bf16 %v4163_v38, %v4162_v63  ;;  %v4034_v42 = vmul.f32 %v8248_v40, %v3963_v6  ;;  %v4102_v59 = vadd.f32 %v8256_v20, %v4031_v12 }
 0x31c   :  { %v6592_v2 = vpop.f32.mrf.mxu1  ;;  %v6667_v35 = vpop.f32.mrf.mxu0  ;;  %v3160_v49 = vadd.f32 %v3159_v51, %v8116_v61  ;;  %v4168_v22 = vmax.f32 %v4104_v16, 0.0 }
 0x31d   :  { %v4032_v13 = vmul.f32 %v8248_v40, %v3961_v3  ;;  %v4105_v58 = vadd.f32 %v8256_v20, %v4034_v42  ;;  %6725 = vmatprep.mubr.msk.bf16.mxu1 %vm1498_vm6, %v4214_v62  ;;  %v3966_v39 = vadd.f32 %v6667_v35, %v3168_v55  ;;  %v3171_v5 = vadd.f32 %v6592_v2, %v8120_v27 }
 0x31e   :  { %v3162_v60 = vpop.f32.mrf.mxu1  ;;  %v3805_v4 = vpop.f32.mrf.mxu0  ;;  %6726 = vmatmul.mubr.msk.bf16.gmra.mxu1 %vm1498_vm6, %v4215_v30  ;;  %v4166_v36 = vmax.f32 %v4102_v59, 0.0 }
 0x31f   :  { %v4103_v19 = vadd.f32 %v8256_v20, %v4032_v13  ;;  %v3964_v52 = vadd.f32 %v3805_v4, %v3160_v49  ;;  %v4169_v0 = vmax.f32 %v4105_v58, 0.0  ;;  %v3163_v31 = vadd.f32 %v3162_v60, %v8124_v18 }
 0x320   :  { %v6595_v50 = vpop.f32.mrf.mxu1  ;;  %v6668_v61 = vpop.f32.mrf.mxu0  ;;  %v4037_v37 = vmul.f32 %v8248_v40, %v3966_v39 }
 0x321   :  { %v4167_v32 = vmax.f32 %v4103_v19, 0.0  ;;  %v4035_v7 = vmul.f32 %v8248_v40, %v3964_v52  ;;  %v3967_v45 = vadd.f32 %v6668_v61, %v3171_v5  ;;  %v3184_v33 = vadd.f32 %v6595_v50, %v8128_v17 }
 0x322   :  { %v3175_v28 = vpop.f32.mrf.mxu1  ;;  %v3808_v56 = vpop.f32.mrf.mxu0  ;;  %v4217_v8 = vpack.c.bf16 %v4169_v0, %v4168_v22  ;;  %v4108_v17 = vadd.f32 %v8256_v20, %v4037_v37 }
 0x323   :  { %v4216_v34 = vpack.c.bf16 %v4167_v32, %v4166_v36  ;;  %v4038_v27 = vmul.f32 %v8248_v40, %v3967_v45  ;;  %v3965_v25 = vadd.f32 %v3808_v56, %v3163_v31  ;;  %v4106_v1 = vadd.f32 %v8256_v20, %v4035_v7  ;;  %v8763_v36 = vld [vmem:[#allocation6_spill] sm:$0xff] }
 0x324   :  { %v6596_v53 = vpop.f32.mrf.mxu1  ;;  %v6671_v48 = vpop.f32.mrf.mxu0  ;;  %v3176_v10 = vadd.f32 %v3175_v28, %v8134_v44 }
 0x325   :  { %6729 = vmatprep.mubr.msk.bf16.mxu1 %vm1498_vm6, %v4216_v34  ;;  %v4109_v18 = vadd.f32 %v8256_v20, %v4038_v27  ;;  %v4036_v9 = vmul.f32 %v8248_v40, %v3965_v25  ;;  %v3970_v14 = vadd.f32 %v6671_v48, %v3184_v33  ;;  %v3187_v47 = vadd.f32 %v6596_v53, %v8142_v24 }
 0x326   :  { %v3178_v26 = vpop.f32.mrf.mxu1  ;;  %v3821_v15 = vpop.f32.mrf.mxu0  ;;  %6730 = vmatmul.mubr.msk.bf16.gmra.mxu1 %vm1498_vm6, %v4217_v8  ;;  %v4170_v46 = vmax.f32 %v4106_v1, 0.0  ;;  %v4172_v24 = vmax.f32 %v4108_v17, 0.0  ;;  %v8764_v8 = vld [vmem:[#allocation7_spill] sm:$0xff] }
 0x327   :  { %v3968_v11 = vadd.f32 %v3821_v15, %v3176_v10  ;;  %v4107_v41 = vadd.f32 %v8256_v20, %v4036_v9  ;;  %v4173_v63 = vmax.f32 %v4109_v18, 0.0  ;;  %v4041_v51 = vmul.f32 %v8248_v40, %v3970_v14  ;;  %v8765_v10 = vld [vmem:[#allocation8_spill] sm:$0xff] }
 0x328   :  { %v6599_v12 = vpop.f32.mrf.mxu1  ;;  %v6672_v44 = vpop.f32.mrf.mxu0  ;;  %v3179_v43 = vadd.f32 %v3178_v26, %v8147_v57 }
 0x329   :  { %v3971_v38 = vadd.f32 %v6672_v44, %v3187_v47  ;;  %v4171_v6 = vmax.f32 %v4107_v41, 0.0  ;;  %v4039_v29 = vmul.f32 %v8248_v40, %v3968_v11  ;;  %v4219_v55 = vpack.c.bf16 %v4173_v63, %v4172_v24 }
 0x32a   :  { %v3191_v3 = vpop.f32.mrf.mxu1  ;;  %v3824_v30 = vpop.f32.mrf.mxu0  ;;  %v3200_v49 = vadd.f32 %v6599_v12, %v8149_v54  ;;  %v4112_v57 = vadd.f32 %v8256_v20, %v4041_v51  ;;  %v8766_v12 = vld [vmem:[#allocation9_spill] sm:$0xff] }
 0x32b   :  { %v4042_v62 = vmul.f32 %v8248_v40, %v3971_v38  ;;  %v4218_v42 = vpack.c.bf16 %v4171_v6, %v4170_v46  ;;  %v3969_v2 = vadd.f32 %v3824_v30, %v3179_v43  ;;  %v3192_v58 = vadd.f32 %v3191_v3, %v8154_v21 }
 0x32c   :  { %v6600_v35 = vpop.f32.mrf.mxu1  ;;  %v6675_v59 = vpop.f32.mrf.mxu0  ;;  %v4110_v60 = vadd.f32 %v8256_v20, %v4039_v29  ;;  %v4176_v7 = vmax.f32 %v4112_v57, 0.0  ;;  %v8767_v29 = vld [vmem:[#allocation10_spill] sm:$0xff] }
 0x32d   :  { %v4113_v13 = vadd.f32 %v8256_v20, %v4042_v62  ;;  %v4040_v4 = vmul.f32 %v8248_v40, %v3969_v2  ;;  %6733 = vmatprep.mubr.msk.bf16.mxu1 %vm1498_vm6, %v4218_v42  ;;  %v3974_v39 = vadd.f32 %v6675_v59, %v3200_v49  ;;  %v3203_v50 = vadd.f32 %v6600_v35, %v8158_v23  ;;  %v8768_v59 = vld [vmem:[#allocation11_spill] sm:$0xff] }
 0x32e   :  { %v3194_v16 = vpop.f32.mrf.mxu1  ;;  %v3837_v19 = vpop.f32.mrf.mxu0  ;;  %6734 = vmatmul.mubr.msk.bf16.gmra.mxu1 %vm1498_vm6, %v4219_v55  ;;  %v4174_v31 = vmax.f32 %v4110_v60, 0.0 }
 0x32f   :  { %v3972_v52 = vadd.f32 %v3837_v19, %v3192_v58  ;;  %v4177_v5 = vmax.f32 %v4113_v13, 0.0  ;;  %v4111_v54 = vadd.f32 %v8256_v20, %v4040_v4  ;;  %v3195_v0 = vadd.f32 %v3194_v16, %v8763_v36  ;;  %v8769_v16 = vld [vmem:[#allocation12_spill] sm:$0xff] }
 0x330   :  { %v6603_v21 = vpop.f32.mrf.mxu1  ;;  %v6676_v61 = vpop.f32.mrf.mxu0  ;;  %v4045_v34 = vmul.f32 %v8248_v40, %v3974_v39 }
 0x331   :  { %v4043_v32 = vmul.f32 %v8248_v40, %v3972_v52  ;;  %v4175_v45 = vmax.f32 %v4111_v54, 0.0  ;;  %v3975_v28 = vadd.f32 %v6676_v61, %v3203_v50  ;;  %v4221_v33 = vpack.c.bf16 %v4177_v5, %v4176_v7  ;;  %v8770_v61 = vld [vmem:[#allocation13_spill] sm:$0xff] }
 0x332   :  { %v3207_v56 = vpop.f32.mrf.mxu1  ;;  %v3840_v22 = vpop.f32.mrf.mxu0  ;;  %v3216_v1 = vadd.f32 %v6603_v21, %v8764_v8  ;;  %v4116_v17 = vadd.f32 %v8256_v20, %v4045_v34 }
 0x333   :  { %v3973_v37 = vadd.f32 %v3840_v22, %v3195_v0  ;;  %v4220_v27 = vpack.c.bf16 %v4175_v45, %v4174_v31  ;;  %v4046_v25 = vmul.f32 %v8248_v40, %v3975_v28  ;;  %v4114_v48 = vadd.f32 %v8256_v20, %v4043_v32 }
 0x334   :  { %v6604_v23 = vpop.f32.mrf.mxu1  ;;  %v6679_v53 = vpop.f32.mrf.mxu0  ;;  %v3208_v18 = vadd.f32 %v3207_v56, %v8765_v10  ;;  %v4180_v42 = vmax.f32 %v4116_v17, 0.0  ;;  %v8773_v17 = vld [vmem:[#allocation16_spill] sm:$0xff] }
 0x335   :  { %v4044_v9 = vmul.f32 %v8248_v40, %v3973_v37  ;;  %v4117_v14 = vadd.f32 %v8256_v20, %v4046_v25  ;;  %6737 = vmatprep.mubr.msk.bf16.mxu1 %vm1498_vm6, %v4220_v27  ;;  %v3978_v11 = vadd.f32 %v6679_v53, %v3216_v1  ;;  %v3219_v44 = vadd.f32 %v6604_v23, %v8766_v12  ;;  %v8771_v37 = vld [vmem:[#allocation14_spill] sm:$0xff] }
 0x336   :  { %v3210_v26 = vpop.f32.mrf.mxu1  ;;  %v3853_v15 = vpop.f32.mrf.mxu0  ;;  %6738 = vmatmul.mubr.msk.bf16.gmra.mxu1 %vm1498_vm6, %v4221_v33  ;;  %v4178_v38 = vmax.f32 %v4114_v48, 0.0 }
 0x337   :  { %v4115_v47 = vadd.f32 %v8256_v20, %v4044_v9  ;;  %v3976_v41 = vadd.f32 %v3853_v15, %v3208_v18  ;;  %v4181_v6 = vmax.f32 %v4117_v14, 0.0  ;;  %v3211_v3 = vadd.f32 %v3210_v26, %v8767_v29  ;;  %v8772_v14 = vld [vmem:[#allocation15_spill] sm:$0xff] }
 0x338   :  { %v6607_v46 = vpop.f32.mrf.mxu1  ;;  %v6680_v63 = vpop.f32.mrf.mxu0  ;;  %v4049_v35 = vmul.f32 %v8248_v40, %v3978_v11 }
 0x339   :  { %v4179_v51 = vmax.f32 %v4115_v47, 0.0  ;;  %v4047_v43 = vmul.f32 %v8248_v40, %v3976_v41  ;;  %v3979_v30 = vadd.f32 %v6680_v63, %v3219_v44  ;;  %v3232_v55 = vadd.f32 %v6607_v46, %v8768_v59 }
 0x33a   :  { %v3223_v24 = vpop.f32.mrf.mxu1  ;;  %v3856_v62 = vpop.f32.mrf.mxu0  ;;  %v4223_v60 = vpack.c.bf16 %v4181_v6, %v4180_v42  ;;  %v4120_v21 = vadd.f32 %v8256_v20, %v4049_v35 }
 0x33b   :  { %v4222_v2 = vpack.c.bf16 %v4179_v51, %v4178_v38  ;;  %v4050_v49 = vmul.f32 %v8248_v40, %v3979_v30  ;;  %v3977_v13 = vadd.f32 %v3856_v62, %v3211_v3  ;;  %v4118_v4 = vadd.f32 %v8256_v20, %v4047_v43  ;;  %v8774_v43 = vld [vmem:[#allocation17_spill] sm:$0xff] }
 0x33c   :  { %v6608_v58 = vpop.f32.mrf.mxu1  ;;  %v6683_v57 = vpop.f32.mrf.mxu0  ;;  %v3224_v19 = vadd.f32 %v3223_v24, %v8769_v16  ;;  %v4184_v53 = vmax.f32 %v4120_v21, 0.0  ;;  %v8775_v24 = vld [vmem:[#allocation18_spill] sm:$0xff] }
 0x33d   :  { %6741 = vmatprep.mubr.msk.bf16.mxu1 %vm1498_vm6, %v4222_v2  ;;  %v4121_v39 = vadd.f32 %v8256_v20, %v4050_v49  ;;  %v4048_v52 = vmul.f32 %v8248_v40, %v3977_v13  ;;  %v3982_v5 = vadd.f32 %v6683_v57, %v3232_v55  ;;  %v3235_v36 = vadd.f32 %v6608_v58, %v8770_v61 }
 0x33e   :  { %v3226_v54 = vpop.f32.mrf.mxu1  ;;  %v3869_v50 = vpop.f32.mrf.mxu0  ;;  %6742 = vmatmul.mubr.msk.bf16.gmra.mxu1 %vm1498_vm6, %v4223_v60  ;;  %v4182_v45 = vmax.f32 %v4118_v4, 0.0 }
 0x33f   :  { %v3980_v0 = vadd.f32 %v3869_v50, %v3224_v19  ;;  %v4119_v32 = vadd.f32 %v8256_v20, %v4048_v52  ;;  %v4185_v28 = vmax.f32 %v4121_v39, 0.0  ;;  %v4053_v34 = vmul.f32 %v8248_v40, %v3982_v5  ;;  %v8776_v5 = vld [vmem:[#allocation19_spill] sm:$0xff]  ;;  %v8777_v50 = vld [vmem:[#allocation20_spill] sm:$0xff] }
 0x340   :  { %v6611_v7 = vpop.f32.mrf.mxu1  ;;  %v6684_v31 = vpop.f32.mrf.mxu0  ;;  %v3227_v33 = vadd.f32 %v3226_v54, %v8771_v37 }
 0x341   :  { %v3983_v56 = vadd.f32 %v6684_v31, %v3235_v36  ;;  %v4183_v22 = vmax.f32 %v4119_v32, 0.0  ;;  %v4051_v27 = vmul.f32 %v8248_v40, %v3980_v0  ;;  %v4225_v9 = vpack.c.bf16 %v4185_v28, %v4184_v53 }
 0x342   :  { %v3239_v25 = vpop.f32.mrf.mxu1  ;;  %v3872_v23 = vpop.f32.mrf.mxu0  ;;  %v3248_v26 = vadd.f32 %v6611_v7, %v8772_v14  ;;  %v4124_v11 = vadd.f32 %v8256_v20, %v4053_v34 }
 0x343   :  { %v4054_v48 = vmul.f32 %v8248_v40, %v3983_v56  ;;  %v4224_v8 = vpack.c.bf16 %v4183_v22, %v4182_v45  ;;  %v3981_v1 = vadd.f32 %v3872_v23, %v3227_v33  ;;  %v3240_v47 = vadd.f32 %v3239_v25, %v8773_v17  ;;  %v8778_v56 = vld [vmem:[#allocation21_spill] sm:$0xff]  ;;  %v8779_v23 = vld [vmem:[#allocation22_spill] sm:$0xff] }
 0x344   :  { %v6612_v10 = vpop.f32.mrf.mxu1  ;;  %v6687_v18 = vpop.f32.mrf.mxu0  ;;  %v4122_v41 = vadd.f32 %v8256_v20, %v4051_v27  ;;  %v4188_v2 = vmax.f32 %v4124_v11, 0.0 }
 0x345   :  { %v4125_v15 = vadd.f32 %v8256_v20, %v4054_v48  ;;  %v4052_v12 = vmul.f32 %v8248_v40, %v3981_v1  ;;  %6745 = vmatprep.mubr.msk.bf16.mxu1 %vm1498_vm6, %v4224_v8  ;;  %v3986_v63 = vadd.f32 %v6687_v18, %v3248_v26  ;;  %v3251_v29 = vadd.f32 %v6612_v10, %v8774_v43 }
 0x346   :  { %v3242_v44 = vpop.f32.mrf.mxu1  ;;  %v3885_v46 = vpop.f32.mrf.mxu0  ;;  %6746 = vmatmul.mubr.msk.bf16.gmra.mxu1 %vm1498_vm6, %v4225_v9  ;;  %v4186_v35 = vmax.f32 %v4122_v41, 0.0  ;;  %v8780_v41 = vld [vmem:[#allocation23_spill] sm:$0xff] }
 0x347   :  { %v3984_v38 = vadd.f32 %v3885_v46, %v3240_v47  ;;  %v4189_v6 = vmax.f32 %v4125_v15, 0.0  ;;  %v4123_v51 = vadd.f32 %v8256_v20, %v4052_v12  ;;  %v3243_v62 = vadd.f32 %v3242_v44, %v8775_v24  ;;  %v8781_v44 = vld [vmem:[#allocation24_spill] sm:$0xff] }
 0x348   :  { %v6615_v3 = vpop.f32.mrf.mxu1  ;;  %v6688_v30 = vpop.f32.mrf.mxu0  ;;  %v4057_v58 = vmul.f32 %v8248_v40, %v3986_v63 }
 0x349   :  { %v4055_v42 = vmul.f32 %v8248_v40, %v3984_v38  ;;  %v4187_v59 = vmax.f32 %v4123_v51, 0.0  ;;  %v3987_v55 = vadd.f32 %v6688_v30, %v3251_v29  ;;  %v4227_v60 = vpack.c.bf16 %v4189_v6, %v4188_v2 }
 0x34a   :  { %v3255_v49 = vpop.f32.mrf.mxu1  ;;  %v3888_v13 = vpop.f32.mrf.mxu0  ;;  %v3264_v54 = vadd.f32 %v6615_v3, %v8776_v5  ;;  %v4128_v7 = vadd.f32 %v8256_v20, %v4057_v58  ;;  %v8782_v3 = vld [vmem:[#allocation25_spill] sm:$0xff] }
 0x34b   :  { %v3985_v57 = vadd.f32 %v3888_v13, %v3243_v62  ;;  %v4226_v4 = vpack.c.bf16 %v4187_v59, %v4186_v35  ;;  %v4058_v16 = vmul.f32 %v8248_v40, %v3987_v55  ;;  %v4126_v52 = vadd.f32 %v8256_v20, %v4055_v42  ;;  %v8783_v59 = vld [vmem:[#allocation26_spill] sm:$0xff] }
 0x34c   :  { %v6616_v19 = vpop.f32.mrf.mxu1  ;;  %v6691_v39 = vpop.f32.mrf.mxu0  ;;  %v3256_v21 = vadd.f32 %v3255_v49, %v8777_v50  ;;  %v4192_v18 = vmax.f32 %v4128_v7, 0.0 }
 0x34d   :  { %v4056_v61 = vmul.f32 %v8248_v40, %v3985_v57  ;;  %v4129_v36 = vadd.f32 %v8256_v20, %v4058_v16  ;;  %6749 = vmatprep.mubr.msk.bf16.mxu1 %vm1498_vm6, %v4226_v4  ;;  %v3990_v45 = vadd.f32 %v6691_v39, %v3264_v54  ;;  %v3267_v22 = vadd.f32 %v6616_v19, %v8778_v56 }
 0x34e   :  { %v3258_v0 = vpop.f32.mrf.mxu1  ;;  %v3901_v32 = vpop.f32.mrf.mxu0  ;;  %6750 = vmatmul.mubr.msk.bf16.gmra.mxu1 %vm1498_vm6, %v4227_v60  ;;  %v4190_v33 = vmax.f32 %v4126_v52, 0.0 }
 0x34f   :  { %v4127_v31 = vadd.f32 %v8256_v20, %v4056_v61  ;;  %v3988_v28 = vadd.f32 %v3901_v32, %v3256_v21  ;;  %v4193_v27 = vmax.f32 %v4129_v36, 0.0  ;;  %v3259_v53 = vadd.f32 %v3258_v0, %v8779_v23 }
 0x350   :  { %v6619_v34 = vpop.f32.mrf.mxu1  ;;  %v6692_v37 = vpop.f32.mrf.mxu0  ;;  %v4061_v14 = vmul.f32 %v8248_v40, %v3990_v45 }
 0x351   :  { %v4191_v25 = vmax.f32 %v4127_v31, 0.0  ;;  %v4059_v48 = vmul.f32 %v8248_v40, %v3988_v28  ;;  %v3991_v8 = vadd.f32 %v6692_v37, %v3267_v22  ;;  %v4229_v11 = vpack.c.bf16 %v4193_v27, %v4192_v18  ;;  %v6139_v22 = vld [vmem:[%s8715_s0 + $0x8] sm:$0xff]  }
 0x352   :  { %v3271_v1 = vpop.f32.mrf.mxu1  ;;  %v3904_v10 = vpop.f32.mrf.mxu0  ;;  %v3280_v12 = vadd.f32 %v6619_v34, %v8780_v41  ;;  %v4132_v29 = vadd.f32 %v8256_v20, %v4061_v14 }
 0x353   :  { %v4228_v9 = vpack.c.bf16 %v4191_v25, %v4190_v33  ;;  %v4062_v26 = vmul.f32 %v8248_v40, %v3991_v8  ;;  %v3989_v15 = vadd.f32 %v3904_v10, %v3259_v53  ;;  %v3272_v46 = vadd.f32 %v3271_v1, %v8781_v44  ;;  %v5852_v33 = vld [vmem:[%s8715_s0] sm:$0xff]   ;;  %v6141_v44 = vld [vmem:[%s8715_s0 + $0x18] sm:$0xff]  }
 0x354   :  { %v6620_v17 = vpop.f32.mrf.mxu1  ;;  %v6695_v47 = vpop.f32.mrf.mxu0  ;;  %v4130_v63 = vadd.f32 %v8256_v20, %v4059_v48  ;;  %v4196_v4 = vmax.f32 %v4132_v29, 0.0  ;;  %v5857_v25 = vunpack.c.l.bf16 %v6139_v22  ;;  %v5853_v8 = vunpack.c.l.bf16 %v5852_v33 }
 0x355   :  { %6753 = vmatprep.mubr.msk.bf16.mxu1 %vm1498_vm6, %v4228_v9  ;;  %v4133_v38 = vadd.f32 %v8256_v20, %v4062_v26  ;;  %v4060_v6 = vmul.f32 %v8248_v40, %v3989_v15  ;;  %v3283_v30 = vadd.f32 %v6620_v17, %v8782_v3  ;;  %v3994_v24 = vadd.f32 %v6695_v47, %v3280_v12 }
 0x356   :  { %v3274_v51 = vpop.f32.mrf.mxu1  ;;  %v3917_v43 = vpop.f32.mrf.mxu0  ;;  %6754 = vmatmul.mubr.msk.bf16.gmra.mxu1 %vm1498_vm6, %v4229_v11  ;;  %v4194_v58 = vmax.f32 %v4130_v63, 0.0  ;;  %v5858_v10 = vunpack.c.h.bf16 %v6139_v22  ;;  %v5854_v15 = vunpack.c.h.bf16 %v5852_v33  ;;  %v5865_v3 = vunpack.c.l.bf16 %v6141_v44 }
 0x357   :  { %v3992_v62 = vadd.f32 %v3917_v43, %v3272_v46  ;;  %v4131_v42 = vadd.f32 %v8256_v20, %v4060_v6  ;;  %v4197_v35 = vmax.f32 %v4133_v38, 0.0  ;;  %v3275_v55 = vadd.f32 %v3274_v51, %v8783_v59  ;;  %v6140_v46 = vld [vmem:[%s8715_s0 + $0x10] sm:$0xff]  }
 0x358   :  { %v6696_v2 = vpop.f32.mrf.mxu0  ;;  %v4065_v16 = vmul.f32 %v8248_v40, %v3994_v24 }
 0x359   :  { %v4063_v49 = vmul.f32 %v8248_v40, %v3992_v62  ;;  %v3995_v13 = vadd.f32 %v6696_v2, %v3283_v30  ;;  %v4195_v57 = vmax.f32 %v4131_v42, 0.0  ;;  %v4231_v5 = vpack.c.bf16 %v4197_v35, %v4196_v4 }
 0x35a   :  { %v3920_v60 = vpop.f32.mrf.mxu0  ;;  %v4136_v61 = vadd.f32 %v8256_v20, %v4065_v16  ;;  %v5861_v30 = vunpack.c.l.bf16 %v6140_v46 }
 0x35b   :  { %v4066_v19 = vmul.f32 %v8248_v40, %v3995_v13  ;;  %v3993_v39 = vadd.f32 %v3920_v60, %v3275_v55  ;;  %v4230_v52 = vpack.c.bf16 %v4195_v57, %v4194_v58  ;;  %v4134_v54 = vadd.f32 %v8256_v20, %v4063_v49 }
 0x35c   :  { %v4200_v31 = vmax.f32 %v4136_v61, 0.0  ;;  %v5866_v55 = vunpack.c.h.bf16 %v6141_v44  ;;  %v5862_v57 = vunpack.c.h.bf16 %v6140_v46 }
 0x35d   :  { %v4137_v50 = vadd.f32 %v8256_v20, %v4066_v19  ;;  %v4064_v21 = vmul.f32 %v8248_v40, %v3993_v39  ;;  %6757 = vmatprep.mubr.msk.bf16.mxu1 %vm1498_vm6, %v4230_v52  ;;  %v4198_v0 = vmax.f32 %v4134_v54, 0.0  ;;  %v8479_v40 = vld [vmem:[%s8723_s8] ss:$0 sm:$0xff]  ;;  %v6143_v19 = vld [vmem:[%s8715_s0 + $0x28] sm:$0xff]  }
 0x35e   :  { %6758 = vmatmul.mubr.msk.bf16.gmra.mxu1 %vm1498_vm6, %v4231_v5 }
 0x35f   :  { %v4135_v36 = vadd.f32 %v8256_v20, %v4064_v21  ;;  %v4201_v32 = vmax.f32 %v4137_v50, 0.0  ;;  %v8484_v20 = vld [vmem:[%s8724_s9] ss:$0 sm:$0xff] }
 0x361   :  { %v4199_v7 = vmax.f32 %v4135_v36, 0.0  ;;  %v4233_v28 = vpack.c.bf16 %v4201_v32, %v4200_v31  ;;  %v5873_v36 = vunpack.c.l.bf16 %v6143_v19  ;;  %v6142_v32 = vld [vmem:[%s8715_s0 + $0x20] sm:$0xff]  }
 0x363   :  { %v4232_v45 = vpack.c.bf16 %v4199_v7, %v4198_v0 }
 0x365   :  { %6761 = vmatprep.mubr.msk.bf16.mxu1 %vm1498_vm6, %v4232_v45 }
 0x366   :  { %6762 = vmatmul.mubr.msk.bf16.gmra.mxu1 %vm1498_vm6, %v4233_v28 }
 0x3ae   :  { %v6703_v56 = vpop.f32.mrf.mxu1 }
 0x3af   :  { %v4644_v34 = vmul.f32 %v6703_v56, %v8479_v40 }
 0x3b0   :  { %v4380_v37 = vpop.f32.mrf.mxu1 }
 0x3b1   :  { %v4715_v27 = vadd.f32 %v8484_v20, %v4644_v34  ;;  %v4642_v23 = vmul.f32 %v8479_v40, %v4380_v37  ;;  %v5874_v34 = vunpack.c.h.bf16 %v6143_v19 }
 0x3b2   :  { %v6704_v53 = vpop.f32.mrf.mxu1 }
 0x3b3   :  { %v4713_v48 = vadd.f32 %v8484_v20, %v4642_v23  ;;  %v4645_v1 = vmul.f32 %v6704_v53, %v8479_v40  ;;  %v4907_v9 = vadd.f32 %v5857_v25, %v4715_v27  ;;  %v5869_v27 = vunpack.c.l.bf16 %v6142_v32 }
 0x3b4   :  { %v4383_v18 = vpop.f32.mrf.mxu1 }
 0x3b5   :  { %v4716_v14 = vadd.f32 %v8484_v20, %v4645_v1  ;;  %v4643_v26 = vmul.f32 %v8479_v40, %v4383_v18  ;;  %v4905_v47 = vadd.f32 %v5853_v8, %v4713_v48  ;;  %v4971_v38 = vmax.f32 %v4907_v9, 0.0  ;;  %v6145_v8 = vld [vmem:[%s8715_s0 + $0x38] sm:$0xff]  }
 0x3b6   :  { %v6707_v17 = vpop.f32.mrf.mxu1 }
 0x3b7   :  { %v4908_v11 = vadd.f32 %v5858_v10, %v4716_v14  ;;  %v4714_v41 = vadd.f32 %v8484_v20, %v4643_v26  ;;  %v4648_v12 = vmul.f32 %v6707_v17, %v8479_v40  ;;  %v4969_v62 = vmax.f32 %v4905_v47, 0.0  ;;  %v6144_v26 = vld [vmem:[%s8715_s0 + $0x30] sm:$0xff]  }
 0x3b8   :  { %v4396_v63 = vpop.f32.mrf.mxu1  ;;  %v5870_v10 = vunpack.c.h.bf16 %v6142_v32  ;;  %v5881_v47 = vunpack.c.l.bf16 %v6145_v8 }
 0x3b9   :  { %v4972_v6 = vmax.f32 %v4908_v11, 0.0  ;;  %v4906_v51 = vadd.f32 %v5854_v15, %v4714_v41  ;;  %v4646_v43 = vmul.f32 %v8479_v40, %v4396_v63  ;;  %v4719_v29 = vadd.f32 %v8484_v20, %v4648_v12 }
 0x3ba   :  { %v6708_v24 = vpop.f32.mrf.mxu1 }
 0x3bb   :  { %v5987_v42 = vpack.c.bf16 %v4972_v6, %v4971_v38  ;;  %v4970_v2 = vmax.f32 %v4906_v51, 0.0  ;;  %v4717_v35 = vadd.f32 %v8484_v20, %v4646_v43  ;;  %v4649_v59 = vmul.f32 %v6708_v24, %v8479_v40 }
 0x3bc   :  { %v4399_v49 = vpop.f32.mrf.mxu1  ;;  %v4911_v60 = vadd.f32 %v5865_v3, %v4719_v29  ;;  %v5877_v38 = vunpack.c.l.bf16 %v6144_v26  ;;  %v5882_v3 = vunpack.c.h.bf16 %v6145_v8 }
 0x3bd   :  { %6170 = vst [vmem:[#allocation3 + $0x8] sm:$0xff] %v5987_v42   ;;  %v5982_v13 = vpack.c.bf16 %v4970_v2, %v4969_v62  ;;  %v4647_v58 = vmul.f32 %v8479_v40, %v4399_v49  ;;  %v4720_v4 = vadd.f32 %v8484_v20, %v4649_v59  ;;  %v4909_v39 = vadd.f32 %v5861_v30, %v4717_v35 }
 0x3be   :  { %v6711_v16 = vpop.f32.mrf.mxu1  ;;  %v4975_v7 = vmax.f32 %v4911_v60, 0.0  ;;  %v5878_v59 = vunpack.c.h.bf16 %v6144_v26 }
 0x3bf   :  { %5983 = vst [vmem:[#allocation3] sm:$0xff] %v5982_v13   ;;  %v4718_v52 = vadd.f32 %v8484_v20, %v4647_v58  ;;  %v4652_v5 = vmul.f32 %v6711_v16, %v8479_v40  ;;  %v4912_v54 = vadd.f32 %v5866_v55, %v4720_v4  ;;  %v4973_v28 = vmax.f32 %v4909_v39, 0.0  ;;  %v6147_v4 = vld [vmem:[%s8715_s0 + $0x48] sm:$0xff]   ;;  %v6146_v16 = vld [vmem:[%s8715_s0 + $0x40] sm:$0xff]  }
 0x3c0   :  { %v4412_v50 = vpop.f32.mrf.mxu1 }
 0x3c1   :  { %v4910_v21 = vadd.f32 %v5862_v57, %v4718_v52  ;;  %v4723_v61 = vadd.f32 %v8484_v20, %v4652_v5  ;;  %v4650_v0 = vmul.f32 %v8479_v40, %v4412_v50  ;;  %v4976_v31 = vmax.f32 %v4912_v54, 0.0 }
 0x3c2   :  { %v6712_v45 = vpop.f32.mrf.mxu1 }
 0x3c3   :  { %v4974_v56 = vmax.f32 %v4910_v21, 0.0  ;;  %v4653_v22 = vmul.f32 %v6712_v45, %v8479_v40  ;;  %v5997_v37 = vpack.c.bf16 %v4976_v31, %v4975_v7  ;;  %v4721_v33 = vadd.f32 %v8484_v20, %v4650_v0 }
 0x3c4   :  { %v4415_v25 = vpop.f32.mrf.mxu1  ;;  %v4915_v53 = vadd.f32 %v5873_v36, %v4723_v61  ;;  %v5889_v21 = vunpack.c.l.bf16 %v6147_v4  ;;  %v5885_v61 = vunpack.c.l.bf16 %v6146_v16 }
 0x3c5   :  { %v5992_v23 = vpack.c.bf16 %v4974_v56, %v4973_v28  ;;  %v4724_v48 = vadd.f32 %v8484_v20, %v4653_v22  ;;  %6172 = vst [vmem:[#allocation3 + $0x18] sm:$0xff] %v5997_v37   ;;  %v4651_v1 = vmul.f32 %v8479_v40, %v4415_v25  ;;  %v4913_v15 = vadd.f32 %v5869_v27, %v4721_v33 }
 0x3c6   :  { %v6715_v18 = vpop.f32.mrf.mxu1  ;;  %v4979_v41 = vmax.f32 %v4915_v53, 0.0  ;;  %v5890_v28 = vunpack.c.h.bf16 %v6147_v4  ;;  %v5886_v37 = vunpack.c.h.bf16 %v6146_v16 }
 0x3c7   :  { %6171 = vst [vmem:[#allocation3 + $0x10] sm:$0xff] %v5992_v23   ;;  %v4916_v9 = vadd.f32 %v5874_v34, %v4724_v48  ;;  %v4656_v14 = vmul.f32 %v6715_v18, %v8479_v40  ;;  %v4722_v17 = vadd.f32 %v8484_v20, %v4651_v1  ;;  %v4977_v30 = vmax.f32 %v4913_v15, 0.0  ;;  %v6149_v23 = vld [vmem:[%s8715_s0 + $0x58] sm:$0xff]   ;;  %v6148_v15 = vld [vmem:[%s8715_s0 + $0x50] sm:$0xff]  }
 0x3c8   :  { %v4428_v11 = vpop.f32.mrf.mxu1 }
 0x3c9   :  { %v4980_v12 = vmax.f32 %v4916_v9, 0.0  ;;  %v4727_v44 = vadd.f32 %v8484_v20, %v4656_v14  ;;  %v4654_v46 = vmul.f32 %v8479_v40, %v4428_v11  ;;  %v4914_v63 = vadd.f32 %v5870_v10, %v4722_v17 }
 0x3ca   :  { %v6716_v6 = vpop.f32.mrf.mxu1  ;;  %v5897_v14 = vunpack.c.l.bf16 %v6149_v23 }
 0x3cb   :  { %v6007_v51 = vpack.c.bf16 %v4980_v12, %v4979_v41  ;;  %v4725_v43 = vadd.f32 %v8484_v20, %v4654_v46  ;;  %v4657_v29 = vmul.f32 %v6716_v6, %v8479_v40  ;;  %v4978_v24 = vmax.f32 %v4914_v63, 0.0 }
 0x3cc   :  { %v4431_v62 = vpop.f32.mrf.mxu1  ;;  %v4919_v42 = vadd.f32 %v5881_v47, %v4727_v44  ;;  %v5898_v46 = vunpack.c.h.bf16 %v6149_v23  ;;  %v5893_v6 = vunpack.c.l.bf16 %v6148_v15 }
 0x3cd   :  { %6174 = vst [vmem:[#allocation3 + $0x28] sm:$0xff] %v6007_v51   ;;  %v4728_v2 = vadd.f32 %v8484_v20, %v4657_v29  ;;  %v4655_v35 = vmul.f32 %v8479_v40, %v4431_v62  ;;  %v6002_v55 = vpack.c.bf16 %v4978_v24, %v4977_v30  ;;  %v4917_v13 = vadd.f32 %v5877_v38, %v4725_v43  ;;  %v6151_v30 = vld [vmem:[%s8715_s0 + $0x68] sm:$0xff]  }
 0x3ce   :  { %v6719_v49 = vpop.f32.mrf.mxu1  ;;  %v4983_v39 = vmax.f32 %v4919_v42, 0.0  ;;  %v5894_v62 = vunpack.c.h.bf16 %v6148_v15 }
 0x3cf   :  { %v4920_v58 = vadd.f32 %v5882_v3, %v4728_v2  ;;  %v4726_v57 = vadd.f32 %v8484_v20, %v4655_v35  ;;  %v4660_v60 = vmul.f32 %v6719_v49, %v8479_v40  ;;  %6173 = vst [vmem:[#allocation3 + $0x20] sm:$0xff] %v6002_v55   ;;  %v4981_v0 = vmax.f32 %v4917_v13, 0.0 }
 0x3d0   :  { %v4444_v19 = vpop.f32.mrf.mxu1  ;;  %v5905_v13 = vunpack.c.l.bf16 %v6151_v30 }
 0x3d1   :  { %v4984_v52 = vmax.f32 %v4920_v58, 0.0  ;;  %v4918_v5 = vadd.f32 %v5878_v59, %v4726_v57  ;;  %v4658_v54 = vmul.f32 %v8479_v40, %v4444_v19  ;;  %v4731_v50 = vadd.f32 %v8484_v20, %v4660_v60  ;;  %v6150_v59 = vld [vmem:[%s8715_s0 + $0x60] sm:$0xff]  }
 0x3d2   :  { %v6720_v36 = vpop.f32.mrf.mxu1 }
 0x3d3   :  { %v6017_v32 = vpack.c.bf16 %v4984_v52, %v4983_v39  ;;  %v4982_v7 = vmax.f32 %v4918_v5, 0.0  ;;  %v4729_v31 = vadd.f32 %v8484_v20, %v4658_v54  ;;  %v4661_v45 = vmul.f32 %v6720_v36, %v8479_v40 }
 0x3d4   :  { %v4447_v56 = vpop.f32.mrf.mxu1  ;;  %v4923_v33 = vadd.f32 %v5889_v21, %v4731_v50  ;;  %v5901_v39 = vunpack.c.l.bf16 %v6150_v59  ;;  %v5906_v21 = vunpack.c.h.bf16 %v6151_v30 }
 0x3d5   :  { %6176 = vst [vmem:[#allocation3 + $0x38] sm:$0xff] %v6017_v32   ;;  %v6012_v22 = vpack.c.bf16 %v4982_v7, %v4981_v0  ;;  %v4659_v34 = vmul.f32 %v8479_v40, %v4447_v56  ;;  %v4732_v27 = vadd.f32 %v8484_v20, %v4661_v45  ;;  %v4921_v53 = vadd.f32 %v5885_v61, %v4729_v31 }
 0x3d6   :  { %v6723_v25 = vpop.f32.mrf.mxu1  ;;  %v4987_v17 = vmax.f32 %v4923_v33, 0.0  ;;  %v5902_v45 = vunpack.c.h.bf16 %v6150_v59 }
 0x3d7   :  { %6175 = vst [vmem:[#allocation3 + $0x30] sm:$0xff] %v6012_v22   ;;  %v4730_v48 = vadd.f32 %v8484_v20, %v4659_v34  ;;  %v4664_v8 = vmul.f32 %v6723_v25, %v8479_v40  ;;  %v4924_v1 = vadd.f32 %v5890_v28, %v4732_v27  ;;  %v4985_v41 = vmax.f32 %v4921_v53, 0.0  ;;  %v6153_v27 = vld [vmem:[%s8715_s0 + $0x78] sm:$0xff]   ;;  %v6152_v25 = vld [vmem:[%s8715_s0 + $0x70] sm:$0xff]  }
 0x3d8   :  { %v4460_v10 = vpop.f32.mrf.mxu1 }
 0x3d9   :  { %v4922_v18 = vadd.f32 %v5886_v37, %v4730_v48  ;;  %v4735_v9 = vadd.f32 %v8484_v20, %v4664_v8  ;;  %v4662_v26 = vmul.f32 %v8479_v40, %v4460_v10  ;;  %v4988_v47 = vmax.f32 %v4924_v1, 0.0 }
 0x3da   :  { %v6724_v11 = vpop.f32.mrf.mxu1 }
 0x3db   :  { %v4986_v12 = vmax.f32 %v4922_v18, 0.0  ;;  %v4665_v44 = vmul.f32 %v6724_v11, %v8479_v40  ;;  %v6027_v63 = vpack.c.bf16 %v4988_v47, %v4987_v17  ;;  %v4733_v38 = vadd.f32 %v8484_v20, %v4662_v26 }
 0x3dc   :  { %v4463_v51 = vpop.f32.mrf.mxu1  ;;  %v4927_v29 = vadd.f32 %v5897_v14, %v4735_v9  ;;  %v5913_v18 = vunpack.c.l.bf16 %v6153_v27  ;;  %v5909_v9 = vunpack.c.l.bf16 %v6152_v25 }
 0x3dd   :  { %v6022_v43 = vpack.c.bf16 %v4986_v12, %v4985_v41  ;;  %v4736_v3 = vadd.f32 %v8484_v20, %v4665_v44  ;;  %6178 = vst [vmem:[#allocation3 + $0x48] sm:$0xff] %v6027_v63   ;;  %v4663_v24 = vmul.f32 %v8479_v40, %v4463_v51  ;;  %v4925_v55 = vadd.f32 %v5893_v6, %v4733_v38 }
 0x3de   :  { %v6727_v42 = vpop.f32.mrf.mxu1  ;;  %v4991_v57 = vmax.f32 %v4927_v29, 0.0  ;;  %v5914_v41 = vunpack.c.h.bf16 %v6153_v27  ;;  %v5910_v63 = vunpack.c.h.bf16 %v6152_v25 }
 0x3df   :  { %6177 = vst [vmem:[#allocation3 + $0x40] sm:$0xff] %v6022_v43   ;;  %v4928_v2 = vadd.f32 %v5898_v46, %v4736_v3  ;;  %v4668_v35 = vmul.f32 %v6727_v42, %v8479_v40  ;;  %v4734_v49 = vadd.f32 %v8484_v20, %v4663_v24  ;;  %v4989_v61 = vmax.f32 %v4925_v55, 0.0  ;;  %v6155_v43 = vld [vmem:[%s8715_s0 + $0x88] sm:$0xff]   ;;  %v6154_v55 = vld [vmem:[%s8715_s0 + $0x80] sm:$0xff]  }
 0x3e0   :  { %v4476_v58 = vpop.f32.mrf.mxu1 }
 0x3e1   :  { %v4992_v60 = vmax.f32 %v4928_v2, 0.0  ;;  %v4739_v4 = vadd.f32 %v8484_v20, %v4668_v35  ;;  %v4666_v16 = vmul.f32 %v8479_v40, %v4476_v58  ;;  %v4926_v19 = vadd.f32 %v5894_v62, %v4734_v49 }
 0x3e2   :  { %v6728_v52 = vpop.f32.mrf.mxu1  ;;  %v5921_v35 = vunpack.c.l.bf16 %v6155_v43 }
 0x3e3   :  { %v6037_v5 = vpack.c.bf16 %v4992_v60, %v4991_v57  ;;  %v4737_v54 = vadd.f32 %v8484_v20, %v4666_v16  ;;  %v4669_v50 = vmul.f32 %v6728_v52, %v8479_v40  ;;  %v4990_v36 = vmax.f32 %v4926_v19, 0.0 }
 0x3e4   :  { %v4479_v0 = vpop.f32.mrf.mxu1  ;;  %v4931_v32 = vadd.f32 %v5905_v13, %v4739_v4  ;;  %v5922_v16 = vunpack.c.h.bf16 %v6155_v43  ;;  %v5917_v52 = vunpack.c.l.bf16 %v6154_v55 }
 0x3e5   :  { %6180 = vst [vmem:[#allocation3 + $0x58] sm:$0xff] %v6037_v5   ;;  %v4740_v7 = vadd.f32 %v8484_v20, %v4669_v50  ;;  %v4667_v31 = vmul.f32 %v8479_v40, %v4479_v0  ;;  %v6032_v28 = vpack.c.bf16 %v4990_v36, %v4989_v61  ;;  %v4929_v22 = vadd.f32 %v5901_v39, %v4737_v54  ;;  %v6157_v61 = vld [vmem:[%s8715_s0 + $0x98] sm:$0xff]  }
 0x3e6   :  { %v6731_v56 = vpop.f32.mrf.mxu1  ;;  %v4995_v53 = vmax.f32 %v4931_v32, 0.0  ;;  %v5918_v0 = vunpack.c.h.bf16 %v6154_v55 }
 0x3e7   :  { %v4932_v34 = vadd.f32 %v5906_v21, %v4740_v7  ;;  %v4738_v37 = vadd.f32 %v8484_v20, %v4667_v31  ;;  %v4672_v33 = vmul.f32 %v6731_v56, %v8479_v40  ;;  %6179 = vst [vmem:[#allocation3 + $0x50] sm:$0xff] %v6032_v28   ;;  %v4993_v26 = vmax.f32 %v4929_v22, 0.0 }
 0x3e8   :  { %v4492_v23 = vpop.f32.mrf.mxu1  ;;  %v5929_v22 = vunpack.c.l.bf16 %v6157_v61 }
 0x3e9   :  { %v4996_v48 = vmax.f32 %v4932_v34, 0.0  ;;  %v4930_v8 = vadd.f32 %v5902_v45, %v4738_v37  ;;  %v4670_v1 = vmul.f32 %v8479_v40, %v4492_v23  ;;  %v4743_v10 = vadd.f32 %v8484_v20, %v4672_v33  ;;  %v6156_v45 = vld [vmem:[%s8715_s0 + $0x90] sm:$0xff]  }
 0x3ea   :  { %v6732_v14 = vpop.f32.mrf.mxu1 }
 0x3eb   :  { %v6047_v15 = vpack.c.bf16 %v4996_v48, %v4995_v53  ;;  %v4994_v17 = vmax.f32 %v4930_v8, 0.0  ;;  %v4741_v47 = vadd.f32 %v8484_v20, %v4670_v1  ;;  %v4673_v11 = vmul.f32 %v6732_v14, %v8479_v40 }
 0x3ec   :  { %v4495_v12 = vpop.f32.mrf.mxu1  ;;  %v4935_v38 = vadd.f32 %v5913_v18, %v4743_v10  ;;  %v5925_v53 = vunpack.c.l.bf16 %v6156_v45  ;;  %v5930_v18 = vunpack.c.h.bf16 %v6157_v61 }
 0x3ed   :  { %6182 = vst [vmem:[#allocation3 + $0x68] sm:$0xff] %v6047_v15   ;;  %v6042_v44 = vpack.c.bf16 %v4994_v17, %v4993_v26  ;;  %v4671_v46 = vmul.f32 %v8479_v40, %v4495_v12  ;;  %v4744_v6 = vadd.f32 %v8484_v20, %v4673_v11  ;;  %v4933_v29 = vadd.f32 %v5909_v9, %v4741_v47 }
 0x3ee   :  { %v6735_v51 = vpop.f32.mrf.mxu1  ;;  %v4999_v49 = vmax.f32 %v4935_v38, 0.0  ;;  %v5926_v11 = vunpack.c.h.bf16 %v6156_v45 }
 0x3ef   :  { %6181 = vst [vmem:[#allocation3 + $0x60] sm:$0xff] %v6042_v44   ;;  %v4742_v3 = vadd.f32 %v8484_v20, %v4671_v46  ;;  %v4676_v30 = vmul.f32 %v6735_v51, %v8479_v40  ;;  %v4936_v24 = vadd.f32 %v5914_v41, %v4744_v6  ;;  %v4997_v57 = vmax.f32 %v4933_v29, 0.0  ;;  %v6159_v6 = vld [vmem:[%s8715_s0 + $0xa8] sm:$0xff]   ;;  %v6158_v51 = vld [vmem:[%s8715_s0 + $0xa0] sm:$0xff]  }
 0x3f0   :  { %v4508_v62 = vpop.f32.mrf.mxu1 }
 0x3f1   :  { %v4934_v42 = vadd.f32 %v5910_v63, %v4742_v3  ;;  %v4747_v2 = vadd.f32 %v8484_v20, %v4676_v30  ;;  %v4674_v59 = vmul.f32 %v8479_v40, %v4508_v62  ;;  %v5000_v13 = vmax.f32 %v4936_v24, 0.0 }
 0x3f2   :  { %v6736_v58 = vpop.f32.mrf.mxu1 }
 0x3f3   :  { %v4998_v60 = vmax.f32 %v4934_v42, 0.0  ;;  %v4677_v4 = vmul.f32 %v6736_v58, %v8479_v40  ;;  %v6057_v19 = vpack.c.bf16 %v5000_v13, %v4999_v49  ;;  %v4745_v39 = vadd.f32 %v8484_v20, %v4674_v59 }
 0x3f4   :  { %v4511_v5 = vpop.f32.mrf.mxu1  ;;  %v4939_v50 = vadd.f32 %v5921_v35, %v4747_v2  ;;  %v5937_v42 = vunpack.c.l.bf16 %v6159_v6  ;;  %v5933_v2 = vunpack.c.l.bf16 %v6158_v51 }
 0x3f5   :  { %v6052_v54 = vpack.c.bf16 %v4998_v60, %v4997_v57  ;;  %v4748_v21 = vadd.f32 %v8484_v20, %v4677_v4  ;;  %6184 = vst [vmem:[#allocation3 + $0x78] sm:$0xff] %v6057_v19   ;;  %v4675_v36 = vmul.f32 %v8479_v40, %v4511_v5  ;;  %v4937_v28 = vadd.f32 %v5917_v52, %v4745_v39 }
 0x3f6   :  { %v6739_v32 = vpop.f32.mrf.mxu1  ;;  %v5003_v37 = vmax.f32 %v4939_v50, 0.0  ;;  %v5938_v57 = vunpack.c.h.bf16 %v6159_v6  ;;  %v5934_v19 = vunpack.c.h.bf16 %v6158_v51 }
 0x3f7   :  { %6183 = vst [vmem:[#allocation3 + $0x70] sm:$0xff] %v6052_v54   ;;  %v4940_v7 = vadd.f32 %v5922_v16, %v4748_v21  ;;  %v4680_v31 = vmul.f32 %v6739_v32, %v8479_v40  ;;  %v4746_v56 = vadd.f32 %v8484_v20, %v4675_v36  ;;  %v5001_v9 = vmax.f32 %v4937_v28, 0.0  ;;  %v6161_v54 = vld [vmem:[%s8715_s0 + $0xb8] sm:$0xff]   ;;  %v6160_v28 = vld [vmem:[%s8715_s0 + $0xb0] sm:$0xff]  }
 0x3f8   :  { %v4524_v34 = vpop.f32.mrf.mxu1 }
 0x3f9   :  { %v5004_v33 = vmax.f32 %v4940_v7, 0.0  ;;  %v4751_v27 = vadd.f32 %v8484_v20, %v4680_v31  ;;  %v4678_v25 = vmul.f32 %v8479_v40, %v4524_v34  ;;  %v4938_v23 = vadd.f32 %v5918_v0, %v4746_v56 }
 0x3fa   :  { %v6740_v48 = vpop.f32.mrf.mxu1  ;;  %v5945_v31 = vunpack.c.l.bf16 %v6161_v54 }
 0x3fb   :  { %v6067_v8 = vpack.c.bf16 %v5004_v33, %v5003_v37  ;;  %v4749_v1 = vadd.f32 %v8484_v20, %v4678_v25  ;;  %v4681_v10 = vmul.f32 %v6740_v48, %v8479_v40  ;;  %v5002_v14 = vmax.f32 %v4938_v23, 0.0 }
 0x3fc   :  { %v4527_v26 = vpop.f32.mrf.mxu1  ;;  %v4943_v15 = vadd.f32 %v5929_v22, %v4751_v27  ;;  %v5946_v25 = vunpack.c.h.bf16 %v6161_v54  ;;  %v5941_v48 = vunpack.c.l.bf16 %v6160_v28 }
 0x3fd   :  { %6186 = vst [vmem:[#allocation3 + $0x88] sm:$0xff] %v6067_v8   ;;  %v4752_v17 = vadd.f32 %v8484_v20, %v4681_v10  ;;  %v4679_v47 = vmul.f32 %v8479_v40, %v4527_v26  ;;  %v6062_v41 = vpack.c.bf16 %v5002_v14, %v5001_v9  ;;  %v4941_v44 = vadd.f32 %v5925_v53, %v4749_v1  ;;  %v6163_v9 = vld [vmem:[%s8715_s0 + $0xc8] sm:$0xff]  }
 0x3fe   :  { %v6743_v12 = vpop.f32.mrf.mxu1  ;;  %v5007_v29 = vmax.f32 %v4943_v15, 0.0  ;;  %v5942_v26 = vunpack.c.h.bf16 %v6160_v28 }
 0x3ff   :  { %v4944_v46 = vadd.f32 %v5930_v18, %v4752_v17  ;;  %v4750_v63 = vadd.f32 %v8484_v20, %v4679_v47  ;;  %v4684_v38 = vmul.f32 %v6743_v12, %v8479_v40  ;;  %6185 = vst [vmem:[#allocation3 + $0x80] sm:$0xff] %v6062_v41   ;;  %v5005_v59 = vmax.f32 %v4941_v44, 0.0 }
 0x400   :  { %v4540_v43 = vpop.f32.mrf.mxu1  ;;  %v5953_v44 = vunpack.c.l.bf16 %v6163_v9 }
 0x401   :  { %v5008_v3 = vmax.f32 %v4944_v46, 0.0  ;;  %v4942_v30 = vadd.f32 %v5926_v11, %v4750_v63  ;;  %v4682_v24 = vmul.f32 %v8479_v40, %v4540_v43  ;;  %v4755_v62 = vadd.f32 %v8484_v20, %v4684_v38  ;;  %v6162_v11 = vld [vmem:[%s8715_s0 + $0xc0] sm:$0xff]  }
 0x402   :  { %v6744_v35 = vpop.f32.mrf.mxu1 }
 0x403   :  { %v6077_v55 = vpack.c.bf16 %v5008_v3, %v5007_v29  ;;  %v5006_v49 = vmax.f32 %v4942_v30, 0.0  ;;  %v4753_v13 = vadd.f32 %v8484_v20, %v4682_v24  ;;  %v4685_v58 = vmul.f32 %v6744_v35, %v8479_v40 }
 0x404   :  { %v4543_v60 = vpop.f32.mrf.mxu1  ;;  %v4947_v39 = vadd.f32 %v5937_v42, %v4755_v62  ;;  %v5949_v29 = vunpack.c.l.bf16 %v6162_v11  ;;  %v5954_v42 = vunpack.c.h.bf16 %v6163_v9 }
 0x405   :  { %6188 = vst [vmem:[#allocation3 + $0x98] sm:$0xff] %v6077_v55   ;;  %v6072_v4 = vpack.c.bf16 %v5006_v49, %v5005_v59  ;;  %v4683_v16 = vmul.f32 %v8479_v40, %v4543_v60  ;;  %v4756_v52 = vadd.f32 %v8484_v20, %v4685_v58  ;;  %v4945_v50 = vadd.f32 %v5933_v2, %v4753_v13 }
 0x406   :  { %v6747_v5 = vpop.f32.mrf.mxu1  ;;  %v5011_v56 = vmax.f32 %v4947_v39, 0.0  ;;  %v5950_v58 = vunpack.c.h.bf16 %v6162_v11 }
 0x407   :  { %6187 = vst [vmem:[#allocation3 + $0x90] sm:$0xff] %v6072_v4   ;;  %v4754_v21 = vadd.f32 %v8484_v20, %v4683_v16  ;;  %v4688_v61 = vmul.f32 %v6747_v5, %v8479_v40  ;;  %v4948_v36 = vadd.f32 %v5938_v57, %v4756_v52  ;;  %v5009_v37 = vmax.f32 %v4945_v50, 0.0  ;;  %v6165_v52 = vld [vmem:[%s8715_s0 + $0xd8] sm:$0xff]   ;;  %v6164_v5 = vld [vmem:[%s8715_s0 + $0xd0] sm:$0xff]  }
 0x408   :  { %v4556_v0 = vpop.f32.mrf.mxu1 }
 0x409   :  { %v4946_v32 = vadd.f32 %v5934_v19, %v4754_v21  ;;  %v4759_v7 = vadd.f32 %v8484_v20, %v4688_v61  ;;  %v4686_v45 = vmul.f32 %v8479_v40, %v4556_v0  ;;  %v5012_v22 = vmax.f32 %v4948_v36, 0.0 }
 0x40a   :  { %v6748_v34 = vpop.f32.mrf.mxu1 }
 0x40b   :  { %v5010_v33 = vmax.f32 %v4946_v32, 0.0  ;;  %v4689_v27 = vmul.f32 %v6748_v34, %v8479_v40  ;;  %v6087_v23 = vpack.c.bf16 %v5012_v22, %v5011_v56  ;;  %v4757_v53 = vadd.f32 %v8484_v20, %v4686_v45 }
 0x40c   :  { %v4559_v8 = vpop.f32.mrf.mxu1  ;;  %v4951_v10 = vadd.f32 %v5945_v31, %v4759_v7  ;;  %v5961_v32 = vunpack.c.l.bf16 %v6165_v52  ;;  %v5957_v7 = vunpack.c.l.bf16 %v6164_v5 }
 0x40d   :  { %v6082_v1 = vpack.c.bf16 %v5010_v33, %v5009_v37  ;;  %v4760_v18 = vadd.f32 %v8484_v20, %v4689_v27  ;;  %6190 = vst [vmem:[#allocation3 + $0xa8] sm:$0xff] %v6087_v23   ;;  %v4687_v14 = vmul.f32 %v8479_v40, %v4559_v8  ;;  %v4949_v41 = vadd.f32 %v5941_v48, %v4757_v53 }
 0x40e   :  { %v6751_v15 = vpop.f32.mrf.mxu1  ;;  %v5015_v63 = vmax.f32 %v4951_v10, 0.0  ;;  %v5962_v37 = vunpack.c.h.bf16 %v6165_v52  ;;  %v5958_v23 = vunpack.c.h.bf16 %v6164_v5 }
 0x40f   :  { %6189 = vst [vmem:[#allocation3 + $0xa0] sm:$0xff] %v6082_v1   ;;  %v4952_v17 = vadd.f32 %v5946_v25, %v4760_v18  ;;  %v4692_v47 = vmul.f32 %v6751_v15, %v8479_v40  ;;  %v4758_v12 = vadd.f32 %v8484_v20, %v4687_v14  ;;  %v5013_v2 = vmax.f32 %v4949_v41, 0.0  ;;  %v6167_v1 = vld [vmem:[%s8715_s0 + $0xe8] sm:$0xff]   ;;  %v6166_v41 = vld [vmem:[%s8715_s0 + $0xe0] sm:$0xff]  }
 0x410   :  { %v4572_v46 = vpop.f32.mrf.mxu1 }
 0x411   :  { %v5016_v38 = vmax.f32 %v4952_v17, 0.0  ;;  %v4763_v6 = vadd.f32 %v8484_v20, %v4692_v47  ;;  %v4690_v51 = vmul.f32 %v8479_v40, %v4572_v46  ;;  %v4950_v43 = vadd.f32 %v5942_v26, %v4758_v12 }
 0x412   :  { %v6752_v3 = vpop.f32.mrf.mxu1  ;;  %v5969_v47 = vunpack.c.l.bf16 %v6167_v1 }
 0x413   :  { %v6097_v30 = vpack.c.bf16 %v5016_v38, %v5015_v63  ;;  %v4761_v24 = vadd.f32 %v8484_v20, %v4690_v51  ;;  %v4693_v62 = vmul.f32 %v6752_v3, %v8479_v40  ;;  %v5014_v35 = vmax.f32 %v4950_v43, 0.0 }
 0x414   :  { %v4575_v59 = vpop.f32.mrf.mxu1  ;;  %v4955_v55 = vadd.f32 %v5953_v44, %v4763_v6  ;;  %v5970_v51 = vunpack.c.h.bf16 %v6167_v1  ;;  %v5965_v3 = vunpack.c.l.bf16 %v6166_v41 }
 0x415   :  { %6192 = vst [vmem:[#allocation3 + $0xb8] sm:$0xff] %v6097_v30   ;;  %v4764_v49 = vadd.f32 %v8484_v20, %v4693_v62  ;;  %v4691_v13 = vmul.f32 %v8479_v40, %v4575_v59  ;;  %v6092_v57 = vpack.c.bf16 %v5014_v35, %v5013_v2  ;;  %v4953_v4 = vadd.f32 %v5949_v29, %v4761_v24  ;;  %v6169_v2 = vld [vmem:[%s8715_s0 + $0xf8] sm:$0xff]  }
 0x416   :  { %v6755_v60 = vpop.f32.mrf.mxu1  ;;  %v5019_v50 = vmax.f32 %v4955_v55, 0.0  ;;  %v5966_v59 = vunpack.c.h.bf16 %v6166_v41 }
 0x417   :  { %v4956_v16 = vadd.f32 %v5954_v42, %v4764_v49  ;;  %v4762_v19 = vadd.f32 %v8484_v20, %v4691_v13  ;;  %v4696_v39 = vmul.f32 %v6755_v60, %v8479_v40  ;;  %6191 = vst [vmem:[#allocation3 + $0xb0] sm:$0xff] %v6092_v57   ;;  %v5017_v45 = vmax.f32 %v4953_v4, 0.0 }
 0x418   :  { %v4588_v54 = vpop.f32.mrf.mxu1  ;;  %v5977_v4 = vunpack.c.l.bf16 %v6169_v2 }
 0x419   :  { %v5020_v21 = vmax.f32 %v4956_v16, 0.0  ;;  %v4954_v61 = vadd.f32 %v5950_v58, %v4762_v19  ;;  %v4694_v36 = vmul.f32 %v8479_v40, %v4588_v54  ;;  %v4767_v0 = vadd.f32 %v8484_v20, %v4696_v39  ;;  %v6168_v58 = vld [vmem:[%s8715_s0 + $0xf0] sm:$0xff]   ;;  %s6965_s0 = smov [#allocation3]  }
 0x41a   :  { %v6756_v31 = vpop.f32.mrf.mxu1  ;;  %s5358_s24 = sshll.u32 %s6965_s0, 4  ;;  %s5359_s24 = int_to_ptr.vmem [resolvable:$true] %s5358_s24 }
 0x41b   :  { %v6107_v28 = vpack.c.bf16 %v5020_v21, %v5019_v50  ;;  %v5018_v56 = vmax.f32 %v4954_v61, 0.0  ;;  %v4765_v22 = vadd.f32 %v8484_v20, %v4694_v36  ;;  %v4697_v34 = vmul.f32 %v6756_v31, %v8479_v40  ;;  %s6940_s25 = scalar_lea.vmem %s5359_s24, 4096  ;;  %p6945_p1 = scmp.lt.s32.totalorder %s5359_s24, %s5359_s24 }
 0x41c   :  { %v4591_v33 = vpop.f32.mrf.mxu1  ;;  %v4959_v53 = vadd.f32 %v5961_v32, %v4767_v0  ;;  %v5973_v50 = vunpack.c.l.bf16 %v6168_v58  ;;  %v5978_v32 = vunpack.c.h.bf16 %v6169_v2  ;;  %p6941_p0 = scmp.ne.s32.totalorder %s5359_s24, %s6940_s25  ;;  %p6946_p2 = scmp.lt.s32.totalorder %s6940_s25, %s6940_s25 }
 0x41d   :  { %6194 = vst [vmem:[#allocation3 + $0xc8] sm:$0xff] %v6107_v28   ;;  %v6102_v27 = vpack.c.bf16 %v5018_v56, %v5017_v45  ;;  %v4695_v25 = vmul.f32 %v8479_v40, %v4591_v33  ;;  %v4768_v48 = vadd.f32 %v8484_v20, %v4697_v34  ;;  %v4957_v10 = vadd.f32 %v5957_v7, %v4765_v22 }
 0x41e   :  { %v6759_v8 = vpop.f32.mrf.mxu1  ;;  %v5023_v12 = vmax.f32 %v4959_v53, 0.0  ;;  %v5974_v34 = vunpack.c.h.bf16 %v6168_v58  ;;  %p6947_p3 = por %p6946_p2, %p6945_p1 }
 0x41f   :  { %6193 = vst [vmem:[#allocation3 + $0xc0] sm:$0xff] %v6102_v27   ;;  %v4766_v18 = vadd.f32 %v8484_v20, %v4695_v25  ;;  %v4700_v9 = vmul.f32 %v6759_v8, %v8479_v40  ;;  %v4960_v14 = vadd.f32 %v5962_v37, %v4768_v48  ;;  %v5021_v63 = vmax.f32 %v4957_v10, 0.0 }
 0x420   :  { %v4604_v26 = vpop.f32.mrf.mxu1  ;;  %p6948_p4 = pnand %p6947_p3, %p6941_p0 }
 0x421   :  { %v4958_v15 = vadd.f32 %v5958_v23, %v4766_v18  ;;  %v4771_v17 = vadd.f32 %v8484_v20, %v4700_v9  ;;  %v4698_v11 = vmul.f32 %v8479_v40, %v4604_v26  ;;  %v5024_v44 = vmax.f32 %v4960_v14, 0.0 }
 0x422   :  { %v6760_v46 = vpop.f32.mrf.mxu1 }
 0x423   :  { %v5022_v38 = vmax.f32 %v4958_v15, 0.0  ;;  %v4701_v6 = vmul.f32 %v6760_v46, %v8479_v40  ;;  %v6117_v43 = vpack.c.bf16 %v5024_v44, %v5023_v12  ;;  %v4769_v29 = vadd.f32 %v8484_v20, %v4698_v11 }
 0x424   :  { %v4607_v30 = vpop.f32.mrf.mxu1  ;;  %v4963_v62 = vadd.f32 %v5969_v47, %v4771_v17 }
 0x425   :  { %v6112_v24 = vpack.c.bf16 %v5022_v38, %v5021_v63  ;;  %v4772_v42 = vadd.f32 %v8484_v20, %v4701_v6  ;;  %6196 = vst [vmem:[#allocation3 + $0xd8] sm:$0xff] %v6117_v43   ;;  %v4699_v35 = vmul.f32 %v8479_v40, %v4607_v30  ;;  %v4961_v57 = vadd.f32 %v5965_v3, %v4769_v29 }
 0x426   :  { %v6763_v55 = vpop.f32.mrf.mxu1  ;;  %v5027_v19 = vmax.f32 %v4963_v62, 0.0 }
 0x427   :  { %6195 = vst [vmem:[#allocation3 + $0xd0] sm:$0xff] %v6112_v24   ;;  %v4964_v49 = vadd.f32 %v5970_v51, %v4772_v42  ;;  %v4704_v13 = vmul.f32 %v6763_v55, %v8479_v40  ;;  %v4770_v60 = vadd.f32 %v8484_v20, %v4699_v35  ;;  %v5025_v7 = vmax.f32 %v4961_v57, 0.0 }
 0x428   :  { %v4620_v16 = vpop.f32.mrf.mxu1 }
 0x429   :  { %v5028_v39 = vmax.f32 %v4964_v49, 0.0  ;;  %v4775_v52 = vadd.f32 %v8484_v20, %v4704_v13  ;;  %v4702_v5 = vmul.f32 %v8479_v40, %v4620_v16  ;;  %v4962_v54 = vadd.f32 %v5966_v59, %v4770_v60 }
 0x42a   :  { %v6764_v21 = vpop.f32.mrf.mxu1 }
 0x42b   :  { %v6127_v61 = vpack.c.bf16 %v5028_v39, %v5027_v19  ;;  %v4773_v36 = vadd.f32 %v8484_v20, %v4702_v5  ;;  %v4705_v0 = vmul.f32 %v6764_v21, %v8479_v40  ;;  %v5026_v31 = vmax.f32 %v4962_v54, 0.0 }
 0x42c   :  { %v4623_v45 = vpop.f32.mrf.mxu1  ;;  %v4967_v28 = vadd.f32 %v5977_v4, %v4775_v52 }
 0x42d   :  { %6198 = vst [vmem:[#allocation3 + $0xe8] sm:$0xff] %v6127_v61   ;;  %v4776_v56 = vadd.f32 %v8484_v20, %v4705_v0  ;;  %v4703_v22 = vmul.f32 %v8479_v40, %v4623_v45  ;;  %v6122_v37 = vpack.c.bf16 %v5026_v31, %v5025_v7  ;;  %v4965_v33 = vadd.f32 %v5973_v50, %v4773_v36 }
 0x42e   :  { %v5031_v23 = vmax.f32 %v4967_v28, 0.0 }
 0x42f   :  { %v4968_v27 = vadd.f32 %v5978_v32, %v4776_v56  ;;  %v4774_v25 = vadd.f32 %v8484_v20, %v4703_v22  ;;  %6197 = vst [vmem:[#allocation3 + $0xe0] sm:$0xff] %v6122_v37   ;;  %v5029_v8 = vmax.f32 %v4965_v33, 0.0 }
 0x431   :  { %v5032_v53 = vmax.f32 %v4968_v27, 0.0  ;;  %v4966_v48 = vadd.f32 %v5974_v34, %v4774_v25 }
 0x433   :  { %v6137_v1 = vpack.c.bf16 %v5032_v53, %v5031_v23  ;;  %v5030_v10 = vmax.f32 %v4966_v48, 0.0 }
 0x435   :  { %6200 = vst [vmem:[#allocation3 + $0xf8] sm:$0xff] %v6137_v1   ;;  %v6132_v18 = vpack.c.bf16 %v5030_v10, %v5029_v8 }
 0x437   :  { %6199 = vst [vmem:[#allocation3 + $0xf0] sm:$0xff] %v6132_v18  }
 0x438   :  { %6951 = shalt.err (!%p6948_p4)
}
 0x439   :  { %s6966_s27 = smov 4  }
 0x43a   :  { %5364 = dma.vmem_to_hbm [thread:$0]  %s5359_s24, 4096, %s8725_s10, [#allocation4], %s6963_s26, %s6963_s26, %s6966_s27  }
 0x43b   :  { %6960 = dma.done.wait [#allocation4], 4096  }
 0x43c   :  { %6961 = vsyncadd [#allocation4], 4294963200 }
 0x43d   :  { %5368 = vsyncpa [#allocation4], 1 }

</bundles_post_ra>
